<compile_context>
chip_gen: v7x
topology: tpu7x:2x2x1
jax: 0.10.0
libtpu: 0.0.40
codegen_flags: <defaults>
</compile_context>

<pallas_src>
import functools

import jax
import jax.numpy as jnp
from jax.experimental import pallas as pl
from jax.experimental.pallas import tpu as pltpu


def _conv_bn_leaky_kernel(x_ref, w_ref, b_ref, o_ref, *,
                          ksize, stride, tile_oh, ow, cin, cout_p):
    """One (batch, output-row-tile) grid step.

    x_ref : (Hp, Wp, Cin)            bf16  padded NHWC image (batch squeezed),
                                           resident across the row-tile axis.
    w_ref : (K*K*Cin, Cout_p)        bf16  BN-scale-folded conv weight, tap-major.
    b_ref : (1, Cout_p)              f32   folded BN bias.
    o_ref : (tile_oh, OW, Cout_p)    bf16  output tile (lane-dense Cout_p).
    """
    r = pl.program_id(1)
    row0 = pl.multiple_of(r * (tile_oh * stride), tile_oh * stride)
    m = tile_oh * ow

    def win(start, size):
        # Strided window only when the conv stride is > 1 (traced per config).
        return pl.ds(start, size) if stride == 1 else pl.ds(start, size, stride)

    # Fused im2col: each (kh, kw) tap is a (tile_oh, OW, Cin) window read
    # directly from the VMEM-resident image Ref (no value-domain strided
    # slices), flattened to (M, Cin) and concatenated along the contraction
    # axis -> (M, K*K*Cin).  Concat is done in f32 (the most robust 32-bit
    # relayout path); bf16 -> f32 -> bf16 is exact so numerics are unchanged.
    taps = []
    for kh in range(ksize):
        for kw in range(ksize):
            t = x_ref[win(row0 + kh, tile_oh), win(kw, ow), :]   # (tile_oh, OW, Cin)
            taps.append(t.reshape(m, cin).astype(jnp.float32))
    patch = jnp.concatenate(taps, axis=1).astype(jnp.bfloat16)    # (M, K*K*Cin)

    # Single MXU contraction over K*K*Cin with f32 accumulation (stays in the
    # MXU result buffer on v7x — no per-tap pop + VPU add + spill).
    y = jnp.dot(patch, w_ref[...], preferred_element_type=jnp.float32)
    y = y + b_ref[...]                    # folded BN bias
    y = jnp.maximum(y, 0.1 * y)           # LeakyReLU(negative_slope=0.1), 1 VALU op
    o_ref[...] = y.reshape(tile_oh, ow, cout_p).astype(o_ref.dtype)


def _pick_tile_oh(oh, ow, target_rows=2048):
    """Largest divisor t of OH with t*OW <= target_rows, preferring t*OW % 8 == 0."""
    best, best_aligned = 1, None
    for t in range(1, oh + 1):
        if oh % t == 0 and t * ow <= target_rows:
            best = t
            if (t * ow) % 8 == 0:
                best_aligned = t
    return best_aligned if best_aligned is not None else best


def _round_up(v, m):
    return (v + m - 1) // m * m


def _vmem_limit_bytes(hp, wp, cin, kk, cout_p, tile_oh, ow):
    """Scoped-VMEM limit computed from actual (tile-padded) buffer sizes.

    Capped at 56 MiB so it stays inside v7x's 64 MiB physical VMEM; v5e/v6e
    (128 MiB) have plenty of headroom to raise the cap if larger tiles or
    whole-image residency of big early-layer feature maps is desired.
    """
    def tiled_bytes(shape, dtype_bytes):
        sub = 8 * (4 // dtype_bytes)          # (8,128) f32 tiling, (16,128) bf16
        s = list(shape)
        s[-1] = _round_up(s[-1], 128)
        s[-2] = _round_up(s[-2], sub)
        n = 1
        for d in s:
            n *= d
        return n * dtype_bytes

    img = tiled_bytes((hp, wp, cin), 2)
    wgt = tiled_bytes((kk * cin, cout_p), 2)
    bia = tiled_bytes((1, cout_p), 4)
    out = tiled_bytes((tile_oh, ow, cout_p), 2)
    work = tiled_bytes((tile_oh * ow, kk * cin), 4) + tiled_bytes((tile_oh * ow, cout_p), 4)
    need = 2 * (img + wgt + bia + out) + work     # double-buffered operands + live values
    return int(min(max(4 * need + (16 << 20), 32 << 20), 56 << 20))


@functools.partial(jax.jit, static_argnames=("ksize", "stride", "pad"))
def yolo_conv_block(x, weight, gamma, beta, running_mean, running_var,
                    *, ksize, stride, pad):
    """Forward pass of YOLOConvBlock (batchnorm=True, activation='leaky').

    x:       (N, Cin, H, W)    float32, NCHW (PyTorch convention)
    weight:  (Cout, Cin, K, K) float32 (PyTorch Conv2d weight layout, no bias)
    Returns: (N, Cout, OH, OW) float32, NCHW.
    """
    n, cin, h, w = x.shape
    cout = weight.shape[0]
    eps = 1e-6  # Darknet / module BatchNorm eps (NOT the PyTorch default 1e-5)
    kk = ksize * ksize

    oh = (h + 2 * pad - ksize) // stride + 1
    ow = (w + 2 * pad - ksize) // stride + 1
    hp, wp = h + 2 * pad, w + 2 * pad

    # Lane-dense output channels (multiple of 128) -> unmasked stores.
    cout_p = ((cout + 127) // 128) * 128

    # NCHW -> NHWC (channels minor), bf16, zero-pad spatially.  XLA fuses the
    # transpose+cast+pad into one pass; the pad runs on half-width bf16 bytes.
    x_nhwc = jnp.transpose(x, (0, 2, 3, 1)).astype(jnp.bfloat16)
    x_pad = jnp.pad(x_nhwc, ((0, 0), (pad, pad), (pad, pad), (0, 0)))

    # Fold BN (running stats) into the conv weight and a per-channel bias:
    #   y = (conv(x, W) - mean) * gamma / sqrt(var+eps) + beta
    #     = conv(x, W * scale) + (beta - mean * scale)
    scale = gamma / jnp.sqrt(running_var + eps)                        # (Cout,)
    bias = beta - running_mean * scale                                 # (Cout,)
    # (Cout, Cin, K, K) -> (K, K, Cin, Cout) -> (K*K*Cin, Cout): row index is
    # (kh*K + kw)*Cin + c, matching the kernel's tap-concat order. Fold in f32.
    w_mat = jnp.transpose(weight, (2, 3, 1, 0)).reshape(kk * cin, cout)
    w_mat = w_mat.astype(jnp.float32) * scale[None, :]
    w_mat = jnp.pad(w_mat, ((0, 0), (0, cout_p - cout))).astype(jnp.bfloat16)
    bias_p = jnp.pad(bias.astype(jnp.float32), (0, cout_p - cout)).reshape(1, cout_p)

    tile_oh = _pick_tile_oh(oh, ow)
    r_tiles = oh // tile_oh

    kernel = functools.partial(
        _conv_bn_leaky_kernel, ksize=ksize, stride=stride,
        tile_oh=tile_oh, ow=ow, cin=cin, cout_p=cout_p)

    out = pl.pallas_call(
        kernel,
        out_shape=jax.ShapeDtypeStruct((n * oh, ow, cout_p), jnp.bfloat16),
        grid=(n, r_tiles),
        in_specs=[
            # Full padded image of one batch element; block index is constant
            # across the row-tile axis so it is DMA'd once per image.
            pl.BlockSpec((None, hp, wp, cin), lambda i, r: (i, 0, 0, 0)),
            # Folded weight + bias stay fully resident in VMEM.
            pl.BlockSpec((kk * cin, cout_p), lambda i, r: (0, 0)),
            pl.BlockSpec((1, cout_p), lambda i, r: (0, 0)),
        ],
        out_specs=pl.BlockSpec((tile_oh, ow, cout_p),
                               lambda i, r: (i * r_tiles + r, 0, 0)),
        compiler_params=pltpu.CompilerParams(
            # Row tiles carry no accumulator and write disjoint blocks, so both
            # axes are parallel (lets v7x's 2 TensorCores split batch=1 work).
            dimension_semantics=("parallel", "parallel"),
            vmem_limit_bytes=_vmem_limit_bytes(hp, wp, cin, kk, cout_p, tile_oh, ow)),
    )(x_pad, w_mat, bias_p)

    out = out.reshape(n, oh, ow, cout_p)[..., :cout].astype(jnp.float32)
    return jnp.transpose(out, (0, 3, 1, 2))


def _reference(x, weight, gamma, beta, running_mean, running_var,
               *, ksize, stride, pad):
    """Pure-JAX f32 reference for validation (PyTorch eval semantics)."""
    y = jax.lax.conv_general_dilated(
        x, weight, window_strides=(stride, stride),
        padding=[(pad, pad), (pad, pad)],
        dimension_numbers=("NCHW", "OIHW", "NCHW"))
    scale = gamma / jnp.sqrt(running_var + 1e-6)
    bias = beta - running_mean * scale
    y = y * scale[None, :, None, None] + bias[None, :, None, None]
    return jnp.where(y > 0, y, 0.1 * y)


if __name__ == "__main__":
    # Module config: in_channels=4, out_channels=8, ksize=3, stride=1,
    # activation='leaky', pad=1, batchnorm=True
    N, CIN, H, W = 2, 4, 16, 16
    COUT, KSIZE, STRIDE, PAD = 8, 3, 1, 1

    key = jax.random.PRNGKey(0)
    kx, kw, kg, kb, km, kv = jax.random.split(key, 6)

    x = jax.random.normal(kx, (N, CIN, H, W), dtype=jnp.float32)
    weight = jax.random.normal(kw, (COUT, CIN, KSIZE, KSIZE), dtype=jnp.float32) * 0.1
    gamma = 1.0 + 0.1 * jax.random.normal(kg, (COUT,), dtype=jnp.float32)
    beta = 0.1 * jax.random.normal(kb, (COUT,), dtype=jnp.float32)
    running_mean = 0.1 * jax.random.normal(km, (COUT,), dtype=jnp.float32)
    running_var = jnp.abs(1.0 + 0.1 * jax.random.normal(kv, (COUT,), dtype=jnp.float32))

    out = yolo_conv_block(x, weight, gamma, beta, running_mean, running_var,
                          ksize=KSIZE, stride=STRIDE, pad=PAD)
    out = jax.block_until_ready(out)

    ref = _reference(x, weight, gamma, beta, running_mean, running_var,
                     ksize=KSIZE, stride=STRIDE, pad=PAD)
    assert out.shape == (N, COUT, H, W), out.shape
    # bf16 matmul operands + bf16 output store (f32 accumulation) -> loosened tol.
    assert jnp.allclose(out, ref, atol=5e-2, rtol=5e-2), float(
        jnp.max(jnp.abs(out - ref)))

    print("KERNEL_OK")
</pallas_src>

<mosaic_0001>
module attributes {stable_mosaic.version = 11 : i64} {
  func.func @_conv_bn_leaky_kernel(%arg0: i32, %arg1: i32, %arg2: memref<1x18x18x4xbf16, #tpu.memory_space<vmem>>, %arg3: memref<36x128xbf16, #tpu.memory_space<vmem>>, %arg4: memref<1x128xf32, #tpu.memory_space<vmem>>, %arg5: memref<16x16x128xbf16, #tpu.memory_space<vmem>>) attributes {dimension_semantics = [#tpu.dimension_semantics<parallel>, #tpu.dimension_semantics<parallel>], iteration_bounds = array<i64: 2, 1>, scalar_prefetch = 0 : i64, scratch_operands = 0 : i64, tpu.core_type = #tpu.core_type<tc>, window_params = [{transform_indices = @transform_0, window_bounds = array<i64: 1, 18, 18, 4>}, {pipeline_mode = #tpu.pipeline_mode<synchronous>, transform_indices = @transform_1, window_bounds = array<i64: 36, 128>}, {pipeline_mode = #tpu.pipeline_mode<synchronous>, transform_indices = @transform_2, window_bounds = array<i64: 1, 128>}, {transform_indices = @transform_3, window_bounds = array<i64: 16, 16, 128>}]} {
    %c16_i32 = arith.constant 16 : i32
    %0 = arith.muli %arg1, %c16_i32 : i32
    %1 = tpu.assume_multiple %0, 16 : i32
    %c0_i32 = arith.constant 0 : i32
    %2 = arith.addi %1, %c0_i32 : i32
    %c0 = arith.constant 0 : index
    %3 = arith.index_cast %2 : i32 to index
    %c0_0 = arith.constant 0 : index
    %c0_1 = arith.constant 0 : index
    %4 = vector.load %arg2[%c0, %3, %c0_0, %c0_1] : memref<1x18x18x4xbf16, #tpu.memory_space<vmem>>, vector<1x16x16x4xbf16>
    %5 = vector.shape_cast %4 : vector<1x16x16x4xbf16> to vector<16x16x4xbf16>
    %6 = vector.shape_cast %5 : vector<16x16x4xbf16> to vector<256x4xbf16>
    %7 = arith.extf %6 : vector<256x4xbf16> to vector<256x4xf32>
    %c0_i32_2 = arith.constant 0 : i32
    %8 = arith.addi %1, %c0_i32_2 : i32
    %c0_3 = arith.constant 0 : index
    %9 = arith.index_cast %8 : i32 to index
    %c1 = arith.constant 1 : index
    %c0_4 = arith.constant 0 : index
    %10 = vector.load %arg2[%c0_3, %9, %c1, %c0_4] : memref<1x18x18x4xbf16, #tpu.memory_space<vmem>>, vector<1x16x16x4xbf16>
    %11 = vector.shape_cast %10 : vector<1x16x16x4xbf16> to vector<16x16x4xbf16>
    %12 = vector.shape_cast %11 : vector<16x16x4xbf16> to vector<256x4xbf16>
    %13 = arith.extf %12 : vector<256x4xbf16> to vector<256x4xf32>
    %c0_i32_5 = arith.constant 0 : i32
    %14 = arith.addi %1, %c0_i32_5 : i32
    %c0_6 = arith.constant 0 : index
    %15 = arith.index_cast %14 : i32 to index
    %c2 = arith.constant 2 : index
    %c0_7 = arith.constant 0 : index
    %16 = vector.load %arg2[%c0_6, %15, %c2, %c0_7] : memref<1x18x18x4xbf16, #tpu.memory_space<vmem>>, vector<1x16x16x4xbf16>
    %17 = vector.shape_cast %16 : vector<1x16x16x4xbf16> to vector<16x16x4xbf16>
    %18 = vector.shape_cast %17 : vector<16x16x4xbf16> to vector<256x4xbf16>
    %19 = arith.extf %18 : vector<256x4xbf16> to vector<256x4xf32>
    %c1_i32 = arith.constant 1 : i32
    %20 = arith.addi %1, %c1_i32 : i32
    %c0_8 = arith.constant 0 : index
    %21 = arith.index_cast %20 : i32 to index
    %c0_9 = arith.constant 0 : index
    %c0_10 = arith.constant 0 : index
    %22 = vector.load %arg2[%c0_8, %21, %c0_9, %c0_10] : memref<1x18x18x4xbf16, #tpu.memory_space<vmem>>, vector<1x16x16x4xbf16>
    %23 = vector.shape_cast %22 : vector<1x16x16x4xbf16> to vector<16x16x4xbf16>
    %24 = vector.shape_cast %23 : vector<16x16x4xbf16> to vector<256x4xbf16>
    %25 = arith.extf %24 : vector<256x4xbf16> to vector<256x4xf32>
    %c1_i32_11 = arith.constant 1 : i32
    %26 = arith.addi %1, %c1_i32_11 : i32
    %c0_12 = arith.constant 0 : index
    %27 = arith.index_cast %26 : i32 to index
    %c1_13 = arith.constant 1 : index
    %c0_14 = arith.constant 0 : index
    %28 = vector.load %arg2[%c0_12, %27, %c1_13, %c0_14] : memref<1x18x18x4xbf16, #tpu.memory_space<vmem>>, vector<1x16x16x4xbf16>
    %29 = vector.shape_cast %28 : vector<1x16x16x4xbf16> to vector<16x16x4xbf16>
    %30 = vector.shape_cast %29 : vector<16x16x4xbf16> to vector<256x4xbf16>
    %31 = arith.extf %30 : vector<256x4xbf16> to vector<256x4xf32>
    %c1_i32_15 = arith.constant 1 : i32
    %32 = arith.addi %1, %c1_i32_15 : i32
    %c0_16 = arith.constant 0 : index
    %33 = arith.index_cast %32 : i32 to index
    %c2_17 = arith.constant 2 : index
    %c0_18 = arith.constant 0 : index
    %34 = vector.load %arg2[%c0_16, %33, %c2_17, %c0_18] : memref<1x18x18x4xbf16, #tpu.memory_space<vmem>>, vector<1x16x16x4xbf16>
    %35 = vector.shape_cast %34 : vector<1x16x16x4xbf16> to vector<16x16x4xbf16>
    %36 = vector.shape_cast %35 : vector<16x16x4xbf16> to vector<256x4xbf16>
    %37 = arith.extf %36 : vector<256x4xbf16> to vector<256x4xf32>
    %c2_i32 = arith.constant 2 : i32
    %38 = arith.addi %1, %c2_i32 : i32
    %c0_19 = arith.constant 0 : index
    %39 = arith.index_cast %38 : i32 to index
    %c0_20 = arith.constant 0 : index
    %c0_21 = arith.constant 0 : index
    %40 = vector.load %arg2[%c0_19, %39, %c0_20, %c0_21] : memref<1x18x18x4xbf16, #tpu.memory_space<vmem>>, vector<1x16x16x4xbf16>
    %41 = vector.shape_cast %40 : vector<1x16x16x4xbf16> to vector<16x16x4xbf16>
    %42 = vector.shape_cast %41 : vector<16x16x4xbf16> to vector<256x4xbf16>
    %43 = arith.extf %42 : vector<256x4xbf16> to vector<256x4xf32>
    %c2_i32_22 = arith.constant 2 : i32
    %44 = arith.addi %1, %c2_i32_22 : i32
    %c0_23 = arith.constant 0 : index
    %45 = arith.index_cast %44 : i32 to index
    %c1_24 = arith.constant 1 : index
    %c0_25 = arith.constant 0 : index
    %46 = vector.load %arg2[%c0_23, %45, %c1_24, %c0_25] : memref<1x18x18x4xbf16, #tpu.memory_space<vmem>>, vector<1x16x16x4xbf16>
    %47 = vector.shape_cast %46 : vector<1x16x16x4xbf16> to vector<16x16x4xbf16>
    %48 = vector.shape_cast %47 : vector<16x16x4xbf16> to vector<256x4xbf16>
    %49 = arith.extf %48 : vector<256x4xbf16> to vector<256x4xf32>
    %c2_i32_26 = arith.constant 2 : i32
    %50 = arith.addi %1, %c2_i32_26 : i32
    %c0_27 = arith.constant 0 : index
    %51 = arith.index_cast %50 : i32 to index
    %c2_28 = arith.constant 2 : index
    %c0_29 = arith.constant 0 : index
    %52 = vector.load %arg2[%c0_27, %51, %c2_28, %c0_29] : memref<1x18x18x4xbf16, #tpu.memory_space<vmem>>, vector<1x16x16x4xbf16>
    %53 = vector.shape_cast %52 : vector<1x16x16x4xbf16> to vector<16x16x4xbf16>
    %54 = vector.shape_cast %53 : vector<16x16x4xbf16> to vector<256x4xbf16>
    %55 = arith.extf %54 : vector<256x4xbf16> to vector<256x4xf32>
    %56 = tpu.concatenate %7, %13, %19, %25, %31, %37, %43, %49, %55 in 1 : vector<256x4xf32>, vector<256x4xf32>, vector<256x4xf32>, vector<256x4xf32>, vector<256x4xf32>, vector<256x4xf32>, vector<256x4xf32>, vector<256x4xf32>, vector<256x4xf32> -> vector<256x36xf32>
    %57 = arith.truncf %56 : vector<256x36xf32> to vector<256x36xbf16>
    %c0_30 = arith.constant 0 : index
    %c0_31 = arith.constant 0 : index
    %58 = vector.load %arg3[%c0_30, %c0_31] : memref<36x128xbf16, #tpu.memory_space<vmem>>, vector<36x128xbf16>
    %cst = arith.constant dense<0.000000e+00> : vector<256x128xf32>
    %59 = tpu.matmul %57, %58, %cst {dimension_numbers = #tpu.dot_dimension_numbers<[1], [0], [0], [1], [0, 0, 1, 1], [], []>} : vector<256x36xbf16>, vector<36x128xbf16>, vector<256x128xf32> -> vector<256x128xf32>
    %c0_32 = arith.constant 0 : index
    %c0_33 = arith.constant 0 : index
    %60 = vector.load %arg4[%c0_32, %c0_33] : memref<1x128xf32, #tpu.memory_space<vmem>>, vector<1x128xf32>
    %61 = vector.broadcast %60 : vector<1x128xf32> to vector<256x128xf32>
    %62 = arith.addf %59, %61 : vector<256x128xf32>
    %cst_34 = arith.constant 1.000000e-01 : f32
    %63 = vector.broadcast %cst_34 : f32 to vector<256x128xf32>
    %64 = arith.mulf %63, %62 : vector<256x128xf32>
    %65 = arith.maximumf %62, %64 : vector<256x128xf32>
    %66 = vector.shape_cast %65 : vector<256x128xf32> to vector<16x16x128xf32>
    %67 = arith.truncf %66 : vector<16x16x128xf32> to vector<16x16x128xbf16>
    %c0_35 = arith.constant 0 : index
    %c0_36 = arith.constant 0 : index
    %c0_37 = arith.constant 0 : index
    %68 = vector.load %arg5[%c0_35, %c0_36, %c0_37] : memref<16x16x128xbf16, #tpu.memory_space<vmem>>, vector<16x16x128xbf16>
    tpu.vector_store %arg5[%c0_35, %c0_36, %c0_37], %67 {strides = array<i32>} : memref<16x16x128xbf16, #tpu.memory_space<vmem>>, vector<16x16x128xbf16>,
    return
  }
  func.func @transform_0(%arg0: i32, %arg1: i32) -> (i32, i32, i32, i32) {
    %c0_i32 = arith.constant 0 : i32
    %c0_i32_0 = arith.constant 0 : i32
    %c0_i32_1 = arith.constant 0 : i32
    %c0_i32_2 = arith.constant 0 : i32
    return %arg0, %c0_i32, %c0_i32_0, %c0_i32_1 : i32, i32, i32, i32
  }
  func.func @transform_1(%arg0: i32, %arg1: i32) -> (i32, i32) {
    %c0_i32 = arith.constant 0 : i32
    %c0_i32_0 = arith.constant 0 : i32
    %c0_i32_1 = arith.constant 0 : i32
    return %c0_i32, %c0_i32_0 : i32, i32
  }
  func.func @transform_2(%arg0: i32, %arg1: i32) -> (i32, i32) {
    %c0_i32 = arith.constant 0 : i32
    %c0_i32_0 = arith.constant 0 : i32
    %c0_i32_1 = arith.constant 0 : i32
    return %c0_i32, %c0_i32_0 : i32, i32
  }
  func.func @transform_3(%arg0: i32, %arg1: i32) -> (i32, i32, i32) {
    %c1_i32 = arith.constant 1 : i32
    %0 = arith.muli %arg0, %c1_i32 : i32
    %1 = arith.addi %0, %arg1 : i32
    %c0_i32 = arith.constant 0 : i32
    %c0_i32_0 = arith.constant 0 : i32
    %c0_i32_1 = arith.constant 0 : i32
    return %1, %c0_i32, %c0_i32_0 : i32, i32, i32
  }
}

</mosaic_0001>

<bundles_post_ra>
// kernel: yolo_conv_block.1
= control target key start
LH: loop header
LB: loop body
LE: loop exit
PB: predicated region body
PF: predicated region fallthrough
CT: control target
= control target key end

     0   :  { %s5563_s12 = smov 0   ;;  %s5565_s13 = smov 0   ;;  %s8205_s0 = inlined_call_operand.vmem [shape: bf16[2,18,18,4], index: 0, kind: input, shape index: {}]   ;;  %s8206_s1 = inlined_call_operand.vmem [shape: bf16[36,128], index: 1, kind: input, shape index: {}]   ;;  %s8207_s2 = inlined_call_operand.vmem [shape: f32[1,128], index: 2, kind: input, shape index: {}]   ;;  %s8208_s3 = inlined_call_operand.vmem [shape: bf16[32,16,128], index: 3, kind: output, shape index: {}]  }
   0x1   :  { %s5567_s14 = smov 0  }
   0x2 LB: > { %s25_s15 = sadd.s32 1, %s5529_s13  ;;  %p4367_p0 = scmp.ge.s32.totalorder %s5533_s14, 1  ;;  %s5533_s14 = sphi %s5567_s14, %s13_s14   ;;  %s5529_s13 = sphi %s5565_s13, %s8418_s13   ;;  %s5525_s12 = sphi %s5563_s12, %s8417_s12  }
   0x3   : > { %p27_p1 = scmp.ge.s32.totalorder %s25_s15, 2  ;;  %p151_p2 = scmp.lt.s32.totalorder %s5533_s14, 3 }
   0x5   : > { %s8420_s15 = smov (%p27_p1, %s25_s15), 0  ;;  %p152_p3 = pnand %p4367_p0, %p151_p2 }
   0x7   : > { %155 = sbr.rel (%p152_p3) target bundleno = 805 (0x325), region = 32 }
   0xe   : > { %p177_p4 = scmp.lt.s32.totalorder %s5525_s12, 1  ;;  %vm276_vm0 = vsmask.f32 3328  ;;  %vm277_vm1 = vsmask.f32 7440  ;;  %s5535_s21 = smov 4  }
   0xf   : > { %vm5616_vm2 = vmor %vm276_vm0, %vm277_vm1  ;;  %vm791_vm3 = vcmask 1042432   ;;  %vm792_vm4 = vcmask 1046532   ;;  %s5536_s22 = smov 8   ;;  %s5537_s23 = smov 12   ;;  %vm3538_vm6 = vcmask 31744   ;;  %vm3571_vm7 = vcmask 64512  }
  0x10   : > { %s178_s16 = scalar_select %p177_p4, %s5525_s12, 1  ;;  %vm5828_vm5 = vmor %vm791_vm3, %vm792_vm4  ;;  %vm3604_vm8 = vcmask 97280   ;;  %vm3637_vm9 = vcmask 130048   ;;  %vm3670_vm10 = vcmask 162816   ;;  %vm3703_vm11 = vcmask 195584  }
  0x11   : > { %s5538_s24 = smov 16   ;;  %s5539_s25 = smov 20   ;;  %vm3736_vm12 = vcmask 228352   ;;  %vm3769_vm13 = vcmask 261120   ;;  %vm3894_vm14 = vcmask 1041408   ;;  %vm3845_vm15 = vcmask 293888  }
  0x12   : > { %s4795_s17 = smul.u32 216, %s178_s16  ;;  %s5540_s26 = smov 24  }
  0x13   : > { %s5541_s27 = smov 28   ;;  %s5542_s28 = smov 32  }
  0x14   : > { %s5588_s20 = scalar_lea.vmem %s8205_s0, %s4795_s17  ;;  %s4369_s8 = sshll.u32 %s5525_s12, 4 }
  0x15   : > { %v200_v0 = vld [vmem:[%s5588_s20 + $0x18] sm:$0xf]  ;;  %v5592_v1 = vld [vmem:[%s5588_s20 + $0x1c] sm:$0xf]  ;;  %v5595_v2 = vld [vmem:[%s5588_s20 + $0x20] sm:$0x1] }
  0x16   : > { %v328_v3 = vshrl.u32 %v200_v0, 16  ;;  %v331_v4 = vshll.u32 %v200_v0, 16  ;;  %v337_v5 = vshll.u32 %v5592_v1, 16  ;;  %v341_v6 = vshrl.u32 %v5592_v1, 16  ;;  %v196_v7 = vld [vmem:[%s5588_s20] sm:$0xf] }
  0x17   : > { %v347_v8 = vshll.u32 %v5595_v2, 16  ;;  %v5602_v9 = vld [vmem:[%s5588_s20 + $0x4] sm:$0xf]  ;;  %v5605_v10 = vld [vmem:[%s5588_s20 + $0x8] sm:$0x1]  ;;  %v280_v11 = vshrl.u32 %v196_v7, 16 }
  0x18   : > { %v330_v12 = vrot.slane %v328_v3, 4  ;;  %v333_v13 = vrot.slane %v331_v4, 5  ;;  %v339_v14 = vrot.slane %v337_v5, 5  ;;  %v343_v15 = vrot.slane %v341_v6, 4  ;;  %v202_v16 = vld [vmem:[%s5588_s20 + $0x24] sm:$0xf] }
  0x19   : > { %v349_v17 = vrot.slane %v347_v8, 5  ;;  %v282_v18 = vrot.slane %v280_v11, 4  ;;  %v283_v19 = vshll.u32 %v196_v7, 16  ;;  %v289_v20 = vshll.u32 %v5602_v9, 16  ;;  %v5612_v25 = vld [vmem:[%s5588_s20 + $0x28] sm:$0xf] }
  0x1a   : > { %v334_v21 = vor.u32 %v333_v13, %v330_v12  ;;  %v344_v22 = vor.u32 %v343_v15, %v339_v14  ;;  %v293_v23 = vshrl.u32 %v5602_v9, 16  ;;  %v299_v24 = vshll.u32 %v5605_v10, 16  ;;  %v5621_v36 = vld [vmem:[%s5588_s20 + $0x2c] sm:$0x1]  ;;  %v5634_v56 = vld [vmem:[%s5588_s20 + $0x10] sm:$0xf] }
  0x1b   : > { %v285_v27 = vrot.slane %v283_v19, 5  ;;  %v291_v28 = vrot.slane %v289_v20, 5  ;;  %v352_v29 = vshrl.u32 %v202_v16, 16  ;;  %v355_v30 = vshll.u32 %v202_v16, 16  ;;  %v198_v44 = vld [vmem:[%s5588_s20 + $0xc] sm:$0xf] }
  0x1c   : > { %v335_v31 = vrot.slane %v334_v21, 4  ;;  %v345_v32 = vrot.slane %v344_v22, 4  ;;  %v295_v33 = vrot.slane %v293_v23, 4  ;;  %v301_v34 = vrot.slane %v299_v24, 5  ;;  %v5639_v62 = vld [vmem:[%s5588_s20 + $0x14] sm:$0x1] }
  0x1d   : > { %v286_v35 = vor.u32 %v285_v27, %v282_v18  ;;  %v354_v37 = vrot.slane %v352_v29, 4  ;;  %v357_v38 = vrot.slane %v355_v30, 5  ;;  %v361_v39 = vshll.u32 %v5612_v25, 16  ;;  %v206_v63 = vld [vmem:[%s5588_s20 + $0x3c] sm:$0xf]  ;;  %p184_p5 = scmp.lt.s32.totalorder %s4369_s8, 31 }
  0x1e   : > { %v340_v40 = vsel %vm5616_vm2, %v335_v31, %v339_v14  ;;  %v350_v41 = vsel %vm5616_vm2, %v345_v32, %v349_v17  ;;  %v296_v42 = vor.u32 %v295_v33, %v291_v28  ;;  %v365_v43 = vshrl.u32 %v5612_v25, 16  ;;  %v5648_v12 = vld [vmem:[%s5588_s20 + $0x40] sm:$0xf]  ;;  %v5652_v16 = vld [vmem:[%s5588_s20 + $0x44] sm:$0x1] }
  0x1f   : > { %v699_v45 = vunpack.c.l.bf16 %v340_v40  ;;  %v700_v46 = vunpack.c.l.bf16 %v350_v41  ;;  %v287_v47 = vrot.slane %v286_v35, 4  ;;  %v358_v48 = vor.u32 %v357_v38, %v354_v37  ;;  %v204_v22 = vld [vmem:[%s5588_s20 + $0x30] sm:$0xf]  ;;  %v5662_v37 = vld [vmem:[%s5588_s20 + $0x34] sm:$0xf]  ;;  %s8422_s8 = smov (!%p184_p5, %s4369_s8), 31 }
  0x20   : > { %v297_v49 = vrot.slane %v296_v42, 4  ;;  %v363_v50 = vrot.slane %v361_v39, 5  ;;  %v367_v51 = vrot.slane %v365_v43, 4  ;;  %v371_v52 = vshll.u32 %v5621_v36, 16  ;;  %v5665_v43 = vld [vmem:[%s5588_s20 + $0x38] sm:$0x1] }
  0x21   : > { %v4838_v53 = vpack.i.bf16 %v700_v46, %v699_v45  ;;  %v292_v54 = vsel %vm5616_vm2, %v287_v47, %v291_v28  ;;  %v359_v55 = vrot.slane %v358_v48, 4  ;;  %v304_v57 = vshrl.u32 %v198_v44, 16  ;;  %v210_v48 = vld [vmem:[%s5588_s20 + $0x54] sm:$0xf]  ;;  %s4602_s11 = sshll.u32 %s8422_s8, 3 }
  0x22   : > { %v302_v58 = vsel %vm5616_vm2, %v297_v49, %v301_v34  ;;  %v695_v59 = vunpack.c.l.bf16 %v292_v54  ;;  %v368_v60 = vor.u32 %v367_v51, %v363_v50  ;;  %v373_v61 = vrot.slane %v371_v52, 5  ;;  %s8154_s17 = scalar_lea.vmem %s8208_s3, %s4602_s11 }
  0x23   : > { %4839 = vrot.lane.b32.xlu1 %v4838_v53, %s5535_s21  ;;  %v696_v0 = vunpack.c.l.bf16 %v302_v58  ;;  %v364_v3 = vsel %vm5616_vm2, %v359_v55, %v363_v50  ;;  %v306_v4 = vrot.slane %v304_v57, 4  ;;  %v307_v5 = vshll.u32 %v198_v44, 16 }
  0x24   : > { %v369_v6 = vrot.slane %v368_v60, 4  ;;  %v701_v7 = vunpack.c.l.bf16 %v364_v3  ;;  %v313_v8 = vshll.u32 %v5634_v56, 16  ;;  %v317_v11 = vshrl.u32 %v5634_v56, 16 }
  0x25   : > { %v4828_v13 = vpack.i.bf16 %v696_v0, %v695_v59  ;;  %v309_v14 = vrot.slane %v307_v5, 5  ;;  %v323_v15 = vshll.u32 %v5639_v62, 16  ;;  %v400_v17 = vshrl.u32 %v206_v63, 16 }
  0x26   : > { %v374_v18 = vsel %vm5616_vm2, %v369_v6, %v373_v61  ;;  %v315_v19 = vrot.slane %v313_v8, 5  ;;  %v319_v20 = vrot.slane %v317_v11, 4  ;;  %v403_v21 = vshll.u32 %v206_v63, 16  ;;  %v5679_v61 = vld [vmem:[%s5588_s20 + $0x58] sm:$0xf] }
  0x27   : > { %4829 = vrot.lane.b32.xlu0 %v4828_v13, %s5535_s21  ;;  %v702_v23 = vunpack.c.l.bf16 %v374_v18  ;;  %v310_v24 = vor.u32 %v309_v14, %v306_v4  ;;  %v325_v27 = vrot.slane %v323_v15, 5  ;;  %v402_v28 = vrot.slane %v400_v17, 4  ;;  %v5682_v6 = vld [vmem:[%s5588_s20 + $0x5c] sm:$0x1] }
  0x28   : > { %v320_v29 = vor.u32 %v319_v20, %v315_v19  ;;  %v405_v30 = vrot.slane %v403_v21, 5  ;;  %v409_v31 = vshll.u32 %v5648_v12, 16  ;;  %v413_v32 = vshrl.u32 %v5648_v12, 16 }
  0x29   : > { %v4843_v33 = vpack.i.bf16 %v702_v23, %v701_v7  ;;  %v311_v34 = vrot.slane %v310_v24, 4  ;;  %v419_v35 = vshll.u32 %v5652_v16, 16  ;;  %v376_v38 = vshrl.u32 %v204_v22, 16  ;;  %v208_v7 = vld [vmem:[%s5588_s20 + $0x48] sm:$0xf] }
  0x2a   : > { %v321_v39 = vrot.slane %v320_v29, 4  ;;  %v406_v40 = vor.u32 %v405_v30, %v402_v28  ;;  %v411_v41 = vrot.slane %v409_v31, 5  ;;  %v415_v42 = vrot.slane %v413_v32, 4  ;;  %v5692_v23 = vld [vmem:[%s5588_s20 + $0x4c] sm:$0xf] }
  0x2b   : > { %4844 = vrot.lane.b32.xlu1 %v4843_v33, %s5535_s21  ;;  %v316_v44 = vsel %vm5616_vm2, %v311_v34, %v315_v19  ;;  %v421_v45 = vrot.slane %v419_v35, 5  ;;  %v378_v46 = vrot.slane %v376_v38, 4  ;;  %v379_v47 = vshll.u32 %v204_v22, 16  ;;  %v5697_v31 = vld [vmem:[%s5588_s20 + $0x50] sm:$0x1] }
  0x2c   : > { %v326_v49 = vsel %vm5616_vm2, %v321_v39, %v325_v27  ;;  %v697_v50 = vunpack.c.l.bf16 %v316_v44  ;;  %v407_v51 = vrot.slane %v406_v40, 4  ;;  %v416_v52 = vor.u32 %v415_v42, %v411_v41  ;;  %v214_v42 = vld [vmem:[%s5588_s20 + $0x6c] sm:$0xf] }
  0x2d   : > { %v698_v53 = vunpack.c.l.bf16 %v326_v49  ;;  %v381_v54 = vrot.slane %v379_v47, 5  ;;  %v385_v55 = vshll.u32 %v5662_v37, 16  ;;  %v389_v57 = vshrl.u32 %v5662_v37, 16 }
  0x2e   : > { %v412_v58 = vsel %vm5616_vm2, %v407_v51, %v411_v41  ;;  %v417_v59 = vrot.slane %v416_v52, 4  ;;  %v395_v60 = vshll.u32 %v5665_v43, 16  ;;  %v448_v63 = vshrl.u32 %v210_v48, 16 }
  0x2f   : > { %v4833_v0 = vpack.i.bf16 %v698_v53, %v697_v50  ;;  %v705_v3 = vunpack.c.l.bf16 %v412_v58  ;;  %v382_v4 = vor.u32 %v381_v54, %v378_v46  ;;  %v387_v5 = vrot.slane %v385_v55, 5  ;;  %v5707_v55 = vld [vmem:[%s5588_s20 + $0x70] sm:$0xf] }
  0x30   : > { %v422_v8 = vsel %vm5616_vm2, %v417_v59, %v421_v45  ;;  %v391_v11 = vrot.slane %v389_v57, 4  ;;  %v397_v13 = vrot.slane %v395_v60, 5  ;;  %v450_v14 = vrot.slane %v448_v63, 4  ;;  %v5712_v63 = vld [vmem:[%s5588_s20 + $0x74] sm:$0x1] }
  0x31   : > { %4834 = vrot.lane.b32.xlu0 %v4833_v0, %s5535_s21  ;;  %v706_v15 = vunpack.c.l.bf16 %v422_v8  ;;  %v383_v17 = vrot.slane %v382_v4, 4  ;;  %v451_v18 = vshll.u32 %v210_v48, 16  ;;  %v457_v19 = vshll.u32 %v5679_v61, 16 }
  0x32   : > { %v392_v20 = vor.u32 %v391_v11, %v387_v5  ;;  %v461_v21 = vshrl.u32 %v5679_v61, 16  ;;  %v467_v22 = vshll.u32 %v5682_v6, 16  ;;  %v424_v24 = vshrl.u32 %v208_v7, 16 }
  0x33   : > { %v4853_v27 = vpack.i.bf16 %v706_v15, %v705_v3  ;;  %v388_v28 = vsel %vm5616_vm2, %v383_v17, %v387_v5  ;;  %v453_v29 = vrot.slane %v451_v18, 5  ;;  %v459_v30 = vrot.slane %v457_v19, 5  ;;  %v212_v3 = vld [vmem:[%s5588_s20 + $0x60] sm:$0xf] }
  0x34   : > { %v393_v32 = vrot.slane %v392_v20, 4  ;;  %v703_v33 = vunpack.c.l.bf16 %v388_v28  ;;  %v463_v34 = vrot.slane %v461_v21, 4  ;;  %v469_v35 = vrot.slane %v467_v22, 5  ;;  %v5724_v28 = vld [vmem:[%s5588_s20 + $0x64] sm:$0xf] }
  0x35   : > { %4854 = vrot.lane.b32.xlu1 %v4853_v27, %s5535_s21  ;;  %v454_v38 = vor.u32 %v453_v29, %v450_v14  ;;  %v426_v39 = vrot.slane %v424_v24, 4  ;;  %v427_v40 = vshll.u32 %v208_v7, 16  ;;  %v433_v41 = vshll.u32 %v5692_v23, 16  ;;  %v5727_v29 = vld [vmem:[%s5588_s20 + $0x68] sm:$0x1] }
  0x36   : > { %v398_v44 = vsel %vm5616_vm2, %v393_v32, %v397_v13  ;;  %v464_v45 = vor.u32 %v463_v34, %v459_v30  ;;  %v437_v46 = vshrl.u32 %v5692_v23, 16  ;;  %v443_v47 = vshll.u32 %v5697_v31, 16 }
  0x37   : > { %v704_v48 = vunpack.c.l.bf16 %v398_v44  ;;  %v455_v49 = vrot.slane %v454_v38, 4  ;;  %v429_v50 = vrot.slane %v427_v40, 5  ;;  %v435_v51 = vrot.slane %v433_v41, 5 }
  0x38   : > { %v465_v52 = vrot.slane %v464_v45, 4  ;;  %v439_v53 = vrot.slane %v437_v46, 4  ;;  %v445_v54 = vrot.slane %v443_v47, 5  ;;  %v496_v57 = vshrl.u32 %v214_v42, 16 }
  0x39   : > { %v4848_v58 = vpack.i.bf16 %v704_v48, %v703_v33  ;;  %v460_v59 = vsel %vm5616_vm2, %v455_v49, %v459_v30  ;;  %v430_v60 = vor.u32 %v429_v50, %v426_v39  ;;  %v499_v0 = vshll.u32 %v214_v42, 16  ;;  %v5739_v50 = vld [vmem:[%s5588_s20 + $0x88] sm:$0xf] }
  0x3a   : > { %v470_v4 = vsel %vm5616_vm2, %v465_v52, %v469_v35  ;;  %v709_v5 = vunpack.c.l.bf16 %v460_v59  ;;  %v440_v7 = vor.u32 %v439_v53, %v435_v51  ;;  %v498_v8 = vrot.slane %v496_v57, 4  ;;  %v218_v35 = vld [vmem:[%s5588_s20 + $0x84] sm:$0xf] }
  0x3b   : > { %4849 = vrot.lane.b32.xlu0 %v4848_v58, %s5535_s21  ;;  %v710_v11 = vunpack.c.l.bf16 %v470_v4  ;;  %v431_v13 = vrot.slane %v430_v60, 4  ;;  %v501_v14 = vrot.slane %v499_v0, 5  ;;  %v505_v15 = vshll.u32 %v5707_v55, 16  ;;  %v5742_v58 = vld [vmem:[%s5588_s20 + $0x8c] sm:$0x1] }
  0x3c   : > { %v441_v17 = vrot.slane %v440_v7, 4  ;;  %v509_v18 = vshrl.u32 %v5707_v55, 16  ;;  %v515_v19 = vshll.u32 %v5712_v63, 16  ;;  %v472_v20 = vshrl.u32 %v212_v3, 16  ;;  %v216_v4 = vld [vmem:[%s5588_s20 + $0x78] sm:$0xf] }
  0x3d   : > { %v4863_v21 = vpack.i.bf16 %v710_v11, %v709_v5  ;;  %v436_v22 = vsel %vm5616_vm2, %v431_v13, %v435_v51  ;;  %v502_v24 = vor.u32 %v501_v14, %v498_v8  ;;  %v507_v27 = vrot.slane %v505_v15, 5 }
  0x3e   : > { %v446_v30 = vsel %vm5616_vm2, %v441_v17, %v445_v54  ;;  %v707_v32 = vunpack.c.l.bf16 %v436_v22  ;;  %v511_v33 = vrot.slane %v509_v18, 4  ;;  %v517_v34 = vrot.slane %v515_v19, 5 }
  0x3f   : > { %4864 = vrot.lane.b32.xlu1 %v4863_v21, %s5535_s21  ;;  %v708_v38 = vunpack.c.l.bf16 %v446_v30  ;;  %v503_v39 = vrot.slane %v502_v24, 4  ;;  %v474_v40 = vrot.slane %v472_v20, 4  ;;  %v475_v41 = vshll.u32 %v212_v3, 16  ;;  %v5752_v21 = vld [vmem:[%s5588_s20 + $0x7c] sm:$0xf] }
  0x40   : > { %v512_v42 = vor.u32 %v511_v33, %v507_v27  ;;  %v481_v44 = vshll.u32 %v5724_v28, 16  ;;  %v485_v45 = vshrl.u32 %v5724_v28, 16  ;;  %v491_v46 = vshll.u32 %v5727_v29, 16  ;;  %v5757_v33 = vld [vmem:[%s5588_s20 + $0x80] sm:$0x1] }
  0x41   : > { %v4858_v47 = vpack.i.bf16 %v708_v38, %v707_v32  ;;  %v508_v48 = vsel %vm5616_vm2, %v503_v39, %v507_v27  ;;  %v477_v49 = vrot.slane %v475_v41, 5  ;;  %v544_v51 = vshrl.u32 %v218_v35, 16 }
  0x42   : > { %v513_v52 = vrot.slane %v512_v42, 4  ;;  %v713_v53 = vunpack.c.l.bf16 %v508_v48  ;;  %v483_v54 = vrot.slane %v481_v44, 5  ;;  %v487_v57 = vrot.slane %v485_v45, 4 }
  0x43   : > { %4859 = vrot.lane.b32.xlu0 %v4858_v47, %s5535_s21  ;;  %v478_v59 = vor.u32 %v477_v49, %v474_v40  ;;  %v493_v60 = vrot.slane %v491_v46, 5  ;;  %v546_v0 = vrot.slane %v544_v51, 4  ;;  %v547_v3 = vshll.u32 %v218_v35, 16 }
  0x44   : > { %v518_v5 = vsel %vm5616_vm2, %v513_v52, %v517_v34  ;;  %v488_v7 = vor.u32 %v487_v57, %v483_v54  ;;  %v553_v8 = vshll.u32 %v5739_v50, 16  ;;  %v557_v11 = vshrl.u32 %v5739_v50, 16  ;;  %v222_v34 = vld [vmem:[%s5588_s20 + $0x9c] sm:$0xf]  ;;  %v5769_v57 = vld [vmem:[%s5588_s20 + $0xa0] sm:$0xf] }
  0x45   : > { %v714_v13 = vunpack.c.l.bf16 %v518_v5  ;;  %v479_v14 = vrot.slane %v478_v59, 4  ;;  %v549_v15 = vrot.slane %v547_v3, 5  ;;  %v563_v17 = vshll.u32 %v5742_v58, 16  ;;  %v5772_v59 = vld [vmem:[%s5588_s20 + $0xa4] sm:$0x1] }
  0x46   : > { %v489_v18 = vrot.slane %v488_v7, 4  ;;  %v555_v19 = vrot.slane %v553_v8, 5  ;;  %v559_v20 = vrot.slane %v557_v11, 4  ;;  %v520_v22 = vshrl.u32 %v216_v4, 16  ;;  %v220_v5 = vld [vmem:[%s5588_s20 + $0x90] sm:$0xf] }
  0x47   : > { %v4873_v24 = vpack.i.bf16 %v714_v13, %v713_v53  ;;  %v484_v27 = vsel %vm5616_vm2, %v479_v14, %v483_v54  ;;  %v550_v30 = vor.u32 %v549_v15, %v546_v0  ;;  %v565_v32 = vrot.slane %v563_v17, 5 }
  0x48   : > { %v494_v35 = vsel %vm5616_vm2, %v489_v18, %v493_v60  ;;  %v711_v38 = vunpack.c.l.bf16 %v484_v27  ;;  %v560_v39 = vor.u32 %v559_v20, %v555_v19  ;;  %v522_v40 = vrot.slane %v520_v22, 4 }
  0x49   : > { %4874 = vrot.lane.b32.xlu1 %v4873_v24, %s5535_s21  ;;  %v712_v41 = vunpack.c.l.bf16 %v494_v35  ;;  %v551_v42 = vrot.slane %v550_v30, 4  ;;  %v523_v44 = vshll.u32 %v216_v4, 16  ;;  %v529_v45 = vshll.u32 %v5752_v21, 16  ;;  %v5782_v24 = vld [vmem:[%s5588_s20 + $0x94] sm:$0xf] }
  0x4a   : > { %v561_v46 = vrot.slane %v560_v39, 4  ;;  %v533_v47 = vshrl.u32 %v5752_v21, 16  ;;  %v539_v48 = vshll.u32 %v5757_v33, 16  ;;  %v592_v49 = vshrl.u32 %v222_v34, 16 }
  0x4b   : > { %v4868_v51 = vpack.i.bf16 %v712_v41, %v711_v38  ;;  %v556_v52 = vsel %vm5616_vm2, %v551_v42, %v555_v19  ;;  %v525_v53 = vrot.slane %v523_v44, 5  ;;  %v531_v54 = vrot.slane %v529_v45, 5  ;;  %v226_v44 = vld [vmem:[%s5588_s20 + $0xb4] sm:$0xf] }
  0x4c   : > { %v566_v60 = vsel %vm5616_vm2, %v561_v46, %v565_v32  ;;  %v717_v0 = vunpack.c.l.bf16 %v556_v52  ;;  %v535_v3 = vrot.slane %v533_v47, 4  ;;  %v541_v4 = vrot.slane %v539_v48, 5 }
  0x4d   : > { %4869 = vrot.lane.b32.xlu0 %v4868_v51, %s5535_s21  ;;  %v718_v7 = vunpack.c.l.bf16 %v566_v60  ;;  %v526_v8 = vor.u32 %v525_v53, %v522_v40  ;;  %v594_v11 = vrot.slane %v592_v49, 4  ;;  %v595_v13 = vshll.u32 %v222_v34, 16  ;;  %v5788_v40 = vld [vmem:[%s5588_s20 + $0x98] sm:$0x1] }
  0x4e   : > { %v536_v14 = vor.u32 %v535_v3, %v531_v54  ;;  %v601_v15 = vshll.u32 %v5769_v57, 16  ;;  %v605_v17 = vshrl.u32 %v5769_v57, 16  ;;  %v611_v18 = vshll.u32 %v5772_v59, 16  ;;  %v5797_v3 = vld [vmem:[%s5588_s20 + $0xb8] sm:$0xf] }
  0x4f   : > { %v4883_v19 = vpack.i.bf16 %v718_v7, %v717_v0  ;;  %v527_v20 = vrot.slane %v526_v8, 4  ;;  %v597_v22 = vrot.slane %v595_v13, 5  ;;  %v568_v27 = vshrl.u32 %v220_v5, 16  ;;  %v5802_v13 = vld [vmem:[%s5588_s20 + $0xbc] sm:$0x1] }
  0x50   : > { %v537_v30 = vrot.slane %v536_v14, 4  ;;  %v603_v32 = vrot.slane %v601_v15, 5  ;;  %v607_v35 = vrot.slane %v605_v17, 4  ;;  %v613_v38 = vrot.slane %v611_v18, 5  ;;  %v224_v14 = vld [vmem:[%s5588_s20 + $0xa8] sm:$0xf] }
  0x51   : > { %4884 = vrot.lane.b32.xlu1 %v4883_v19, %s5535_s21  ;;  %v532_v34 = vsel %vm5616_vm2, %v527_v20, %v531_v54  ;;  %v598_v39 = vor.u32 %v597_v22, %v594_v11  ;;  %v570_v41 = vrot.slane %v568_v27, 4  ;;  %v571_v42 = vshll.u32 %v220_v5, 16 }
  0x52   : > { %v542_v45 = vsel %vm5616_vm2, %v537_v30, %v541_v4  ;;  %v715_v46 = vunpack.c.l.bf16 %v532_v34  ;;  %v608_v47 = vor.u32 %v607_v35, %v603_v32  ;;  %v577_v48 = vshll.u32 %v5782_v24, 16 }
  0x53   : > { %v716_v49 = vunpack.c.l.bf16 %v542_v45  ;;  %v599_v51 = vrot.slane %v598_v39, 4  ;;  %v573_v52 = vrot.slane %v571_v42, 5  ;;  %v581_v53 = vshrl.u32 %v5782_v24, 16 }
  0x54   : > { %v609_v54 = vrot.slane %v608_v47, 4  ;;  %v579_v60 = vrot.slane %v577_v48, 5  ;;  %v587_v0 = vshll.u32 %v5788_v40, 16  ;;  %v640_v4 = vshrl.u32 %v226_v44, 16  ;;  %v5817_v47 = vld [vmem:[%s5588_s20 + $0xb0] sm:$0x1] }
  0x55   : > { %v4878_v5 = vpack.i.bf16 %v716_v49, %v715_v46  ;;  %v604_v7 = vsel %vm5616_vm2, %v599_v51, %v603_v32  ;;  %v574_v8 = vor.u32 %v573_v52, %v570_v41  ;;  %v583_v11 = vrot.slane %v581_v53, 4  ;;  %v5814_v46 = vld [vmem:[%s5588_s20 + $0xac] sm:$0xf] }
  0x56   : > { %v614_v15 = vsel %vm5616_vm2, %v609_v54, %v613_v38  ;;  %v721_v17 = vunpack.c.l.bf16 %v604_v7  ;;  %v589_v18 = vrot.slane %v587_v0, 5  ;;  %v642_v19 = vrot.slane %v640_v4, 4  ;;  %v728_v52 = vld [vmem:[%s5588_s20 + $0xc] sm:$0xe] }
  0x57   : > { %4879 = vrot.lane.b32.xlu0 %v4878_v5, %s5535_s21  ;;  %v722_v20 = vunpack.c.l.bf16 %v614_v15  ;;  %v575_v22 = vrot.slane %v574_v8, 4  ;;  %v584_v27 = vor.u32 %v583_v11, %v579_v60  ;;  %v643_v30 = vshll.u32 %v226_v44, 16 }
  0x58   : > { %v649_v32 = vshll.u32 %v5797_v3, 16  ;;  %v653_v35 = vshrl.u32 %v5797_v3, 16  ;;  %v659_v34 = vshll.u32 %v5802_v13, 16  ;;  %v616_v39 = vshrl.u32 %v224_v14, 16 }
  0x59   : > { %v4893_v38 = vpack.i.bf16 %v722_v20, %v721_v17  ;;  %v580_v41 = vsel %vm5616_vm2, %v575_v22, %v579_v60  ;;  %v585_v42 = vrot.slane %v584_v27, 4  ;;  %v645_v45 = vrot.slane %v643_v30, 5 }
  0x5a   : > { %v719_v48 = vunpack.c.l.bf16 %v580_v41  ;;  %v651_v49 = vrot.slane %v649_v32, 5  ;;  %v655_v44 = vrot.slane %v653_v35, 4  ;;  %v661_v51 = vrot.slane %v659_v34, 5 }
  0x5b   : > { %4894 = vrot.lane.b32.xlu1 %v4893_v38, %s5535_s21  ;;  %v590_v53 = vsel %vm5616_vm2, %v585_v42, %v589_v18  ;;  %v646_v54 = vor.u32 %v645_v45, %v642_v19  ;;  %v618_v0 = vrot.slane %v616_v39, 4  ;;  %v619_v4 = vshll.u32 %v224_v14, 16  ;;  %v727_v39 = vld [vmem:[%s5588_s20] sm:$0xe] }
  0x5c   : > { %v720_v60 = vunpack.c.l.bf16 %v590_v53  ;;  %v656_v5 = vor.u32 %v655_v44, %v651_v49  ;;  %v625_v7 = vshll.u32 %v5814_v46, 16  ;;  %v629_v8 = vshrl.u32 %v5814_v46, 16 }
  0x5d   : > { %v647_v11 = vrot.slane %v646_v54, 4  ;;  %v621_v15 = vrot.slane %v619_v4, 5  ;;  %v635_v17 = vshll.u32 %v5817_v47, 16  ;;  %v4373_v20 = vrot.slane %v728_v52, 9  ;;  %v730_v4 = vld [vmem:[%s5588_s20 + $0x24] sm:$0xe] }
  0x5e   : > { %v4888_v22 = vpack.i.bf16 %v720_v60, %v719_v48  ;;  %v657_v27 = vrot.slane %v656_v5, 4  ;;  %v627_v30 = vrot.slane %v625_v7, 5  ;;  %v631_v32 = vrot.slane %v629_v8, 4  ;;  %v729_v7 = vld [vmem:[%s5588_s20 + $0x18] sm:$0xe] }
  0x5f   : > { %v652_v18 = vsel %vm5616_vm2, %v647_v11, %v651_v49  ;;  %v622_v19 = vor.u32 %v621_v15, %v618_v0  ;;  %v637_v35 = vrot.slane %v635_v17, 5  ;;  %v803_v34 = vrot.slane %v5634_v56, 5 }
  0x60   : > { %4889 = vrot.lane.b32.xlu0 %v4888_v22, %s5535_s21  ;;  %v662_v38 = vsel %vm5616_vm2, %v657_v27, %v661_v51  ;;  %v725_v41 = vunpack.c.l.bf16 %v652_v18  ;;  %v632_v42 = vor.u32 %v631_v32, %v627_v30  ;;  %v806_v45 = vrot.slane %v5639_v62, 5 }
  0x61   : > { %v726_v48 = vunpack.c.l.bf16 %v662_v38  ;;  %v623_v44 = vrot.slane %v622_v19, 4  ;;  %v804_v49 = vsel %vm5828_vm5, %v4373_v20, %v803_v34  ;;  %v805_v52 = vrot.slane %v803_v34, 4 }
  0x62   : > { %v633_v53 = vrot.slane %v632_v42, 4  ;;  %v940_v54 = vunpack.c.l.bf16 %v804_v49  ;;  %v4372_v56 = vrot.slane %v727_v39, 9  ;;  %v796_v0 = vrot.slane %v5602_v9, 5 }
  0x63   : > { %v4903_v60 = vpack.i.bf16 %v726_v48, %v725_v41  ;;  %v628_v51 = vsel %vm5616_vm2, %v623_v44, %v627_v30  ;;  %v807_v62 = vsel %vm5828_vm5, %v805_v52, %v806_v45  ;;  %v799_v5 = vrot.slane %v5605_v10, 5  ;;  %v732_v30 = vld [vmem:[%s5588_s20 + $0x3c] sm:$0xe] }
  0x64   : > { %v638_v8 = vsel %vm5616_vm2, %v633_v53, %v637_v35  ;;  %v723_v11 = vunpack.c.l.bf16 %v628_v51  ;;  %v941_v15 = vunpack.c.l.bf16 %v807_v62  ;;  %v797_v9 = vsel %vm5828_vm5, %v4372_v56, %v796_v0  ;;  %v734_v56 = vld [vmem:[%s5588_s20 + $0x54] sm:$0xe] }
  0x65   : > { %4904 = vrot.lane.b32.xlu1 %v4903_v60, %s5535_s21  ;;  %v724_v17 = vunpack.c.l.bf16 %v638_v8  ;;  %v798_v20 = vrot.slane %v796_v0, 4  ;;  %v938_v22 = vunpack.c.l.bf16 %v797_v9  ;;  %v4375_v27 = vrot.slane %v730_v4, 9  ;;  %v733_v8 = vld [vmem:[%s5588_s20 + $0x48] sm:$0xe] }
  0x66   : > { %v4913_v32 = vpack.i.bf16 %v941_v15, %v940_v54  ;;  %v817_v18 = vrot.slane %v5612_v25, 5  ;;  %v820_v10 = vrot.slane %v5621_v36, 5  ;;  %v4374_v19 = vrot.slane %v729_v7, 9 }
  0x67   : > { %v4898_v35 = vpack.i.bf16 %v724_v17, %v723_v11  ;;  %v800_v34 = vsel %vm5828_vm5, %v798_v20, %v799_v5  ;;  %v810_v39 = vrot.slane %v5592_v1, 5  ;;  %v813_v38 = vrot.slane %v5595_v2, 5  ;;  %v731_v2 = vld [vmem:[%s5588_s20 + $0x30] sm:$0xe] }
  0x68   : > { %v939_v41 = vunpack.c.l.bf16 %v800_v34  ;;  %v818_v42 = vsel %vm5828_vm5, %v4375_v27, %v817_v18  ;;  %v819_v45 = vrot.slane %v817_v18, 4  ;;  %v4377_v48 = vrot.slane %v732_v30, 9  ;;  %v736_v30 = vld [vmem:[%s5588_s20 + $0x6c] sm:$0xe] }
  0x69   : > { %4899 = vrot.lane.b32.xlu0 %v4898_v35, %s5535_s21  ;;  %4914 = vrot.lane.b32.xlu1 %v4913_v32, %s5536_s22  ;;  %v944_v25 = vunpack.c.l.bf16 %v818_v42  ;;  %v811_v36 = vsel %vm5828_vm5, %v4374_v19, %v810_v39  ;;  %v812_v44 = vrot.slane %v810_v39, 4  ;;  %v831_v1 = vrot.slane %v5648_v12, 5 }
  0x6a   : > { %v4908_v49 = vpack.i.bf16 %v939_v41, %v938_v22  ;;  %v821_v52 = vsel %vm5828_vm5, %v819_v45, %v820_v10  ;;  %v942_v53 = vunpack.c.l.bf16 %v811_v36  ;;  %v834_v54 = vrot.slane %v5652_v16, 5 }
  0x6b   : > { %v945_v0 = vunpack.c.l.bf16 %v821_v52  ;;  %v814_v4 = vsel %vm5828_vm5, %v812_v44, %v813_v38  ;;  %v832_v60 = vsel %vm5828_vm5, %v4377_v48, %v831_v1  ;;  %v833_v51 = vrot.slane %v831_v1, 4  ;;  %v738_v1 = vld [vmem:[%s5588_s20 + $0x84] sm:$0xe] }
  0x6c   : > { %v943_v62 = vunpack.c.l.bf16 %v814_v4  ;;  %v948_v12 = vunpack.c.l.bf16 %v832_v60  ;;  %v4376_v5 = vrot.slane %v731_v2, 9  ;;  %v824_v7 = vrot.slane %v5662_v37, 5  ;;  %v737_v4 = vld [vmem:[%s5588_s20 + $0x78] sm:$0xe] }
  0x6d   : > { %4909 = vrot.lane.b32.xlu0 %v4908_v49, %s5536_s22  ;;  %v4923_v11 = vpack.i.bf16 %v945_v0, %v944_v25  ;;  %v835_v16 = vsel %vm5828_vm5, %v833_v51, %v834_v54  ;;  %v827_v15 = vrot.slane %v5665_v43, 5  ;;  %v4379_v9 = vrot.slane %v734_v56, 9  ;;  %v735_v25 = vld [vmem:[%s5588_s20 + $0x60] sm:$0xe] }
  0x6e   : > { %v4918_v17 = vpack.i.bf16 %v943_v62, %v942_v53  ;;  %v949_v20 = vunpack.c.l.bf16 %v835_v16  ;;  %v825_v22 = vsel %vm5828_vm5, %v4376_v5, %v824_v7  ;;  %v826_v27 = vrot.slane %v824_v7, 4 }
  0x6f   : > { %4924 = vrot.lane.b32.xlu1 %v4923_v11, %s5536_s22  ;;  %v946_v37 = vunpack.c.l.bf16 %v825_v22  ;;  %v845_v32 = vrot.slane %v5679_v61, 5  ;;  %v848_v18 = vrot.slane %v5682_v6, 5  ;;  %v4378_v10 = vrot.slane %v733_v8, 9  ;;  %v740_v11 = vld [vmem:[%s5588_s20 + $0x9c] sm:$0xe] }
  0x70   : > { %v4933_v19 = vpack.i.bf16 %v949_v20, %v948_v12  ;;  %v828_v43 = vsel %vm5828_vm5, %v826_v27, %v827_v15  ;;  %v838_v35 = vrot.slane %v5692_v23, 5  ;;  %v841_v34 = vrot.slane %v5697_v31, 5 }
  0x71   : > { %4919 = vrot.lane.b32.xlu0 %v4918_v17, %s5536_s22  ;;  %v947_v39 = vunpack.c.l.bf16 %v828_v43  ;;  %v846_v38 = vsel %vm5828_vm5, %v4379_v9, %v845_v32  ;;  %v847_v61 = vrot.slane %v845_v32, 4  ;;  %v4381_v41 = vrot.slane %v736_v30, 9 }
  0x72   : > { %v952_v42 = vunpack.c.l.bf16 %v846_v38  ;;  %v839_v6 = vsel %vm5828_vm5, %v4378_v10, %v838_v35  ;;  %v840_v45 = vrot.slane %v838_v35, 4  ;;  %v859_v48 = vrot.slane %v5707_v55, 5 }
  0x73   : > { %4934 = vrot.lane.b32.xlu1 %v4933_v19, %s5536_s22  ;;  %v4928_v23 = vpack.i.bf16 %v947_v39, %v946_v37  ;;  %v849_v31 = vsel %vm5828_vm5, %v847_v61, %v848_v18  ;;  %v950_v36 = vunpack.c.l.bf16 %v839_v6  ;;  %v862_v44 = vrot.slane %v5712_v63, 5  ;;  %v739_v19 = vld [vmem:[%s5588_s20 + $0x90] sm:$0xe] }
  0x74   : > { %v953_v2 = vunpack.c.l.bf16 %v849_v31  ;;  %v842_v49 = vsel %vm5828_vm5, %v840_v45, %v841_v34  ;;  %v860_v52 = vsel %vm5828_vm5, %v4381_v41, %v859_v48  ;;  %v861_v55 = vrot.slane %v859_v48, 4  ;;  %v742_v34 = vld [vmem:[%s5588_s20 + $0xb4] sm:$0xe]  ;;  %v741_v48 = vld [vmem:[%s5588_s20 + $0xa8] sm:$0xe] }
  0x75   : > { %4929 = vrot.lane.b32.xlu0 %v4928_v23, %s5536_s22  ;;  %v951_v53 = vunpack.c.l.bf16 %v842_v49  ;;  %v956_v54 = vunpack.c.l.bf16 %v860_v52  ;;  %v4380_v56 = vrot.slane %v735_v25, 9  ;;  %v852_v0 = vrot.slane %v5724_v28, 5 }
  0x76   : > { %v4943_v60 = vpack.i.bf16 %v953_v2, %v952_v42  ;;  %v863_v63 = vsel %vm5828_vm5, %v861_v55, %v862_v44  ;;  %v855_v51 = vrot.slane %v5727_v29, 5  ;;  %v4383_v62 = vrot.slane %v738_v1, 9 }
  0x77   : > { %v4938_v12 = vpack.i.bf16 %v951_v53, %v950_v36  ;;  %v957_v5 = vunpack.c.l.bf16 %v863_v63  ;;  %v853_v7 = vsel %vm5828_vm5, %v4380_v56, %v852_v0  ;;  %v854_v8 = vrot.slane %v852_v0, 4 }
  0x78   : > { %4944 = vrot.lane.b32.xlu1 %v4943_v60, %s5536_s22  ;;  %v954_v16 = vunpack.c.l.bf16 %v853_v7  ;;  %v873_v28 = vrot.slane %v5739_v50, 5  ;;  %v876_v15 = vrot.slane %v5742_v58, 5  ;;  %v4382_v9 = vrot.slane %v737_v4, 9  ;;  %v5961_v60 = vld [vmem:[%s5588_s20 + $0x18] sm:$0xf] }
  0x79   : > { %4939 = vrot.lane.b32.xlu0 %v4938_v12, %s5536_s22  ;;  %v4953_v29 = vpack.i.bf16 %v957_v5, %v956_v54  ;;  %v856_v17 = vsel %vm5828_vm5, %v854_v8, %v855_v51  ;;  %v866_v20 = vrot.slane %v5752_v21, 5  ;;  %v869_v22 = vrot.slane %v5757_v33, 5  ;;  %v5969_v12 = vld [vmem:[%s5588_s20 + $0xc] sm:$0xf] }
  0x7a   : > { %v955_v27 = vunpack.c.l.bf16 %v856_v17  ;;  %v874_v30 = vsel %vm5828_vm5, %v4383_v62, %v873_v28  ;;  %v875_v50 = vrot.slane %v873_v28, 4  ;;  %v4385_v37 = vrot.slane %v740_v11, 9  ;;  %v5985_v17 = vld [vmem:[%s5588_s20 + $0x30] sm:$0xf] }
  0x7b   : > { %v960_v32 = vunpack.c.l.bf16 %v874_v30  ;;  %v867_v58 = vsel %vm5828_vm5, %v4382_v9, %v866_v20  ;;  %v868_v18 = vrot.slane %v866_v20, 4  ;;  %v887_v10 = vrot.slane %v5769_v57, 5  ;;  %v4395_v20 = vld [vmem:[%s5588_s20 + $0x34] sm:$0xf]  ;;  %v5992_v30 = vld [vmem:[%s5588_s20 + $0x28] sm:$0xf] }
  0x7c   : > { %4954 = vrot.lane.b32.xlu1 %v4953_v29, %s5536_s22  ;;  %v4948_v21 = vpack.i.bf16 %v955_v27, %v954_v16  ;;  %v877_v33 = vsel %vm5828_vm5, %v875_v50, %v876_v15  ;;  %v958_v43 = vunpack.c.l.bf16 %v867_v58  ;;  %v890_v35 = vrot.slane %v5772_v59, 5  ;;  %v5989_v27 = vld [vmem:[%s5588_s20 + $0x24] sm:$0xf] }
  0x7d   : > { %v961_v39 = vunpack.c.l.bf16 %v877_v33  ;;  %v870_v38 = vsel %vm5828_vm5, %v868_v18, %v869_v22  ;;  %v888_v61 = vsel %vm5828_vm5, %v4385_v37, %v887_v10  ;;  %v889_v57 = vrot.slane %v887_v10, 4  ;;  %v4399_v33 = vld [vmem:[%s5588_s20 + $0x4c] sm:$0xf] }
  0x7e   : > { %4949 = vrot.lane.b32.xlu0 %v4948_v21, %s5536_s22  ;;  %v959_v41 = vunpack.c.l.bf16 %v870_v38  ;;  %v964_v42 = vunpack.c.l.bf16 %v888_v61  ;;  %v4384_v6 = vrot.slane %v739_v19, 9  ;;  %v880_v45 = vrot.slane %v5782_v24, 5  ;;  %v6000_v21 = vld [vmem:[%s5588_s20 + $0x48] sm:$0xf] }
  0x7f   : > { %v4963_v25 = vpack.i.bf16 %v961_v39, %v960_v32  ;;  %v891_v59 = vsel %vm5828_vm5, %v889_v57, %v890_v35  ;;  %v883_v23 = vrot.slane %v5788_v40, 5  ;;  %v4387_v31 = vrot.slane %v742_v34, 9  ;;  %v4397_v35 = vld [vmem:[%s5588_s20 + $0x40] sm:$0xf] }
  0x80   : > { %v4958_v36 = vpack.i.bf16 %v959_v41, %v958_v43  ;;  %v965_v44 = vunpack.c.l.bf16 %v891_v59  ;;  %v881_v1 = vsel %vm5828_vm5, %v4384_v6, %v880_v45  ;;  %v882_v2 = vrot.slane %v880_v45, 4  ;;  %v6004_v43 = vld [vmem:[%s5588_s20 + $0x3c] sm:$0xf]  ;;  %v6015_v6 = vld [vmem:[%s5588_s20 + $0x64] sm:$0xf] }
  0x81   : > { %4964 = vrot.lane.b32.xlu1 %v4963_v25, %s5536_s22  ;;  %v962_v49 = vunpack.c.l.bf16 %v881_v1  ;;  %v901_v24 = vrot.slane %v5797_v3, 5  ;;  %v904_v52 = vrot.slane %v5802_v13, 5  ;;  %v4386_v55 = vrot.slane %v741_v48, 9  ;;  %v5964_v13 = vld [vmem:[%s5588_s20 + $0x1c] sm:$0xf]  ;;  %8249 = vst [vmem:[#allocation2_spill] sm:$0xff] %v6015_v6 }
  0x82   : > { %4959 = vrot.lane.b32.xlu0 %v4958_v36, %s5536_s22  ;;  %v4973_v40 = vpack.i.bf16 %v965_v44, %v964_v42  ;;  %v884_v53 = vsel %vm5828_vm5, %v882_v2, %v883_v23  ;;  %v894_v54 = vrot.slane %v5814_v46, 5  ;;  %v897_v56 = vrot.slane %v5817_v47, 5  ;;  %v5972_v46 = vld [vmem:[%s5588_s20 + $0x10] sm:$0xf]  ;;  %v6012_v42 = vld [vmem:[%s5588_s20 + $0x60] sm:$0xf] }
  0x83   : > { %v963_v0 = vunpack.c.l.bf16 %v884_v53  ;;  %v902_v4 = vsel %vm5828_vm5, %v4387_v31, %v901_v24  ;;  %v903_v3 = vrot.slane %v901_v24, 4  ;;  %v1008_v16 = vunpack.c.l.bf16 %v5961_v60  ;;  %v6018_v45 = vld [vmem:[%s5588_s20 + $0x54] sm:$0xf]  ;;  %v6021_v48 = vld [vmem:[%s5588_s20 + $0x58] sm:$0xf] }
  0x84   : > { %v968_v63 = vunpack.c.l.bf16 %v902_v4  ;;  %v895_v51 = vsel %vm5828_vm5, %v4386_v55, %v894_v54  ;;  %v896_v62 = vrot.slane %v894_v54, 4  ;;  %v1009_v28 = vunpack.c.l.bf16 %v5964_v13  ;;  %8250 = vst [vmem:[#allocation3_spill] sm:$0xff] %v6021_v48  ;;  %v6030_v1 = vld [vmem:[%s5588_s20 + $0x78] sm:$0xf]  ;;  %v6033_v2 = vld [vmem:[%s5588_s20 + $0x7c] sm:$0xf] }
  0x85   : > { %4974 = vrot.lane.b32.xlu1 %v4973_v40, %s5536_s22  ;;  %v4968_v47 = vpack.i.bf16 %v963_v0, %v962_v49  ;;  %v905_v5 = vsel %vm5828_vm5, %v903_v3, %v904_v52  ;;  %v966_v7 = vunpack.c.l.bf16 %v895_v51  ;;  %v1006_v9 = vunpack.c.l.bf16 %v5969_v12  ;;  %v6037_v24 = vld [vmem:[%s5588_s20 + $0x6c] sm:$0xf]  ;;  %v6040_v52 = vld [vmem:[%s5588_s20 + $0x70] sm:$0xf]  ;;  %v6051_v4 = vld [vmem:[%s5588_s20 + $0x94] sm:$0xf] }
  0x86   : > { %v969_v8 = vunpack.c.l.bf16 %v905_v5  ;;  %v898_v11 = vsel %vm5828_vm5, %v896_v62, %v897_v56  ;;  %v1007_v29 = vunpack.c.l.bf16 %v5972_v46  ;;  %v4993_v37 = vpack.i.bf16 %v1009_v28, %v1008_v16  ;;  %v6048_v0 = vld [vmem:[%s5588_s20 + $0x90] sm:$0xf]  ;;  %v6069_v16 = vld [vmem:[%s5588_s20 + $0xa8] sm:$0xf] }
  0x87   : > { %4969 = vrot.lane.b32.xlu0 %v4968_v47, %s5536_s22  ;;  %v967_v15 = vunpack.c.l.bf16 %v898_v11  ;;  %v1012_v32 = vunpack.c.l.bf16 %v5985_v17  ;;  %v1013_v58 = vunpack.c.l.bf16 %v4395_v20  ;;  %v1010_v10 = vunpack.c.l.bf16 %v5989_v27  ;;  %v6059_v47 = vld [vmem:[%s5588_s20 + $0x84] sm:$0xf] }
  0x88   : > { %v4983_v22 = vpack.i.bf16 %v969_v8, %v968_v63  ;;  %v4988_v18 = vpack.i.bf16 %v1007_v29, %v1006_v9  ;;  %v1011_v19 = vunpack.c.l.bf16 %v5992_v30  ;;  %v1016_v39 = vunpack.c.l.bf16 %v6000_v21  ;;  %v4415_v29 = vld [vmem:[%s5588_s20 + $0xac] sm:$0xf] }
  0x89   : > { %v4978_v50 = vpack.i.bf16 %v967_v15, %v966_v7  ;;  %v5003_v34 = vpack.i.bf16 %v1013_v58, %v1012_v32  ;;  %v1017_v38 = vunpack.c.l.bf16 %v4399_v33  ;;  %v1014_v57 = vunpack.c.l.bf16 %v6004_v43  ;;  %v6082_v32 = vld [vmem:[%s5588_s20 + $0x9c] sm:$0xf]  ;;  %v4413_v58 = vld [vmem:[%s5588_s20 + $0xa0] sm:$0xf] }
  0x8a   : > { %4984 = vrot.lane.b32.xlu1 %v4983_v22, %s5536_s22  ;;  %v4998_v61 = vpack.i.bf16 %v1011_v19, %v1010_v10  ;;  %v1015_v41 = vunpack.c.l.bf16 %v4397_v35  ;;  %v1020_v59 = vunpack.c.l.bf16 %v6012_v42  ;;  %v1021_v23 = vunpack.c.l.bf16 %v6015_v6 }
  0x8b   : > { %4979 = vrot.lane.b32.xlu0 %v4978_v50, %s5536_s22  ;;  %v5013_v25 = vpack.i.bf16 %v1017_v38, %v1016_v39  ;;  %v1018_v36 = vunpack.c.l.bf16 %v6018_v45  ;;  %v1019_v44 = vunpack.c.l.bf16 %v6021_v48  ;;  %v1079_v49 = vshrl.u32 %v5961_v60, 16 }
  0x8c   : > { %v5008_v31 = vpack.i.bf16 %v1015_v41, %v1014_v57  ;;  %v5023_v55 = vpack.i.bf16 %v1021_v23, %v1020_v59  ;;  %v1024_v40 = vunpack.c.l.bf16 %v6030_v1  ;;  %v1025_v53 = vunpack.c.l.bf16 %v6033_v2  ;;  %v6098_v41 = vld [vmem:[%s5588_s20 + $0xc0] sm:$0xf] }
  0x8d   : > { %v1082_v54 = vshll.u32 %v5961_v60, 16  ;;  %v5018_v56 = vpack.i.bf16 %v1019_v44, %v1018_v36  ;;  %v1022_v3 = vunpack.c.l.bf16 %v6037_v24  ;;  %v1023_v63 = vunpack.c.l.bf16 %v6040_v52  ;;  %v6062_v60 = vld [vmem:[%s5588_s20 + $0x88] sm:$0xf] }
  0x8e   : > { %4994 = vrot.lane.b32.xlu1 %v4993_v37, %s5537_s23  ;;  %v6055_v51 = vrot.slane %v1079_v49, 4  ;;  %v1055_v62 = vshrl.u32 %v5969_v12, 16  ;;  %v1058_v5 = vshll.u32 %v5969_v12, 16  ;;  %v5033_v7 = vpack.i.bf16 %v1025_v53, %v1024_v40  ;;  %v6122_v40 = vld [vmem:[%s5588_s20 + $0xb8] sm:$0xf] }
  0x8f   : > { %4989 = vrot.lane.b32.xlu0 %v4988_v18, %s5537_s23  ;;  %v1028_v8 = vunpack.c.l.bf16 %v6048_v0  ;;  %v1029_v11 = vunpack.c.l.bf16 %v6051_v4  ;;  %v6071_v28 = vrot.slane %v1082_v54, 5  ;;  %v1127_v15 = vshrl.u32 %v5985_v17, 16  ;;  %8253 = vst [vmem:[#allocation6_spill] sm:$0xff] %v6122_v40 }
  0x90   : > { %v1130_v9 = vshll.u32 %v5985_v17, 16  ;;  %v5028_v12 = vpack.i.bf16 %v1023_v63, %v1022_v3  ;;  %v1103_v20 = vshrl.u32 %v5989_v27, 16  ;;  %v1106_v22 = vshll.u32 %v5989_v27, 16 }
  0x91   : > { %v1026_v50 = vunpack.c.l.bf16 %v6059_v47  ;;  %v1027_v37 = vunpack.c.l.bf16 %v6062_v60  ;;  %v6085_v18 = vrot.slane %v1055_v62, 4  ;;  %v1175_v17 = vshrl.u32 %v6000_v21, 16 }
  0x92   : > { %5004 = vrot.lane.b32.xlu1 %v5003_v34, %s5537_s23  ;;  %v1223_v10 = vshrl.u32 %v6012_v42, 16  ;;  %v1226_v19 = vshll.u32 %v6012_v42, 16  ;;  %v6090_v33 = vrot.slane %v1058_v5, 5  ;;  %v5043_v27 = vpack.i.bf16 %v1029_v11, %v1028_v8  ;;  %v6101_v42 = vld [vmem:[%s5588_s20 + $0xc4] sm:$0xf] }
  0x93   : > { %4999 = vrot.lane.b32.xlu0 %v4998_v61, %s5537_s23  ;;  %v1032_v35 = vunpack.c.l.bf16 %v6069_v16  ;;  %v1033_v34 = vunpack.c.l.bf16 %v4415_v29  ;;  %v1178_v39 = vshll.u32 %v6000_v21, 16  ;;  %v5038_v38 = vpack.i.bf16 %v1027_v37, %v1026_v50  ;;  %8251 = vst [vmem:[#allocation4_spill] sm:$0xff] %v6101_v42  ;;  %v6112_v21 = vld [vmem:[%s5588_s20 + $0xb4] sm:$0xf] }
  0x94   : > { %v1030_v61 = vunpack.c.l.bf16 %v6082_v32  ;;  %v1031_v57 = vunpack.c.l.bf16 %v4413_v58  ;;  %v6105_v59 = vrot.slane %v1130_v9, 5  ;;  %v6107_v23 = vrot.slane %v1103_v20, 4 }
  0x95   : > { %v6114_v36 = vrot.slane %v1175_v17, 4  ;;  %v1151_v44 = vshrl.u32 %v6004_v43, 16  ;;  %v6117_v49 = vrot.slane %v1223_v10, 4  ;;  %v1199_v53 = vshrl.u32 %v6018_v45, 16 }
  0x96   : > { %5014 = vrot.lane.b32.xlu1 %v5013_v25, %s5537_s23  ;;  %v6103_v25 = vrot.slane %v1127_v15, 4  ;;  %v5053_v54 = vpack.i.bf16 %v1033_v34, %v1032_v35  ;;  %v1037_v3 = vunpack.c.l.bf16 %v6101_v42  ;;  %v6128_v63 = vrot.slane %v1178_v39, 5 }
  0x97   : > { %5009 = vrot.lane.b32.xlu0 %v5008_v31, %s5537_s23  ;;  %v6109_v31 = vrot.slane %v1106_v22, 5  ;;  %8252 = vst [vmem:[#allocation5_spill] sm:$0xff] %v6114_v36  ;;  %v1154_v62 = vshll.u32 %v6004_v43, 16  ;;  %v1202_v5 = vshll.u32 %v6018_v45, 16  ;;  %v1271_v8 = vshrl.u32 %v6030_v1, 16 }
  0x98   : > { %8254 = vst [vmem:[#allocation7_spill] sm:$0xff] %v6128_v63  ;;  %v1274_v11 = vshll.u32 %v6030_v1, 16  ;;  %v1034_v15 = vunpack.c.l.bf16 %v6112_v21  ;;  %v1035_v9 = vunpack.c.l.bf16 %v6122_v40  ;;  %v1236_v20 = vshrl.u32 %v6015_v6, 16  ;;  %v6144_v22 = vld [vmem:[%s5588_s20 + $0x20] sm:$0x1] }
  0x99   : > { %v1247_v45 = vshrl.u32 %v6037_v24, 16  ;;  %v6146_v50 = vrot.slane %v1199_v53, 4  ;;  %v1212_v1 = vshrl.u32 %v6021_v48, 16  ;;  %v1250_v37 = vshll.u32 %v6037_v24, 16  ;;  %v6160_v24 = vld [vmem:[%s5588_s20 + $0x14] sm:$0x1] }
  0x9a   : > { %5024 = vrot.lane.b32.xlu1 %v5023_v55, %s5537_s23  ;;  %v6119_v55 = vrot.slane %v1226_v19, 5  ;;  %v6151_v17 = vrot.slane %v1202_v5, 5  ;;  %v5058_v10 = vpack.i.bf16 %v1035_v9, %v1034_v15  ;;  %v1085_v19 = vor.u32 %v6071_v28, %v6055_v51 }
  0x9b   : > { %5019 = vrot.lane.b32.xlu0 %v5018_v56, %s5537_s23  ;;  %v1036_v56 = vunpack.c.l.bf16 %v6098_v41  ;;  %v1273_v35 = vrot.slane %v1271_v8, 4  ;;  %v1276_v34 = vrot.slane %v1274_v11, 5  ;;  %v1092_v39 = vshrl.u32 %v5964_v13, 16  ;;  %v6172_v11 = vld [vmem:[%s5588_s20 + $0x80] sm:$0x1] }
  0x9c   : > { %v1229_v29 = vor.u32 %v6119_v55, %v6117_v49  ;;  %v1061_v53 = vor.u32 %v6090_v33, %v6085_v18  ;;  %v1064_v28 = vshll.u32 %v5972_v46, 16  ;;  %v1074_v8 = vshll.u32 %v6160_v24, 16  ;;  %v6268_v55 = vpop.permute.xlu0 %4829 }
  0x9d   : > { %v5063_v58 = vpack.i.bf16 %v1037_v3, %v1036_v56  ;;  %v1094_v51 = vrot.slane %v1092_v39, 4  ;;  %v1068_v56 = vshrl.u32 %v5972_v46, 16  ;;  %v1394_v6 = vshll.u32 %v6112_v21, 16 }
  0x9e   : > { %5034 = vrot.lane.b32.xlu1 %v5033_v7, %s5537_s23  ;;  %v5048_v7 = vpack.i.bf16 %v1031_v57, %v1030_v61  ;;  %v1249_v61 = vrot.slane %v1247_v45, 4  ;;  %v1086_v57 = vrot.slane %v1085_v19, 4  ;;  %v1066_v15 = vrot.slane %v1064_v28, 5 }
  0x9f   : > { %5029 = vrot.lane.b32.xlu0 %v5028_v12, %s5537_s23  ;;  %v6137_v12 = vrot.slane %v1151_v44, 4  ;;  %v1070_v9 = vrot.slane %v1068_v56, 4  ;;  %v1076_v45 = vrot.slane %v1074_v8, 5  ;;  %v1284_v19 = vshrl.u32 %v6033_v2, 16 }
  0xa1   : > { %v1071_v39 = vor.u32 %v1070_v9, %v1066_v15  ;;  %v4444_v9 = vld [vmem:[%s5588_s20 + $0x6c] sm:$0xe] }
  0xa2   : > { %5044 = vrot.lane.b32.xlu1 %v5043_v27, %s5537_s23  ;;  %v1088_v27 = vshll.u32 %v5964_v13, 16 }
  0xa3   : > { %5039 = vrot.lane.b32.xlu0 %v5038_v38, %s5537_s23  ;;  %v1098_v38 = vshll.u32 %v6144_v22, 16 }
  0xa4   : > { %v1090_v44 = vrot.slane %v1088_v27, 5 }
  0xa5   : > { %v1100_v5 = vrot.slane %v1098_v38, 5  ;;  %v1290_v38 = vshll.u32 %v6172_v11, 16 }
  0xa6   : > { %5054 = vrot.lane.b32.xlu1 %v5053_v54, %s5537_s23  ;;  %v1252_v54 = vrot.slane %v1250_v37, 5  ;;  %v1091_v3 = vsel %vm5616_vm2, %v1086_v57, %v1090_v44  ;;  %v1095_v18 = vor.u32 %v1094_v51, %v1090_v44  ;;  %v1277_v37 = vor.u32 %v1276_v34, %v1273_v35 }
  0xa7   : > { %5049 = vrot.lane.b32.xlu0 %v5048_v7, %s5537_s23  ;;  %v1062_v7 = vrot.slane %v1061_v53, 4  ;;  %v1472_v33 = vunpack.c.l.bf16 %v1091_v3  ;;  %v1286_v51 = vrot.slane %v1284_v19, 4  ;;  %v1072_v34 = vrot.slane %v1071_v39, 4 }
  0xa8   : > { %v1278_v44 = vrot.slane %v1277_v37, 4  ;;  %v1292_v28 = vrot.slane %v1290_v38, 5  ;;  %v1253_v56 = vor.u32 %v1252_v54, %v1249_v61 }
  0xa9   : > { %v1067_v27 = vsel %vm5616_vm2, %v1062_v7, %v1066_v15  ;;  %v4428_v7 = vld [vmem:[%s5588_s20 + $0x74] sm:$0x1]  ;;  %v1256_v15 = vshll.u32 %v6040_v52, 16  ;;  %v1077_v37 = vsel %vm5616_vm2, %v1072_v34, %v1076_v45 }
  0xaa   : > { %5064 = vrot.lane.b32.xlu1 %v5063_v58, %s5537_s23  ;;  %v1280_v58 = vshll.u32 %v6033_v2, 16  ;;  %v1470_v57 = vunpack.c.l.bf16 %v1067_v27  ;;  %v1254_v19 = vrot.slane %v1253_v56, 4  ;;  %v1471_v27 = vunpack.c.l.bf16 %v1077_v37 }
  0xab   : > { %5059 = vrot.lane.b32.xlu0 %v5058_v10, %s5537_s23  ;;  %v1096_v10 = vrot.slane %v1095_v18, 4  ;;  %v1258_v54 = vrot.slane %v1256_v15, 5  ;;  %v1266_v38 = vshll.u32 %v4428_v7, 16  ;;  %v1627_v34 = vrot.slane %v4428_v7, 5  ;;  %v4445_v15 = vld [vmem:[%s5588_s20 + $0x78] sm:$0xe] }
  0xac   : > { %v1282_v53 = vrot.slane %v1280_v58, 5  ;;  %v1568_v37 = vrot.slane %v5972_v46, 5  ;;  %v1571_v7 = vrot.slane %v6160_v24, 5 }
  0xad   : > { %v1101_v35 = vsel %vm5616_vm2, %v1096_v10, %v1100_v5  ;;  %v1260_v5 = vshrl.u32 %v6040_v52, 16 }
  0xae   : > { %v1473_v3 = vunpack.c.l.bf16 %v1101_v35  ;;  %v1283_v8 = vsel %vm5616_vm2, %v1278_v44, %v1282_v53  ;;  %v1287_v18 = vor.u32 %v1286_v51, %v1282_v53  ;;  %v4460_v44 = vrot.slane %v4444_v9, 9  ;;  %v4436_v51 = vld [vmem:[%s5588_s20 + $0xc] sm:$0xe] }
  0xaf   : > { %v1488_v58 = vunpack.c.l.bf16 %v1283_v8  ;;  %v1262_v39 = vrot.slane %v1260_v5, 4  ;;  %v1624_v53 = vrot.slane %v6040_v52, 5  ;;  %v5068_v35 = vpack.i.bf16 %v1471_v27, %v1470_v57 }
  0xb0   : > { %v5073_v10 = vpack.i.bf16 %v1473_v3, %v1472_v33  ;;  %v1288_v61 = vrot.slane %v1287_v18, 4  ;;  %v1259_v33 = vsel %vm5616_vm2, %v1254_v19, %v1258_v54  ;;  %v1268_v8 = vrot.slane %v1266_v38, 5  ;;  %v4437_v19 = vld [vmem:[%s5588_s20 + $0x18] sm:$0xe] }
  0xb1   : > { %v1263_v3 = vor.u32 %v1262_v39, %v1258_v54  ;;  %v1486_v18 = vunpack.c.l.bf16 %v1259_v33  ;;  %5069 = vrot.lane.b32.xlu0 %v5068_v35, %s5538_s24  ;;  %v1625_v52 = vsel %vm5828_vm5, %v4460_v44, %v1624_v53  ;;  %v1626_v9 = vrot.slane %v1624_v53, 4 }
  0xb2   : > { %5074 = vrot.lane.b32.xlu1 %v5073_v10, %s5538_s24  ;;  %v1293_v45 = vsel %vm5616_vm2, %v1288_v61, %v1292_v28  ;;  %v4452_v57 = vrot.slane %v4436_v51, 9  ;;  %v1726_v10 = vunpack.c.l.bf16 %v1625_v52  ;;  %v1570_v54 = vrot.slane %v1568_v37, 4 }
  0xb3   : > { %v1489_v56 = vunpack.c.l.bf16 %v1293_v45  ;;  %v1264_v5 = vrot.slane %v1263_v3, 4  ;;  %v1628_v27 = vsel %vm5828_vm5, %v1626_v9, %v1627_v34  ;;  %v4461_v39 = vrot.slane %v4445_v15, 9  ;;  %v6215_v45 = vld [vmem:[%s5588_s20 + $0x78] sm:$0xf] }
  0xb4   : > { %v1569_v61 = vsel %vm5828_vm5, %v4452_v57, %v1568_v37  ;;  %v1631_v44 = vrot.slane %v6033_v2, 5  ;;  %v1572_v53 = vsel %vm5828_vm5, %v1570_v54, %v1571_v7  ;;  %v1634_v51 = vrot.slane %v6172_v11, 5 }
  0xb5   : > { %v5083_v28 = vpack.i.bf16 %v1489_v56, %v1488_v58  ;;  %v1269_v46 = vsel %vm5616_vm2, %v1264_v5, %v1268_v8  ;;  %v1727_v58 = vunpack.c.l.bf16 %v1628_v27  ;;  %v1710_v38 = vunpack.c.l.bf16 %v1569_v61  ;;  %v6220_v8 = vld [vmem:[%s5588_s20 + $0x7c] sm:$0xf] }
  0xb6   : > { %v1487_v24 = vunpack.c.l.bf16 %v1269_v46  ;;  %v4453_v35 = vrot.slane %v4437_v19, 9  ;;  %v1711_v34 = vunpack.c.l.bf16 %v1572_v53  ;;  %v1632_v56 = vsel %vm5828_vm5, %v4461_v39, %v1631_v44  ;;  %v6242_v27 = vld [vmem:[%s5588_s20 + $0x1c] sm:$0xf] }
  0xb7   : > { %5084 = vrot.lane.b32.xlu1 %v5083_v28, %s5538_s24  ;;  %v5093_v33 = vpack.i.bf16 %v1727_v58, %v1726_v10  ;;  %v1633_v3 = vrot.slane %v1631_v44, 4  ;;  %v1728_v2 = vunpack.c.l.bf16 %v1632_v56  ;;  %v1575_v52 = vrot.slane %v5964_v13, 5  ;;  %v6280_v56 = vld [vmem:[%s5588_s20 + $0x24] sm:$0xf] }
  0xb8   : > { %v5078_v15 = vpack.i.bf16 %v1487_v24, %v1486_v18  ;;  %v1578_v9 = vrot.slane %v6144_v22, 5  ;;  %v1205_v11 = vor.u32 %v6151_v17, %v6146_v50  ;;  %v5088_v57 = vpack.i.bf16 %v1711_v34, %v1710_v38  ;;  %v4468_v50 = vld [vmem:[%s5588_s20 + $0x18] sm:$0xf] }
  0xb9   : > { %v1635_v37 = vsel %vm5828_vm5, %v1633_v3, %v1634_v51  ;;  %v1794_v28 = vunpack.c.l.bf16 %v6215_v45  ;;  %v1576_v13 = vsel %vm5828_vm5, %v4453_v35, %v1575_v52  ;;  %v1577_v22 = vrot.slane %v1575_v52, 4 }
  0xba   : > { %5079 = vrot.lane.b32.xlu0 %v5078_v15, %s5538_s24  ;;  %v1729_v18 = vunpack.c.l.bf16 %v1635_v37  ;;  %v1795_v5 = vunpack.c.l.bf16 %v6220_v8  ;;  %v6237_v17 = vrot.slane %v1154_v62, 5  ;;  %v1712_v19 = vunpack.c.l.bf16 %v1576_v13  ;;  %v6251_v62 = vpop.permute.xlu1 %4839 }
  0xbb   : > { %5094 = vrot.lane.b32.xlu1 %v5093_v33, %s5539_s25  ;;  %v6246_v61 = vrot.slane %v1236_v20, 4  ;;  %v1579_v43 = vsel %vm5828_vm5, %v1577_v22, %v1578_v9  ;;  %v6256_v46 = vrot.slane %v1229_v29, 4  ;;  %v6260_v58 = vrot.slane %v1212_v1, 4  ;;  %v6271_v29 = vld [vmem:[%s5588_s20 + $0x84] sm:$0xf] }
  0xbc   : > { %v5103_v39 = vpack.i.bf16 %v1729_v18, %v1728_v2  ;;  %v1713_v38 = vunpack.c.l.bf16 %v1579_v43  ;;  %v6263_v44 = vrot.slane %v1205_v11, 4  ;;  %v5113_v24 = vpack.i.bf16 %v1795_v5, %v1794_v28  ;;  %v6274_v1 = vld [vmem:[%s5588_s20 + $0x88] sm:$0xf] }
  0xbd   : > { %8255 = vst [vmem:[#allocation8_spill] sm:$0xff] %v6246_v61  ;;  %8256 = vst [vmem:[#allocation9_spill] sm:$0xff] %v6256_v46  ;;  %v1778_v53 = vunpack.c.l.bf16 %v4468_v50  ;;  %v1779_v49 = vunpack.c.l.bf16 %v6242_v27  ;;  %v1319_v51 = vshrl.u32 %v6048_v0, 16  ;;  %v1322_v35 = vshll.u32 %v6048_v0, 16  ;;  %v6287_v9 = vld [vmem:[%s5588_s20 + $0x28] sm:$0xf] }
  0xbe   : > { %8257 = vst [vmem:[#allocation10_spill] sm:$0xff] %v6260_v58  ;;  %8258 = vst [vmem:[#allocation11_spill] sm:$0xff] %v6263_v44  ;;  %5089 = vrot.lane.b32.xlu0 %v5088_v57, %s5539_s25  ;;  %v1295_v33 = vshrl.u32 %v6059_v47, 16  ;;  %v5098_v34 = vpack.i.bf16 %v1713_v38, %v1712_v19  ;;  %v1298_v3 = vshll.u32 %v6059_v47, 16  ;;  %v1367_v15 = vshrl.u32 %v6069_v16, 16  ;;  %v6296_v13 = vpop.permute.xlu1 %4844  ;;  %v6304_v38 = vpop.permute.xlu0 %4834 }
  0xbf   : > { %5104 = vrot.lane.b32.xlu1 %v5103_v39, %s5539_s25  ;;  %v2019_v2 = vshrl.u32 %v6215_v45, 16  ;;  %v2022_v52 = vshll.u32 %v6215_v45, 16  ;;  %v1827_v11 = vshrl.u32 %v4468_v50, 16  ;;  %v1830_v57 = vshll.u32 %v4468_v50, 16 }
  0xc0   : > { %v1796_v37 = vunpack.c.l.bf16 %v6271_v29  ;;  %v1797_v0 = vunpack.c.l.bf16 %v6274_v1  ;;  %v1370_v28 = vshll.u32 %v6069_v16, 16  ;;  %v1343_v18 = vshrl.u32 %v6082_v32, 16 }
  0xc1   : > { %v1346_v47 = vshll.u32 %v6082_v32, 16  ;;  %v5108_v45 = vpack.i.bf16 %v1779_v49, %v1778_v53  ;;  %v1415_v22 = vshrl.u32 %v6098_v41, 16  ;;  %v1780_v50 = vunpack.c.l.bf16 %v6280_v56 }
  0xc2   : > { %5099 = vrot.lane.b32.xlu0 %v5098_v34, %s5539_s25  ;;  %v5123_v5 = vpack.i.bf16 %v1797_v0, %v1796_v37  ;;  %v1781_v19 = vunpack.c.l.bf16 %v6287_v9  ;;  %v6301_v16 = vrot.slane %v1319_v51, 4  ;;  %v1418_v32 = vshll.u32 %v6098_v41, 16  ;;  %v6319_v51 = vld [vmem:[%s5588_s20 + $0x80] sm:$0x1] }
  0xc3   : > { %5114 = vrot.lane.b32.xlu1 %v5113_v24, %s5540_s26  ;;  %v2021_v39 = vrot.slane %v2019_v2, 4  ;;  %v2024_v43 = vrot.slane %v2022_v52, 5  ;;  %v6306_v24 = vrot.slane %v1322_v35, 5  ;;  %v6308_v53 = vrot.slane %v1295_v33, 4 }
  0xc4   : > { %v1829_v49 = vrot.slane %v1827_v11, 4  ;;  %v1832_v34 = vrot.slane %v1830_v57, 5  ;;  %v6310_v37 = vrot.slane %v1298_v3, 5  ;;  %v6312_v0 = vrot.slane %v1367_v15, 4 }
  0xc5   : > { %v6314_v7 = vrot.slane %v1370_v28, 5  ;;  %v5118_v41 = vpack.i.bf16 %v1781_v19, %v1780_v50  ;;  %v6321_v35 = vrot.slane %v1343_v18, 4  ;;  %v6323_v33 = vrot.slane %v1346_v47, 5  ;;  %v6333_v28 = vld [vmem:[%s5588_s20 + $0x20] sm:$0x1] }
  0xc6   : > { %8259 = vst [vmem:[#allocation12_spill] sm:$0xff] %v6312_v0  ;;  %5109 = vrot.lane.b32.xlu0 %v5108_v45, %s5540_s26  ;;  %v6325_v2 = vrot.slane %v1415_v22, 4  ;;  %v6328_v52 = vrot.slane %v1418_v32, 5  ;;  %v2025_v15 = vor.u32 %v2024_v43, %v2021_v39  ;;  %v2028_v11 = vshll.u32 %v6220_v8, 16  ;;  %v6335_v45 = vpop.permute.xlu1 %4854  ;;  %v6342_v43 = vpop.permute.xlu0 %4849 }
  0xc7   : > { %8260 = vst [vmem:[#allocation13_spill] sm:$0xff] %v6314_v7  ;;  %5124 = vrot.lane.b32.xlu1 %v5123_v5, %s5540_s26  ;;  %v2032_v57 = vshrl.u32 %v6220_v8, 16  ;;  %8261 = vst [vmem:[#allocation14_spill] sm:$0xff] %v6335_v45  ;;  %v2043_v18 = vshrl.u32 %v6271_v29, 16  ;;  %v2046_v47 = vshll.u32 %v6271_v29, 16  ;;  %v2038_v22 = vshll.u32 %v6319_v51, 16 }
  0xc8   : > { %v1833_v5 = vor.u32 %v1832_v34, %v1829_v49  ;;  %v2026_v50 = vrot.slane %v2025_v15, 4  ;;  %v2030_v19 = vrot.slane %v2028_v11, 5  ;;  %v1836_v39 = vshll.u32 %v6242_v27, 16  ;;  %8262 = vst [vmem:[#allocation15_spill] sm:$0xff] %v6342_v43  ;;  %v5497_v43 = vld [vmem:[%s5588_s20 + $0x94] sm:$0xf] }
  0xc9   : > { %v2034_v32 = vrot.slane %v2032_v57, 4  ;;  %v1851_v20 = vshrl.u32 %v6280_v56, 16  ;;  %v1840_v3 = vshrl.u32 %v6242_v27, 16  ;;  %v1846_v54 = vshll.u32 %v6333_v28, 16 }
  0xca   : > { %5119 = vrot.lane.b32.xlu0 %v5118_v41, %s5540_s26  ;;  %v1834_v10 = vrot.slane %v1833_v5, 4  ;;  %v2031_v29 = vsel %vm5616_vm2, %v2026_v50, %v2030_v19  ;;  %v2040_v34 = vrot.slane %v2038_v22, 5  ;;  %v1838_v41 = vrot.slane %v1836_v39, 5  ;;  %v6353_v44 = vpop.permute.xlu1 %4864 }
  0xcb   : > { %v2035_v49 = vor.u32 %v2034_v32, %v2030_v19  ;;  %v2045_v15 = vrot.slane %v2043_v18, 4  ;;  %v2048_v11 = vrot.slane %v2046_v47, 5  ;;  %v1854_v57 = vshll.u32 %v6280_v56, 16  ;;  %v6358_v47 = vld [vmem:[%s5588_s20 + $0x8c] sm:$0x1]  ;;  %v6365_v32 = vpop.permute.xlu0 %4859 }
  0xcc   : > { %v1842_v61 = vrot.slane %v1840_v3, 4  ;;  %v1428_v46 = vshrl.u32 %v6101_v42, 16  ;;  %v1391_v5 = vshrl.u32 %v6112_v21, 16  ;;  %v2258_v48 = vunpack.c.l.bf16 %v2031_v29 }
  0xcd   : > { %v2036_v58 = vrot.slane %v2035_v49, 4  ;;  %v1839_v50 = vsel %vm5616_vm2, %v1834_v10, %v1838_v41  ;;  %v1848_v18 = vrot.slane %v1846_v54, 5  ;;  %v1421_v56 = vor.u32 %v6328_v52, %v6325_v2  ;;  %v6371_v2 = vld [vmem:[%s5588_s20 + $0x2c] sm:$0x1] }
  0xce   : > { %v1843_v22 = vor.u32 %v1842_v61, %v1838_v41  ;;  %v1404_v3 = vshrl.u32 %v6122_v40, 16  ;;  %v1853_v19 = vrot.slane %v1851_v20, 4  ;;  %v1856_v39 = vrot.slane %v1854_v57, 5  ;;  %v5478_v40 = vld [vmem:[%s5588_s20 + $0x10] sm:$0xf] }
  0xcf   : > { %v2041_v21 = vsel %vm5616_vm2, %v2036_v58, %v2040_v34  ;;  %v2049_v10 = vor.u32 %v2048_v11, %v2045_v15  ;;  %v2242_v61 = vunpack.c.l.bf16 %v1839_v50  ;;  %v2052_v54 = vshll.u32 %v6274_v1, 16  ;;  %v6379_v50 = vpop.permute.xlu1 %4874 }
  0xd0   : > { %v2259_v29 = vunpack.c.l.bf16 %v2041_v21  ;;  %v1844_v49 = vrot.slane %v1843_v22, 4  ;;  %v2056_v41 = vshrl.u32 %v6274_v1, 16  ;;  %v2062_v63 = vshll.u32 %v6358_v47, 16 }
  0xd1   : > { %v6373_v52 = vrot.slane %v1391_v5, 4  ;;  %v2050_v34 = vrot.slane %v2049_v10, 4  ;;  %v6377_v57 = vrot.slane %v1394_v6, 5  ;;  %v2054_v15 = vrot.slane %v2052_v54, 5  ;;  %v6387_v10 = vpop.permute.xlu0 %4869 }
  0xd2   : > { %v5133_v20 = vpack.i.bf16 %v2259_v29, %v2258_v48  ;;  %v1849_v58 = vsel %vm5616_vm2, %v1844_v49, %v1848_v18  ;;  %v2058_v11 = vrot.slane %v2056_v41, 4  ;;  %v1857_v21 = vor.u32 %v1856_v39, %v1853_v19 }
  0xd3   : > { %v2243_v22 = vunpack.c.l.bf16 %v1849_v58  ;;  %v1860_v36 = vshll.u32 %v6287_v9, 16  ;;  %v1864_v5 = vshrl.u32 %v6287_v9, 16  ;;  %v1870_v48 = vshll.u32 %v6371_v2, 16 }
  0xd4   : > { %5134 = vrot.lane.b32.xlu1 %v5133_v20, %s5541_s27  ;;  %v2055_v6 = vsel %vm5616_vm2, %v2050_v34, %v2054_v15  ;;  %v2059_v18 = vor.u32 %v2058_v11, %v2054_v15  ;;  %v2064_v49 = vrot.slane %v2062_v63, 5  ;;  %v1858_v41 = vrot.slane %v1857_v21, 4  ;;  %v4524_v21 = vld [vmem:[%s5588_s20 + $0x78] sm:$0xe] }
  0xd5   : > { %v5128_v29 = vpack.i.bf16 %v2243_v22, %v2242_v61  ;;  %v1862_v20 = vrot.slane %v1860_v36, 5  ;;  %v1866_v19 = vrot.slane %v1864_v5, 4  ;;  %v6390_v39 = vrot.slane %v1428_v46, 4  ;;  %v4516_v61 = vld [vmem:[%s5588_s20 + $0x18] sm:$0xe] }
  0xd6   : > { %v2060_v34 = vrot.slane %v2059_v18, 4  ;;  %v2260_v22 = vunpack.c.l.bf16 %v2055_v6  ;;  %v1872_v11 = vrot.slane %v1870_v48, 5  ;;  %v6398_v36 = vrot.slane %v1421_v56, 4  ;;  %v6410_v6 = vld [vmem:[%s5588_s20 + $0x1c] sm:$0xf] }
  0xd7   : > { %8263 = vst [vmem:[#allocation16_spill] sm:$0xff] %v6390_v39  ;;  %5129 = vrot.lane.b32.xlu0 %v5128_v29, %s5541_s27  ;;  %v1863_v63 = vsel %vm5616_vm2, %v1858_v41, %v1862_v20  ;;  %v1867_v15 = vor.u32 %v1866_v19, %v1862_v20  ;;  %v6402_v5 = vrot.slane %v1404_v3, 4  ;;  %v6407_v29 = vpop.permute.xlu1 %4884  ;;  %v4540_v19 = vrot.slane %v4524_v21, 9  ;;  %v6422_v48 = vld [vmem:[%s5588_s20 + $0x18] sm:$0xf] }
  0xd8   : > { %8264 = vst [vmem:[#allocation17_spill] sm:$0xff] %v6398_v36  ;;  %v2065_v54 = vsel %vm5616_vm2, %v2060_v34, %v2064_v49  ;;  %v2244_v20 = vunpack.c.l.bf16 %v1863_v63  ;;  %v2396_v3 = vrot.slane %v6220_v8, 5  ;;  %v2399_v58 = vrot.slane %v6319_v51, 5  ;;  %v6416_v49 = vpop.permute.xlu0 %4879  ;;  %v5475_v34 = vld [vmem:[%s5588_s20 + $0x24] sm:$0xf] }
  0xd9   : > { %8265 = vst [vmem:[#allocation18_spill] sm:$0xff] %v6402_v5  ;;  %v2261_v56 = vunpack.c.l.bf16 %v2065_v54  ;;  %v1868_v41 = vrot.slane %v1867_v15, 4  ;;  %v4532_v39 = vrot.slane %v4516_v61, 9  ;;  %v232_v54 = vunpack.c.l.bf16 %v6422_v48  ;;  %v5473_v15 = vld [vmem:[%s5588_s20 + $0x4] sm:$0xf] }
  0xda   : > { %v2397_v8 = vsel %vm5828_vm5, %v4540_v19, %v2396_v3  ;;  %v2398_v51 = vrot.slane %v2396_v3, 4  ;;  %v229_v21 = vunpack.c.l.bf16 %v5473_v15  ;;  %v2340_v61 = vrot.slane %v6242_v27, 5  ;;  %v5474_v3 = vld [vmem:[%s5588_s20] sm:$0xf] }
  0xdb   : > { %v5143_v46 = vpack.i.bf16 %v2261_v56, %v2260_v22  ;;  %v1873_v18 = vsel %vm5616_vm2, %v1868_v41, %v1872_v11  ;;  %v2498_v22 = vunpack.c.l.bf16 %v2397_v8  ;;  %v2343_v11 = vrot.slane %v6333_v28, 5  ;;  %v6435_v19 = vpop.permute.xlu1 %4894  ;;  %v4525_v28 = vld [vmem:[%s5588_s20 + $0x84] sm:$0xe] }
  0xdc   : > { %v2245_v63 = vunpack.c.l.bf16 %v1873_v18  ;;  %v4832_v56 = vunpack.i.h.bf16 %v6268_v55  ;;  %v4831_v18 = vunpack.i.l.bf16 %v6268_v55  ;;  %v2400_v41 = vsel %vm5828_vm5, %v2398_v51, %v2399_v58  ;;  %8266 = vst [vmem:[#allocation19_spill] sm:$0xff] %v6435_v19  ;;  %v5476_v55 = vld [vmem:[%s5588_s20 + $0x28] sm:$0xf]  ;;  %v4517_v51 = vld [vmem:[%s5588_s20 + $0x24] sm:$0xe]  ;;  %v6446_v42 = vpop.permute.xlu0 %4889 }
  0xdd   : > { %5144 = vrot.lane.b32.xlu1 %v5143_v46, %s5541_s27  ;;  %v228_v46 = vunpack.c.l.bf16 %v5474_v3  ;;  %v2499_v8 = vunpack.c.l.bf16 %v2400_v41  ;;  %v2341_v27 = vsel %vm5828_vm5, %v4532_v39, %v2340_v61  ;;  %v2342_v15 = vrot.slane %v2340_v61, 4  ;;  %8267 = vst [vmem:[#allocation20_spill] sm:$0xff] %v6446_v42  ;;  %v5477_v3 = vld [vmem:[%s5588_s20 + $0xc] sm:$0xf] }
  0xde   : > { %v5138_v48 = vpack.i.bf16 %v2245_v63, %v2244_v20  ;;  %v234_v36 = vunpack.c.l.bf16 %v5475_v34  ;;  %v235_v20 = vunpack.c.l.bf16 %v5476_v55  ;;  %v4847_v63 = vunpack.i.h.bf16 %v6296_v13 }
  0xdf   : > { %v2482_v58 = vunpack.c.l.bf16 %v2341_v27  ;;  %v4846_v41 = vunpack.i.l.bf16 %v6296_v13  ;;  %v230_v5 = vunpack.c.l.bf16 %v5477_v3  ;;  %v5153_v39 = vpack.i.bf16 %v2499_v8, %v2498_v22 }
  0xe0   : > { %5139 = vrot.lane.b32.xlu0 %v5138_v48, %s5541_s27  ;;  %v2344_v61 = vsel %vm5828_vm5, %v2342_v15, %v2343_v11  ;;  %v231_v34 = vunpack.c.l.bf16 %v5478_v40  ;;  %v4541_v55 = vrot.slane %v4525_v28, 9  ;;  %v2403_v0 = vrot.slane %v6274_v1, 5  ;;  %v6461_v15 = vpop.permute.xlu1 %4904 }
  0xe1   : > { %v2483_v7 = vunpack.c.l.bf16 %v2344_v61  ;;  %v4837_v48 = vunpack.i.h.bf16 %v6304_v38  ;;  %5154 = vrot.lane.b32.xlu1 %v5153_v39, %s5542_s28  ;;  %v2406_v27 = vrot.slane %v6358_v47, 5  ;;  %v4533_v13 = vrot.slane %v4517_v51, 9 }
  0xe2   : > { %v2347_v3 = vrot.slane %v6287_v9, 5  ;;  %v4836_v22 = vunpack.i.l.bf16 %v6304_v38  ;;  %v2404_v40 = vsel %vm5828_vm5, %v4541_v55, %v2403_v0  ;;  %v2405_v11 = vrot.slane %v2403_v0, 4 }
  0xe3   : > { %v5148_v8 = vpack.i.bf16 %v2483_v7, %v2482_v58  ;;  %v2500_v1 = vunpack.c.l.bf16 %v2404_v40  ;;  %v2350_v47 = vrot.slane %v6371_v2, 5  ;;  %v8268_v9 = vor.u32 %v6377_v57, %v6373_v52  ;;  %v6481_v2 = vpop.permute.xlu0 %4899  ;;  %v6512_v40 = vld [vmem:[%s5588_s20 + $0x3c] sm:$0xf] }
  0xe4   : > { %v2348_v28 = vsel %vm5828_vm5, %v4533_v13, %v2347_v3  ;;  %v2349_v61 = vrot.slane %v2347_v3, 4  ;;  %v8270_v7 = vunpack.i.h.bf16 %v6251_v62  ;;  %v8271_v38 = vunpack.c.l.bf16 %v6410_v6  ;;  %8273 = vst [vmem:[#allocation22_spill] sm:$0xff] %v6512_v40 }
  0xe5   : > { %v6469_v51 = vrot.slane %v8268_v9, 4  ;;  %5149 = vrot.lane.b32.xlu0 %v5148_v8, %s5542_s28  ;;  %v2407_v58 = vsel %vm5828_vm5, %v2405_v11, %v2406_v27  ;;  %v2484_v39 = vunpack.c.l.bf16 %v2348_v28  ;;  %v8272_v52 = vunpack.i.l.bf16 %v6251_v62  ;;  %v5480_v11 = vld [vmem:[%s5588_s20 + $0x40] sm:$0xf]  ;;  %v6520_v28 = vld [vmem:[%s5588_s20 + $0x2c] sm:$0x1] }
  0xe6   : > { %v6476_v0 = vsel %vm3538_vm6, %v8271_v38, %v8270_v7  ;;  %v6489_v6 = vsel %vm3538_vm6, %v229_v21, %v4832_v56  ;;  %v2501_v55 = vunpack.c.l.bf16 %v2407_v58  ;;  %v2351_v13 = vsel %vm5828_vm5, %v2349_v61, %v2350_v47 }
  0xe7   : > { %8269 = vst [vmem:[#allocation21_spill] sm:$0xff] %v6469_v51  ;;  %v6486_v57 = vsel %vm3538_vm6, %v232_v54, %v8272_v52  ;;  %v6494_v3 = vsel %vm3538_vm6, %v228_v46, %v4831_v18  ;;  %v6497_v27 = vsel %vm3538_vm6, %v235_v20, %v4847_v63  ;;  %v6500_v8 = vsel %vm3538_vm6, %v234_v36, %v4846_v41  ;;  %v6503_v54 = vld [vmem:[%s5588_s20 + $0x8c] sm:$0x1]  ;;  %v6533_v9 = vpop.permute.xlu0 %4909 }
  0xe8   : > { %v2485_v62 = vunpack.c.l.bf16 %v2351_v13  ;;  %v6506_v21 = vsel %vm3538_vm6, %v231_v34, %v4837_v48  ;;  %v6509_v56 = vsel %vm3538_vm6, %v230_v5, %v4836_v22  ;;  %v5163_v46 = vpack.i.bf16 %v2501_v55, %v2500_v1  ;;  %v6522_v34 = vpop.permute.xlu1 %4914 }
  0xe9   : > { %v239_v20 = vunpack.c.l.bf16 %v5480_v11  ;;  %v1301_v36 = vor.u32 %v6310_v37, %v6308_v53  ;;  %v1304_v41 = vshll.u32 %v6062_v60, 16  ;;  %v4857_v5 = vunpack.i.h.bf16 %v6335_v45 }
  0xea   : > { %v5158_v63 = vpack.i.bf16 %v2485_v62, %v2484_v39  ;;  %5164 = vrot.lane.b32.xlu1 %v5163_v46, %s5542_s28  ;;  %v1308_v48 = vshrl.u32 %v6062_v60, 16  ;;  %v1314_v22 = vshll.u32 %v6503_v54, 16  ;;  %v1109_v1 = vor.u32 %v6109_v31, %v6107_v23  ;;  %v6538_v39 = vld [vmem:[%s5588_s20 + $0x30] sm:$0xf]  ;;  %v6542_v31 = vld [vmem:[%s5588_s20 + $0x34] sm:$0xf] }
  0xeb   : > { %v1302_v53 = vrot.slane %v1301_v36, 4  ;;  %v1306_v37 = vrot.slane %v1304_v41, 5  ;;  %v1112_v61 = vshll.u32 %v5992_v30, 16  ;;  %v1116_v47 = vshrl.u32 %v5992_v30, 16  ;;  %8274 = vst [vmem:[#allocation23_spill] sm:$0xff] %v6538_v39  ;;  %8275 = vst [vmem:[#allocation24_spill] sm:$0xff] %v6542_v31 }
  0xec   : > { %5159 = vrot.lane.b32.xlu0 %v5158_v63, %s5542_s28  ;;  %v1310_v38 = vrot.slane %v1308_v48, 4  ;;  %v1110_v58 = vrot.slane %v1109_v1, 4  ;;  %v1122_v60 = vshll.u32 %v6520_v28, 16  ;;  %v6546_v13 = vsel %vm3538_vm6, %v239_v20, %v4857_v5  ;;  %v6553_v1 = vpop.permute.xlu1 %4924  ;;  %v5484_v20 = vld [vmem:[%s5588_s20 + $0x58] sm:$0xf] }
  0xed   : > { %v1114_v55 = vrot.slane %v1112_v61, 5  ;;  %v1118_v30 = vrot.slane %v1116_v47, 4  ;;  %8276 = vst [vmem:[#allocation25_spill] sm:$0xff] %v6546_v13  ;;  %v1307_v62 = vsel %vm5616_vm2, %v1302_v53, %v1306_v37  ;;  %v1316_v11 = vrot.slane %v1314_v22, 5  ;;  %v5483_v61 = vld [vmem:[%s5588_s20 + $0x54] sm:$0xf] }
  0xee   : > { %v1311_v46 = vor.u32 %v1310_v38, %v1306_v37  ;;  %v1124_v48 = vrot.slane %v1122_v60, 5  ;;  %v242_v47 = vunpack.c.l.bf16 %v5483_v61  ;;  %v243_v5 = vunpack.c.l.bf16 %v5484_v20  ;;  %v5485_v37 = vld [vmem:[%s5588_s20 + $0x48] sm:$0xf]  ;;  %v5486_v20 = vld [vmem:[%s5588_s20 + $0x4c] sm:$0xf] }
  0xef   : > { %v1115_v36 = vsel %vm5616_vm2, %v1110_v58, %v1114_v55  ;;  %v1119_v41 = vor.u32 %v1118_v30, %v1114_v55  ;;  %v4867_v23 = vunpack.i.h.bf16 %v6353_v44  ;;  %v4866_v22 = vunpack.i.l.bf16 %v6353_v44  ;;  %v6560_v58 = vpop.permute.xlu0 %4919  ;;  %v6565_v30 = vld [vmem:[%s5588_s20 + $0x98] sm:$0x1] }
  0xf0   : > { %v1312_v53 = vrot.slane %v1311_v46, 4  ;;  %v240_v38 = vunpack.c.l.bf16 %v5485_v37  ;;  %v1490_v52 = vunpack.c.l.bf16 %v1307_v62  ;;  %v1474_v55 = vunpack.c.l.bf16 %v1115_v36  ;;  %v5496_v31 = vld [vmem:[%s5588_s20 + $0x78] sm:$0xf] }
  0xf1   : > { %v1120_v63 = vrot.slane %v1119_v41, 4  ;;  %v1325_v61 = vor.u32 %v6306_v24, %v6301_v16  ;;  %v1328_v46 = vshll.u32 %v6051_v4, 16  ;;  %v241_v44 = vunpack.c.l.bf16 %v5486_v20  ;;  %v6577_v24 = vld [vmem:[%s5588_s20 + $0x38] sm:$0x1] }
  0xf2   : > { %v1317_v60 = vsel %vm5616_vm2, %v1312_v53, %v1316_v11  ;;  %v1332_v41 = vshrl.u32 %v6051_v4, 16  ;;  %v4862_v11 = vunpack.i.h.bf16 %v6365_v32  ;;  %v1338_v16 = vshll.u32 %v6565_v30, 16  ;;  %v6585_v4 = vld [vmem:[%s5588_s20 + $0x34] sm:$0xf] }
  0xf3   : > { %v1491_v37 = vunpack.c.l.bf16 %v1317_v60  ;;  %v1125_v62 = vsel %vm5616_vm2, %v1120_v63, %v1124_v48  ;;  %v1326_v53 = vrot.slane %v1325_v61, 4  ;;  %v1330_v18 = vrot.slane %v1328_v46, 5  ;;  %v6581_v60 = vpop.permute.xlu1 %4934 }
  0xf4   : > { %v1475_v36 = vunpack.c.l.bf16 %v1125_v62  ;;  %v1334_v13 = vrot.slane %v1332_v41, 4  ;;  %v1133_v20 = vor.u32 %v6105_v59, %v6103_v25  ;;  %8277 = vst [vmem:[#allocation26_spill] sm:$0xff] %v6581_v60  ;;  %v4861_v63 = vunpack.i.l.bf16 %v6365_v32  ;;  %v6592_v59 = vpop.permute.xlu0 %4929  ;;  %v5492_v60 = vld [vmem:[%s5588_s20 + $0x64] sm:$0xf] }
  0xf5   : > { %v5173_v7 = vpack.i.bf16 %v1491_v37, %v1490_v52  ;;  %v1136_v61 = vshll.u32 %v6585_v4, 16  ;;  %v1140_v52 = vshrl.u32 %v6585_v4, 16  ;;  %v1331_v46 = vsel %vm5616_vm2, %v1326_v53, %v1330_v18  ;;  %8278 = vst [vmem:[#allocation27_spill] sm:$0xff] %v6592_v59  ;;  %v5488_v53 = vld [vmem:[%s5588_s20 + $0x70] sm:$0xf] }
  0xf6   : > { %v5168_v48 = vpack.i.bf16 %v1475_v36, %v1474_v55  ;;  %v1335_v37 = vor.u32 %v1334_v13, %v1330_v18  ;;  %v1340_v62 = vrot.slane %v1338_v16, 5  ;;  %v1134_v25 = vrot.slane %v1133_v20, 4 }
  0xf7   : > { %5174 = vrot.lane.b32.xlu1 %v5173_v7, %s5538_s24  ;;  %v1138_v55 = vrot.slane %v1136_v61, 5  ;;  %v1142_v41 = vrot.slane %v1140_v52, 4  ;;  %v1146_v36 = vshll.u32 %v6577_v24, 16  ;;  %v6598_v7 = vsel %vm3538_vm6, %v243_v5, %v4867_v23  ;;  %v4446_v61 = vld [vmem:[%s5588_s20 + $0x84] sm:$0xe] }
  0xf8   : > { %5169 = vrot.lane.b32.xlu0 %v5168_v48, %s5538_s24  ;;  %v247_v18 = vunpack.c.l.bf16 %v5488_v53  ;;  %v4877_v13 = vunpack.i.h.bf16 %v6379_v50  ;;  %v1336_v16 = vrot.slane %v1335_v37, 4  ;;  %v1492_v20 = vunpack.c.l.bf16 %v1331_v46  ;;  %v4438_v46 = vld [vmem:[%s5588_s20 + $0x24] sm:$0xe]  ;;  %v6617_v53 = vpop.permute.xlu1 %4944 }
  0xf9   : > { %v1139_v32 = vsel %vm5616_vm2, %v1134_v25, %v1138_v55  ;;  %v1143_v39 = vor.u32 %v1142_v41, %v1138_v55  ;;  %v1148_v48 = vrot.slane %v1146_v36, 5  ;;  %v6606_v52 = vsel %vm3538_vm6, %v242_v47, %v4866_v22  ;;  %v5489_v25 = vld [vmem:[%s5588_s20 + $0x6c] sm:$0xf] }
  0xfa   : > { %v6609_v23 = vsel %vm3538_vm6, %v241_v44, %v4862_v11  ;;  %v6612_v5 = vsel %vm3538_vm6, %v240_v38, %v4861_v63  ;;  %v1341_v37 = vsel %vm5616_vm2, %v1336_v16, %v1340_v62  ;;  %v246_v55 = vunpack.c.l.bf16 %v5489_v25  ;;  %v5490_v11 = vld [vmem:[%s5588_s20 + $0x88] sm:$0xf]  ;;  %v6623_v63 = vpop.permute.xlu0 %4939 }
  0xfb   : > { %v4876_v41 = vunpack.i.l.bf16 %v6379_v50  ;;  %v1493_v36 = vunpack.c.l.bf16 %v1341_v37  ;;  %v1144_v47 = vrot.slane %v1143_v39, 4  ;;  %v1476_v22 = vunpack.c.l.bf16 %v1139_v32  ;;  %v5491_v37 = vld [vmem:[%s5588_s20 + $0x60] sm:$0xf] }
  0xfc   : > { %v4462_v44 = vrot.slane %v4446_v61, 9  ;;  %v1638_v59 = vrot.slane %v5490_v11, 5  ;;  %v1641_v38 = vrot.slane %v6503_v54, 5  ;;  %v6626_v62 = vsel %vm3538_vm6, %v247_v18, %v4877_v13  ;;  %v5493_v13 = vld [vmem:[%s5588_s20 + $0x28] sm:$0xf] }
  0xfd   : > { %8279 = vst [vmem:[#allocation28_spill] sm:$0xff] %v6626_v62  ;;  %v5183_v16 = vpack.i.bf16 %v1493_v36, %v1492_v20  ;;  %v1149_v25 = vsel %vm5616_vm2, %v1144_v47, %v1148_v48  ;;  %v4454_v50 = vrot.slane %v4438_v46, 9  ;;  %v244_v39 = vunpack.c.l.bf16 %v5491_v37 }
  0xfe   : > { %v1477_v32 = vunpack.c.l.bf16 %v1149_v25  ;;  %v1639_v61 = vsel %vm5828_vm5, %v4462_v44, %v1638_v59  ;;  %v1640_v11 = vrot.slane %v1638_v59, 4  ;;  %v245_v54 = vunpack.c.l.bf16 %v5492_v60  ;;  %v4447_v60 = vld [vmem:[%s5588_s20 + $0x90] sm:$0xe]  ;;  %v6644_v44 = vpop.permute.xlu1 %4954 }
  0xff   : > { %5184 = vrot.lane.b32.xlu1 %v5183_v16, %s5538_s24  ;;  %v1730_v18 = vunpack.c.l.bf16 %v1639_v61  ;;  %v1582_v20 = vrot.slane %v5493_v13, 5  ;;  %v1585_v48 = vrot.slane %v6520_v28, 5  ;;  %v6638_v46 = vsel %vm3538_vm6, %v246_v55, %v4876_v41  ;;  %v5494_v55 = vld [vmem:[%s5588_s20 + $0x84] sm:$0xf]  ;;  %v5495_v61 = vld [vmem:[%s5588_s20 + $0x88] sm:$0xf] }
 0x100   : > { %8280 = vst [vmem:[#allocation29_spill] sm:$0xff] %v6638_v46  ;;  %v4872_v36 = vunpack.i.h.bf16 %v6387_v10  ;;  %v5178_v47 = vpack.i.bf16 %v1477_v32, %v1476_v22  ;;  %v1642_v59 = vsel %vm5828_vm5, %v1640_v11, %v1641_v38  ;;  %v4871_v16 = vunpack.i.l.bf16 %v6387_v10  ;;  %v4439_v32 = vld [vmem:[%s5588_s20 + $0x30] sm:$0xe]  ;;  %v6654_v11 = vpop.permute.xlu0 %4949 }
 0x101   : > { %v1731_v25 = vunpack.c.l.bf16 %v1642_v59  ;;  %v1583_v28 = vsel %vm5828_vm5, %v4454_v50, %v1582_v20  ;;  %v1584_v37 = vrot.slane %v1582_v20, 4  ;;  %v250_v41 = vunpack.c.l.bf16 %v5494_v55  ;;  %8281 = vst [vmem:[#allocation30_spill] sm:$0xff] %v6654_v11 }
 0x102   : > { %v251_v13 = vunpack.c.l.bf16 %v5495_v61  ;;  %v4887_v22 = vunpack.i.h.bf16 %v6407_v29  ;;  %5179 = vrot.lane.b32.xlu0 %v5178_v47, %s5538_s24  ;;  %v1714_v38 = vunpack.c.l.bf16 %v1583_v28  ;;  %v4886_v10 = vunpack.i.l.bf16 %v6407_v29  ;;  %v5498_v47 = vld [vmem:[%s5588_s20 + $0x7c] sm:$0xf] }
 0x103   : > { %v5193_v59 = vpack.i.bf16 %v1731_v25, %v1730_v18  ;;  %v1586_v50 = vsel %vm5828_vm5, %v1584_v37, %v1585_v48  ;;  %v4463_v20 = vrot.slane %v4447_v60, 9  ;;  %v248_v55 = vunpack.c.l.bf16 %v5496_v31  ;;  %v4488_v25 = vld [vmem:[%s5588_s20 + $0x90] sm:$0xf] }
 0x104   : > { %v1715_v61 = vunpack.c.l.bf16 %v1586_v50  ;;  %v1645_v40 = vrot.slane %v5497_v43, 5  ;;  %v1648_v45 = vrot.slane %v6565_v30, 5  ;;  %v249_v28 = vunpack.c.l.bf16 %v5498_v47  ;;  %v6670_v30 = vpop.permute.xlu1 %4964 }
 0x105   : > { %5194 = vrot.lane.b32.xlu1 %v5193_v59, %s5539_s25  ;;  %v4455_v42 = vrot.slane %v4439_v32, 9  ;;  %v1589_v29 = vrot.slane %v6585_v4, 5  ;;  %v1592_v18 = vrot.slane %v6577_v24, 5  ;;  %v4882_v48 = vunpack.i.h.bf16 %v6416_v49  ;;  %8282 = vst [vmem:[#allocation31_spill] sm:$0xff] %v6670_v30  ;;  %v6676_v24 = vld [vmem:[%s5588_s20 + $0x94] sm:$0xf] }
 0x106   : > { %v5188_v60 = vpack.i.bf16 %v1715_v61, %v1714_v38  ;;  %v1646_v31 = vsel %vm5828_vm5, %v4463_v20, %v1645_v40  ;;  %v1647_v43 = vrot.slane %v1645_v40, 4  ;;  %v4881_v37 = vunpack.i.l.bf16 %v6416_v49  ;;  %v4472_v20 = vld [vmem:[%s5588_s20 + $0x30] sm:$0xf]  ;;  %v6688_v61 = vpop.permute.xlu0 %4959 }
 0x107   : > { %v1732_v59 = vunpack.c.l.bf16 %v1646_v31  ;;  %v1590_v4 = vsel %vm5828_vm5, %v4455_v42, %v1589_v29  ;;  %v1591_v32 = vrot.slane %v1589_v29, 4  ;;  %v6679_v50 = vsel %vm3538_vm6, %v245_v54, %v4872_v36  ;;  %8285 = vst [vmem:[#allocation34_spill] sm:$0xff] %v6688_v61 }
 0x108   : > { %8283 = vst [vmem:[#allocation32_spill] sm:$0xff] %v6679_v50  ;;  %v6682_v38 = vsel %vm3538_vm6, %v244_v39, %v4871_v16  ;;  %5189 = vrot.lane.b32.xlu0 %v5188_v60, %s5539_s25  ;;  %v1649_v49 = vsel %vm5828_vm5, %v1647_v43, %v1648_v45  ;;  %v1716_v40 = vunpack.c.l.bf16 %v1590_v4  ;;  %v6691_v42 = vsel %vm3538_vm6, %v251_v13, %v4887_v22  ;;  %v6696_v16 = vld [vmem:[%s5588_s20 + $0x34] sm:$0xf]  ;;  %v6709_v60 = vld [vmem:[%s5588_s20 + $0x9c] sm:$0xf] }
 0x109   : > { %8284 = vst [vmem:[#allocation33_spill] sm:$0xff] %v6682_v38  ;;  %8286 = vst [vmem:[#allocation35_spill] sm:$0xff] %v6691_v42  ;;  %v1733_v54 = vunpack.c.l.bf16 %v1649_v49  ;;  %v1593_v39 = vsel %vm5828_vm5, %v1591_v32, %v1592_v18  ;;  %v1798_v36 = vunpack.c.l.bf16 %v4488_v25  ;;  %v6699_v47 = vsel %vm3538_vm6, %v250_v41, %v4886_v10  ;;  %v6713_v4 = vld [vmem:[%s5588_s20 + $0xa0] sm:$0xf]  ;;  %v5501_v10 = vld [vmem:[%s5588_s20 + $0xb4] sm:$0xf] }
 0x10a   : > { %8287 = vst [vmem:[#allocation36_spill] sm:$0xff] %v6699_v47  ;;  %v6702_v45 = vsel %vm3538_vm6, %v249_v28, %v4882_v48  ;;  %v1717_v29 = vunpack.c.l.bf16 %v1593_v39  ;;  %v1799_v13 = vunpack.c.l.bf16 %v6676_v24  ;;  %v6706_v22 = vsel %vm3538_vm6, %v248_v55, %v4881_v37  ;;  %8290 = vst [vmem:[#allocation39_spill] sm:$0xff] %v6709_v60  ;;  %v6719_v55 = vld [vmem:[%s5588_s20 + $0x9c] sm:$0xf]  ;;  %v6721_v37 = vpop.permute.xlu1 %4974  ;;  %v5502_v49 = vld [vmem:[%s5588_s20 + $0xb8] sm:$0xf] }
 0x10b   : > { %8288 = vst [vmem:[#allocation37_spill] sm:$0xff] %v6702_v45  ;;  %8289 = vst [vmem:[#allocation38_spill] sm:$0xff] %v6706_v22  ;;  %v5203_v31 = vpack.i.bf16 %v1733_v54, %v1732_v59  ;;  %v1782_v43 = vunpack.c.l.bf16 %v4472_v20  ;;  %v258_v28 = vunpack.c.l.bf16 %v5501_v10  ;;  %v1783_v32 = vunpack.c.l.bf16 %v6696_v16  ;;  %v6726_v41 = vld [vmem:[%s5588_s20 + $0xa0] sm:$0xf]  ;;  %v6763_v50 = vld [vmem:[%s5588_s20 + $0x98] sm:$0x1] }
 0x10c   : > { %8291 = vst [vmem:[#allocation40_spill] sm:$0xff] %v6713_v4  ;;  %v5198_v48 = vpack.i.bf16 %v1717_v29, %v1716_v40  ;;  %8292 = vst [vmem:[#allocation41_spill] sm:$0xff] %v6721_v37  ;;  %v259_v59 = vunpack.c.l.bf16 %v5502_v49  ;;  %v2067_v54 = vshrl.u32 %v4488_v25, 16  ;;  %v2070_v39 = vshll.u32 %v4488_v25, 16  ;;  %v6731_v4 = vld [vmem:[%s5588_s20 + $0x3c] sm:$0xf]  ;;  %v6736_v49 = vpop.permute.xlu0 %4969 }
 0x10d   : > { %5204 = vrot.lane.b32.xlu1 %v5203_v31, %s5539_s25  ;;  %v5213_v18 = vpack.i.bf16 %v1799_v13, %v1798_v36  ;;  %v4907_v40 = vunpack.i.h.bf16 %v6461_v15  ;;  %v1875_v29 = vshrl.u32 %v4472_v20, 16  ;;  %v1878_v10 = vshll.u32 %v4472_v20, 16  ;;  %v6734_v37 = vld [vmem:[%s5588_s20 + $0x40] sm:$0xf]  ;;  %8293 = vst [vmem:[#allocation42_spill] sm:$0xff] %v6736_v49 }
 0x10e   : > { %5199 = vrot.lane.b32.xlu0 %v5198_v48, %s5539_s25  ;;  %v5208_v60 = vpack.i.bf16 %v1783_v32, %v1782_v43  ;;  %v4906_v31 = vunpack.i.l.bf16 %v6461_v15  ;;  %v5503_v25 = vld [vmem:[%s5588_s20 + $0xac] sm:$0xf]  ;;  %v4902_v13 = vunpack.i.h.bf16 %v6481_v2  ;;  %v1800_v51 = vunpack.c.l.bf16 %v6719_v55  ;;  %v5504_v48 = vld [vmem:[%s5588_s20 + $0xa8] sm:$0xf]  ;;  %v6751_v45 = vpop.permute.xlu1 %4984 }
 0x10f   : > { %v257_v36 = vunpack.c.l.bf16 %v5503_v25  ;;  %v256_v22 = vunpack.c.l.bf16 %v5504_v48  ;;  %v4901_v20 = vunpack.i.l.bf16 %v6481_v2  ;;  %v1801_v43 = vunpack.c.l.bf16 %v6726_v41 }
 0x110   : > { %v2069_v32 = vrot.slane %v2067_v54, 4  ;;  %v2072_v47 = vrot.slane %v2070_v39, 5  ;;  %v1784_v15 = vunpack.c.l.bf16 %v6731_v4  ;;  %v1785_v25 = vunpack.c.l.bf16 %v6734_v37 }
 0x111   : > { %5214 = vrot.lane.b32.xlu1 %v5213_v18, %s5540_s26  ;;  %v1877_v42 = vrot.slane %v1875_v29, 4  ;;  %v1880_v38 = vrot.slane %v1878_v10, 5  ;;  %v5223_v48 = vpack.i.bf16 %v1801_v43, %v1800_v51  ;;  %v6754_v2 = vsel %vm3538_vm6, %v259_v59, %v4907_v40  ;;  %v6770_v59 = vpop.permute.xlu0 %4979 }
 0x112   : > { %5209 = vrot.lane.b32.xlu0 %v5208_v60, %s5540_s26  ;;  %v6757_v54 = vsel %vm3538_vm6, %v258_v28, %v4906_v31  ;;  %v6760_v18 = vsel %vm3538_vm6, %v257_v36, %v4902_v13  ;;  %v5218_v39 = vpack.i.bf16 %v1785_v25, %v1784_v15  ;;  %v6766_v29 = vsel %vm3538_vm6, %v256_v22, %v4901_v20  ;;  %v6781_v20 = vld [vmem:[%s5588_s20 + $0x38] sm:$0x1]  ;;  %v6787_v51 = vpop.permute.xlu1 %4994 }
 0x113   : > { %v4916_v60 = vunpack.i.l.bf16 %v6522_v34  ;;  %v2091_v28 = vshrl.u32 %v6719_v55, 16  ;;  %v2094_v40 = vshll.u32 %v6719_v55, 16  ;;  %v2073_v10 = vor.u32 %v2072_v47, %v2069_v32  ;;  %8294 = vst [vmem:[#allocation43_spill] sm:$0xff] %v6787_v51 }
 0x114   : > { %v2076_v31 = vshll.u32 %v6676_v24, 16  ;;  %v1899_v36 = vshrl.u32 %v6731_v4, 16  ;;  %v2080_v22 = vshrl.u32 %v6676_v24, 16  ;;  %v2086_v13 = vshll.u32 %v6763_v50, 16 }
 0x115   : > { %5224 = vrot.lane.b32.xlu1 %v5223_v48, %s5540_s26  ;;  %v1881_v43 = vor.u32 %v1880_v38, %v1877_v42  ;;  %v1902_v15 = vshll.u32 %v6731_v4, 16  ;;  %v2074_v25 = vrot.slane %v2073_v10, 4  ;;  %v1884_v48 = vshll.u32 %v6696_v16, 16  ;;  %v6792_v30 = vpop.permute.xlu0 %4989 }
 0x116   : > { %5219 = vrot.lane.b32.xlu0 %v5218_v39, %s5540_s26  ;;  %v2078_v55 = vrot.slane %v2076_v31, 5  ;;  %v4912_v47 = vunpack.i.h.bf16 %v6533_v9  ;;  %v2082_v32 = vrot.slane %v2080_v22, 4  ;;  %v1888_v39 = vshrl.u32 %v6696_v16, 16  ;;  %8295 = vst [vmem:[#allocation44_spill] sm:$0xff] %v6792_v30 }
 0x117   : > { %v1882_v49 = vrot.slane %v1881_v43, 4  ;;  %v2093_v19 = vrot.slane %v2091_v28, 4  ;;  %v2096_v46 = vrot.slane %v2094_v40, 5  ;;  %v1886_v61 = vrot.slane %v1884_v48, 5  ;;  %v6800_v40 = vld [vmem:[%s5588_s20 + $0xa4] sm:$0x1] }
 0x118   : > { %v1894_v38 = vshll.u32 %v6781_v20, 16  ;;  %v2079_v42 = vsel %vm5616_vm2, %v2074_v25, %v2078_v55  ;;  %v2083_v4 = vor.u32 %v2082_v32, %v2078_v55  ;;  %v2088_v10 = vrot.slane %v2086_v13, 5 }
 0x119   : > { %v1890_v31 = vrot.slane %v1888_v39, 4  ;;  %v6796_v22 = vsel %vm3571_vm7, %v6509_v56, %v4916_v60  ;;  %v4911_v43 = vunpack.i.l.bf16 %v6533_v9  ;;  %v1901_v51 = vrot.slane %v1899_v36, 4 }
 0x11a   : > { %8296 = vst [vmem:[#allocation45_spill] sm:$0xff] %v6796_v22  ;;  %v1904_v28 = vrot.slane %v1902_v15, 5  ;;  %v2084_v48 = vrot.slane %v2083_v4, 4  ;;  %v1887_v11 = vsel %vm5616_vm2, %v1882_v49, %v1886_v61  ;;  %v1896_v55 = vrot.slane %v1894_v38, 5  ;;  %v6810_v4 = vpop.permute.xlu1 %5004 }
 0x11b   : > { %v1891_v25 = vor.u32 %v1890_v31, %v1886_v61  ;;  %v4927_v13 = vunpack.i.h.bf16 %v6553_v1  ;;  %v2262_v32 = vunpack.c.l.bf16 %v2079_v42  ;;  %v2097_v39 = vor.u32 %v2096_v46, %v2093_v19  ;;  %v6816_v42 = vld [vmem:[%s5588_s20 + $0x44] sm:$0x1] }
 0x11c   : > { %v2100_v56 = vshll.u32 %v6726_v41, 16  ;;  %v2089_v9 = vsel %vm5616_vm2, %v2084_v48, %v2088_v10  ;;  %v2104_v36 = vshrl.u32 %v6726_v41, 16  ;;  %v2110_v15 = vshll.u32 %v6800_v40, 16  ;;  %v6818_v48 = vpop.permute.xlu0 %4999 }
 0x11d   : > { %v1892_v60 = vrot.slane %v1891_v25, 4  ;;  %v2263_v49 = vunpack.c.l.bf16 %v2089_v9  ;;  %v2246_v61 = vunpack.c.l.bf16 %v1887_v11  ;;  %v2098_v38 = vrot.slane %v2097_v39, 4 }
 0x11e   : > { %v2102_v31 = vrot.slane %v2100_v56, 5  ;;  %v4926_v22 = vunpack.i.l.bf16 %v6553_v1  ;;  %v2106_v46 = vrot.slane %v2104_v36, 4  ;;  %v1905_v10 = vor.u32 %v1904_v28, %v1901_v51 }
 0x11f   : > { %v1897_v19 = vsel %vm5616_vm2, %v1892_v60, %v1896_v55  ;;  %v5233_v25 = vpack.i.bf16 %v2263_v49, %v2262_v32  ;;  %v2112_v62 = vrot.slane %v2110_v15, 5  ;;  %v1908_v9 = vshll.u32 %v6734_v37, 16 }
 0x120   : > { %v2247_v30 = vunpack.c.l.bf16 %v1897_v19  ;;  %v2103_v11 = vsel %vm5616_vm2, %v2098_v38, %v2102_v31  ;;  %v2107_v39 = vor.u32 %v2106_v46, %v2102_v31  ;;  %v1906_v1 = vrot.slane %v1905_v10, 4  ;;  %v4526_v38 = vld [vmem:[%s5588_s20 + $0x90] sm:$0xe] }
 0x121   : > { %v1912_v56 = vshrl.u32 %v6734_v37, 16  ;;  %v8297_v55 = vunpack.i.h.bf16 %v6522_v34  ;;  %5234 = vrot.lane.b32.xlu1 %v5233_v25, %s5541_s27  ;;  %v1910_v32 = vrot.slane %v1908_v9, 5  ;;  %v1918_v60 = vshll.u32 %v6816_v42, 16  ;;  %v5468_v25 = vld [vmem:[%s8206_s1] sm:$0xff]  }
 0x122   : > { %v5228_v28 = vpack.i.bf16 %v2247_v30, %v2246_v61  ;;  %v6834_v36 = vsel %vm3571_vm7, %v6494_v3, %v4911_v43  ;;  %v6838_v15 = vsel %vm3571_vm7, %v6489_v6, %v4912_v47  ;;  %v2108_v34 = vrot.slane %v2107_v39, 4  ;;  %v4518_v6 = vld [vmem:[%s5588_s20 + $0x30] sm:$0xe]  ;;  %4749 = vmatprep.subr.bf16.mxu0 %v5468_v25  ;;  %4787 = vmatprep.subr.bf16.mxu1 %v5468_v25 }
 0x123   : > { %v6828_v51 = vsel %vm3571_vm7, %v6506_v21, %v8297_v55  ;;  %v1914_v49 = vrot.slane %v1912_v56, 4  ;;  %v6841_v21 = vpop.permute.xlu1 %5014  ;;  %v6845_v31 = vsel %vm3571_vm7, %v6497_v27, %v4927_v13  ;;  %v6849_v30 = vsel %vm3571_vm7, %v6500_v8, %v4926_v22  ;;  %v6858_v27 = vpop.permute.xlu0 %5009  ;;  %4750 = vmatpush3.bf16.msra.mxu0 %v5468_v25  ;;  %4790 = vmatpush3.bf16.msra.mxu1 %v5468_v25 }
 0x124   : > { %8298 = vst [vmem:[#allocation46_spill] sm:$0xff] %v6841_v21  ;;  %v4922_v3 = vunpack.i.h.bf16 %v6560_v58  ;;  %5229 = vrot.lane.b32.xlu0 %v5228_v28, %s5541_s27  ;;  %v2264_v43 = vunpack.c.l.bf16 %v2103_v11  ;;  %v2113_v47 = vsel %vm5616_vm2, %v2108_v34, %v2112_v62  ;;  %v1911_v61 = vsel %vm5616_vm2, %v1906_v1, %v1910_v32  ;;  %8299 = vst [vmem:[#allocation47_spill] sm:$0xff] %v6858_v27  ;;  %v8314_v27 = vld [vmem:[#allocation36_spill] sm:$0xff] }
 0x125   : > { %v1915_v19 = vor.u32 %v1914_v49, %v1910_v32  ;;  %v1920_v46 = vrot.slane %v1918_v60, 5  ;;  %v4921_v13 = vunpack.i.l.bf16 %v6560_v58  ;;  %v4947_v8 = vunpack.i.h.bf16 %v6617_v53  ;;  %v4527_v49 = vld [vmem:[%s5588_s20 + $0x9c] sm:$0xe] }
 0x126   : > { %v2265_v22 = vunpack.c.l.bf16 %v2113_v47  ;;  %v4542_v10 = vrot.slane %v4526_v38, 9  ;;  %v2410_v62 = vrot.slane %v6676_v24, 5  ;;  %v2413_v11 = vrot.slane %v6763_v50, 5 }
 0x127   : > { %v1916_v9 = vrot.slane %v1915_v19, 4  ;;  %v4534_v39 = vrot.slane %v4518_v6, 9  ;;  %v2248_v56 = vunpack.c.l.bf16 %v1911_v61  ;;  %v2354_v55 = vrot.slane %v6696_v16, 5  ;;  %v6874_v60 = vpop.permute.xlu1 %5024  ;;  %v4519_v61 = vld [vmem:[%s5588_s20 + $0x3c] sm:$0xe]  ;;  %v6891_v19 = vpop.permute.xlu0 %5019 }
 0x128   : > { %v5243_v1 = vpack.i.bf16 %v2265_v22, %v2264_v43  ;;  %v2357_v58 = vrot.slane %v6781_v20, 5  ;;  %v4946_v28 = vunpack.i.l.bf16 %v6617_v53  ;;  %v2411_v24 = vsel %vm5828_vm5, %v4542_v10, %v2410_v62 }
 0x129   : > { %v1921_v32 = vsel %vm5616_vm2, %v1916_v9, %v1920_v46  ;;  %v2412_v50 = vrot.slane %v2410_v62, 4  ;;  %v2502_v20 = vunpack.c.l.bf16 %v2411_v24  ;;  %v2355_v34 = vsel %vm5828_vm5, %v4534_v39, %v2354_v55 }
 0x12a   : > { %5244 = vrot.lane.b32.xlu1 %v5243_v1, %s5541_s27  ;;  %v2249_v16 = vunpack.c.l.bf16 %v1921_v32  ;;  %v2356_v53 = vrot.slane %v2354_v55, 4  ;;  %v6882_v38 = vsel %vm3571_vm7, %v6476_v0, %v4922_v3  ;;  %v6886_v43 = vsel %vm3571_vm7, %v6486_v57, %v4921_v13 }
 0x12b   : > { %v2414_v6 = vsel %vm5828_vm5, %v2412_v50, %v2413_v11  ;;  %v2486_v47 = vunpack.c.l.bf16 %v2355_v34  ;;  %v6895_v46 = vsel %vm3571_vm7, %v6598_v7, %v4947_v8  ;;  %v4942_v3 = vunpack.i.h.bf16 %v6623_v63  ;;  %v6910_v55 = vpop.permute.xlu1 %5034  ;;  %v6921_v50 = vpop.permute.xlu0 %5029 }
 0x12c   : > { %v5238_v22 = vpack.i.bf16 %v2249_v16, %v2248_v56  ;;  %v2503_v10 = vunpack.c.l.bf16 %v2414_v6  ;;  %v2358_v0 = vsel %vm5828_vm5, %v2356_v53, %v2357_v58  ;;  %v4543_v13 = vrot.slane %v4527_v49, 9 }
 0x12d   : > { %v2487_v57 = vunpack.c.l.bf16 %v2358_v0  ;;  %v2417_v25 = vrot.slane %v6726_v41, 5  ;;  %v6903_v9 = vsel %vm3571_vm7, %v6606_v52, %v4946_v28  ;;  %v2420_v7 = vrot.slane %v6800_v40, 5  ;;  %v6959_v0 = vld [vmem:[%s5588_s20 + $0x44] sm:$0x1] }
 0x12e   : > { %5239 = vrot.lane.b32.xlu0 %v5238_v22, %s5541_s27  ;;  %v5253_v62 = vpack.i.bf16 %v2503_v10, %v2502_v20  ;;  %v4535_v8 = vrot.slane %v4519_v61, 9  ;;  %v4941_v11 = vunpack.i.l.bf16 %v6623_v63  ;;  %v2361_v41 = vrot.slane %v6734_v37, 5  ;;  %v6950_v61 = vld [vmem:[%s5588_s20 + $0xa0] sm:$0xf] }
 0x12f   : > { %v5248_v39 = vpack.i.bf16 %v2487_v57, %v2486_v47  ;;  %v2418_v1 = vsel %vm5828_vm5, %v4543_v13, %v2417_v25  ;;  %v2419_v56 = vrot.slane %v2417_v25, 4  ;;  %v2364_v58 = vrot.slane %v6816_v42, 5  ;;  %v6963_v13 = vpop.permute.xlu1 %5044  ;;  %v6967_v25 = vld [vmem:[%s5588_s20 + $0x40] sm:$0xf] }
 0x130   : > { %5254 = vrot.lane.b32.xlu1 %v5253_v62, %s5542_s28  ;;  %v2504_v52 = vunpack.c.l.bf16 %v2418_v1  ;;  %v4987_v40 = vunpack.i.h.bf16 %v6751_v45  ;;  %v4986_v28 = vunpack.i.l.bf16 %v6751_v45  ;;  %v4982_v32 = vunpack.i.h.bf16 %v6770_v59  ;;  %v6931_v45 = vld [vmem:[%s5588_s20 + $0xa4] sm:$0x1] }
 0x131   : > { %v2421_v63 = vsel %vm5828_vm5, %v2419_v56, %v2420_v7  ;;  %v4981_v24 = vunpack.i.l.bf16 %v6770_v59  ;;  %v2362_v37 = vsel %vm5828_vm5, %v4535_v8, %v2361_v41  ;;  %v2363_v42 = vrot.slane %v2361_v41, 4 }
 0x132   : > { %5249 = vrot.lane.b32.xlu0 %v5248_v39, %s5542_s28  ;;  %v2505_v16 = vunpack.c.l.bf16 %v2421_v63  ;;  %v6928_v20 = vsel %vm3571_vm7, %v6754_v2, %v4987_v40  ;;  %v2488_v34 = vunpack.c.l.bf16 %v2362_v37  ;;  %v6935_v59 = vsel %vm3571_vm7, %v6757_v54, %v4986_v28  ;;  %v8300_v37 = vld [vmem:[#allocation28_spill] sm:$0xff] }
 0x133   : > { %v6939_v53 = vsel %vm3571_vm7, %v6766_v29, %v4981_v24  ;;  %v6943_v49 = vsel %vm3571_vm7, %v6760_v18, %v4982_v32  ;;  %v2365_v2 = vsel %vm5828_vm5, %v2363_v42, %v2364_v58  ;;  %v1349_v47 = vor.u32 %v6323_v33, %v6321_v35  ;;  %v5469_v29 = vld [vmem:[%s8206_s1 + $0x8] sm:$0xff]  }
 0x134   : > { %v5263_v6 = vpack.i.bf16 %v2505_v16, %v2504_v52  ;;  %v1352_v54 = vshll.u32 %v6950_v61, 16  ;;  %v2489_v22 = vunpack.c.l.bf16 %v2365_v2  ;;  %v1356_v18 = vshrl.u32 %v6950_v61, 16  ;;  %4751 = vmatprep.subr.bf16.mxu0 %v5469_v29  ;;  %v6972_v52 = vpop.permute.xlu0 %5039  ;;  %4788 = vmatprep.subr.bf16.mxu1 %v5469_v29  ;;  %v6995_v2 = vpop.permute.xlu1 %5054 }
 0x135   : > { %v1362_v10 = vshll.u32 %v6931_v45, 16  ;;  %v1157_v57 = vor.u32 %v6237_v17, %v6137_v12  ;;  %v1350_v35 = vrot.slane %v1349_v47, 4  ;;  %v1160_v62 = vshll.u32 %v6967_v25, 16  ;;  %4752 = vmatpush3.bf16.msra.mxu0 %v5469_v29  ;;  %4791 = vmatpush3.bf16.msra.mxu1 %v5469_v29  ;;  %8302 = vst [vmem:[#allocation28_spill] sm:$0xff] %v6995_v2  ;;  %v8303_v47 = vld [vmem:[#allocation31_spill] sm:$0xff] }
 0x136   : > { %5264 = vrot.lane.b32.xlu1 %v5263_v6, %s5542_s28  ;;  %v1354_v33 = vrot.slane %v1352_v54, 5  ;;  %v1164_v7 = vshrl.u32 %v6967_v25, 16  ;;  %v4957_v8 = vunpack.i.h.bf16 %v6644_v44  ;;  %v5258_v39 = vpack.i.bf16 %v2489_v22, %v2488_v34  ;;  %v6999_v22 = vld [vmem:[%s5588_s20 + $0xb0] sm:$0x1]  ;;  %v4440_v2 = vld [vmem:[%s5588_s20 + $0x3c] sm:$0xe] }
 0x137   : > { %v1358_v1 = vrot.slane %v1356_v18, 4  ;;  %v1158_v56 = vrot.slane %v1157_v57, 4  ;;  %v6976_v12 = vsel %vm3571_vm7, %v6609_v23, %v4942_v3  ;;  %v1162_v17 = vrot.slane %v1160_v62, 5  ;;  %v8304_v18 = vld [vmem:[#allocation12_spill] sm:$0xff]  ;;  %v7006_v62 = vld [vmem:[%s5588_s20 + $0xac] sm:$0xf] }
 0x138   : > { %v1166_v41 = vrot.slane %v1164_v7, 4  ;;  %v1170_v58 = vshll.u32 %v6959_v0, 16  ;;  %v6981_v40 = vsel %vm3571_vm7, %v6612_v5, %v4941_v11  ;;  %5259 = vrot.lane.b32.xlu0 %v5258_v39, %s5542_s28  ;;  %v1355_v63 = vsel %vm5616_vm2, %v1350_v35, %v1354_v33  ;;  %v8301_v11 = vld [vmem:[#allocation30_spill] sm:$0xff]  ;;  %v7010_v39 = vpop.permute.xlu0 %5049 }
 0x139   : > { %v1359_v28 = vor.u32 %v1358_v1, %v1354_v33  ;;  %v1364_v32 = vrot.slane %v1362_v10, 5  ;;  %v4956_v23 = vunpack.i.l.bf16 %v6644_v44  ;;  %v1163_v3 = vsel %vm5616_vm2, %v1158_v56, %v1162_v17  ;;  %v8305_v10 = vld [vmem:[#allocation13_spill] sm:$0xff]  ;;  %8306 = vst [vmem:[#allocation30_spill] sm:$0xff] %v7010_v39 }
 0x13a   : > { %v1167_v24 = vor.u32 %v1166_v41, %v1162_v17  ;;  %v1172_v16 = vrot.slane %v1170_v58, 5  ;;  %v6991_v5 = vsel %vm3571_vm7, %v8300_v37, %v4957_v8  ;;  %v4952_v42 = vunpack.i.h.bf16 %v8301_v11  ;;  %v8307_v37 = vld [vmem:[#allocation5_spill] sm:$0xff] }
 0x13b   : > { %v4951_v34 = vunpack.i.l.bf16 %v8301_v11  ;;  %v1360_v6 = vrot.slane %v1359_v28, 4  ;;  %v4967_v54 = vunpack.i.h.bf16 %v8303_v47  ;;  %v1494_v44 = vunpack.c.l.bf16 %v1355_v63  ;;  %v8308_v11 = vld [vmem:[#allocation7_spill] sm:$0xff] }
 0x13c   : > { %v1168_v29 = vrot.slane %v1167_v24, 4  ;;  %v1373_v57 = vor.u32 %v8305_v10, %v8304_v18  ;;  %v1478_v33 = vunpack.c.l.bf16 %v1163_v3  ;;  %v1376_v7 = vshll.u32 %v7006_v62, 16  ;;  %v7017_v24 = vld [vmem:[%s5588_s20 + $0x50] sm:$0x1]  ;;  %v7022_v18 = vld [vmem:[%s5588_s20 + $0x4c] sm:$0xf] }
 0x13d   : > { %v1365_v35 = vsel %vm5616_vm2, %v1360_v6, %v1364_v32  ;;  %v1380_v8 = vshrl.u32 %v7006_v62, 16  ;;  %v4966_v1 = vunpack.i.l.bf16 %v8303_v47  ;;  %v1386_v32 = vshll.u32 %v6999_v22, 16 }
 0x13e   : > { %v1495_v56 = vunpack.c.l.bf16 %v1365_v35  ;;  %v1173_v17 = vsel %vm5616_vm2, %v1168_v29, %v1172_v16  ;;  %v1374_v41 = vrot.slane %v1373_v57, 4  ;;  %v1378_v63 = vrot.slane %v1376_v7, 5  ;;  %v7028_v7 = vpop.permute.xlu1 %5064 }
 0x13f   : > { %v1479_v58 = vunpack.c.l.bf16 %v1173_v17  ;;  %v1382_v28 = vrot.slane %v1380_v8, 4  ;;  %v1181_v6 = vor.u32 %v8308_v11, %v8307_v37  ;;  %v1184_v47 = vshll.u32 %v7022_v18, 16  ;;  %v8310_v11 = vld [vmem:[#allocation29_spill] sm:$0xff] }
 0x140   : > { %v5273_v3 = vpack.i.bf16 %v1495_v56, %v1494_v44  ;;  %v1188_v10 = vshrl.u32 %v7022_v18, 16  ;;  %v1379_v16 = vsel %vm5616_vm2, %v1374_v41, %v1378_v63  ;;  %v1388_v57 = vrot.slane %v1386_v32, 5  ;;  %v8309_v44 = vld [vmem:[#allocation34_spill] sm:$0xff]  ;;  %v8312_v32 = vld [vmem:[#allocation33_spill] sm:$0xff] }
 0x141   : > { %v5268_v35 = vpack.i.bf16 %v1479_v58, %v1478_v33  ;;  %v1383_v29 = vor.u32 %v1382_v28, %v1378_v63  ;;  %v4961_v8 = vunpack.i.l.bf16 %v8309_v44  ;;  %v1182_v56 = vrot.slane %v1181_v6, 4  ;;  %v8311_v33 = vld [vmem:[#allocation32_spill] sm:$0xff]  ;;  %v7042_v28 = vpop.permute.xlu0 %5059 }
 0x142   : > { %5274 = vrot.lane.b32.xlu1 %v5273_v3, %s5538_s24  ;;  %v1186_v17 = vrot.slane %v1184_v47, 5  ;;  %v1190_v37 = vrot.slane %v1188_v10, 4  ;;  %v7034_v39 = vsel %vm3571_vm7, %v8310_v11, %v4956_v23  ;;  %v7038_v41 = vsel %vm3571_vm7, %v8311_v33, %v4952_v42  ;;  %v4448_v10 = vld [vmem:[%s5588_s20 + $0x9c] sm:$0xe]  ;;  %v8313_v11 = vld [vmem:[#allocation35_spill] sm:$0xff] }
 0x143   : > { %5269 = vrot.lane.b32.xlu0 %v5268_v35, %s5538_s24  ;;  %v1384_v58 = vrot.slane %v1383_v29, 4  ;;  %v1194_v63 = vshll.u32 %v7017_v24, 16  ;;  %v7046_v3 = vsel %vm3571_vm7, %v8312_v32, %v4951_v34  ;;  %v1496_v6 = vunpack.c.l.bf16 %v1379_v16  ;;  %v8315_v16 = vld [vmem:[#allocation38_spill] sm:$0xff] }
 0x144   : > { %v1187_v23 = vsel %vm5616_vm2, %v1182_v56, %v1186_v17  ;;  %v1191_v47 = vor.u32 %v1190_v37, %v1186_v17  ;;  %v7053_v42 = vsel %vm3571_vm7, %v8313_v11, %v4967_v54  ;;  %v4962_v35 = vunpack.i.h.bf16 %v8309_v44 }
 0x145   : > { %v1389_v29 = vsel %vm5616_vm2, %v1384_v58, %v1388_v57  ;;  %v1196_v33 = vrot.slane %v1194_v63, 5  ;;  %v7061_v34 = vsel %vm3571_vm7, %v8314_v27, %v4966_v1  ;;  %v7065_v56 = vsel %vm3571_vm7, %v8315_v16, %v4961_v8  ;;  %v7069_v57 = vpop.permute.xlu1 %5074 }
 0x146   : > { %v1497_v17 = vunpack.c.l.bf16 %v1389_v29  ;;  %v1192_v37 = vrot.slane %v1191_v47, 4  ;;  %v1480_v32 = vunpack.c.l.bf16 %v1187_v23  ;;  %v4464_v54 = vrot.slane %v4448_v10, 9 }
 0x147   : > { %v1652_v11 = vrot.slane %v6950_v61, 5  ;;  %v1655_v44 = vrot.slane %v6931_v45, 5  ;;  %v4456_v1 = vrot.slane %v4440_v2, 9  ;;  %v1596_v63 = vrot.slane %v6967_v25, 5  ;;  %v7077_v61 = vpop.permute.xlu0 %5069  ;;  %v8316_v45 = vld [vmem:[#allocation37_spill] sm:$0xff] }
 0x148   : > { %v5283_v58 = vpack.i.bf16 %v1497_v17, %v1496_v6  ;;  %v1197_v27 = vsel %vm5616_vm2, %v1192_v37, %v1196_v33  ;;  %v1599_v10 = vrot.slane %v6959_v0, 5  ;;  %v7081_v29 = vsel %vm3571_vm7, %v8316_v45, %v4962_v35  ;;  %v4449_v33 = vld [vmem:[%s5588_s20 + $0xa8] sm:$0xe] }
 0x149   : > { %v1481_v8 = vunpack.c.l.bf16 %v1197_v27  ;;  %v1653_v47 = vsel %vm5828_vm5, %v4464_v54, %v1652_v11  ;;  %v1654_v23 = vrot.slane %v1652_v11, 4  ;;  %v1597_v25 = vsel %vm5828_vm5, %v4456_v1, %v1596_v63  ;;  %v8317_v37 = vld [vmem:[#allocation43_spill] sm:$0xff] }
 0x14a   : > { %5284 = vrot.lane.b32.xlu1 %v5283_v58, %s5538_s24  ;;  %v1734_v6 = vunpack.c.l.bf16 %v1653_v47  ;;  %v1598_v2 = vrot.slane %v1596_v63, 4  ;;  %v1718_v17 = vunpack.c.l.bf16 %v1597_v25  ;;  %v4997_v54 = vunpack.i.h.bf16 %v8317_v37  ;;  %v4441_v27 = vld [vmem:[%s5588_s20 + $0x48] sm:$0xe]  ;;  %v8318_v47 = vld [vmem:[#allocation44_spill] sm:$0xff] }
 0x14b   : > { %v5278_v16 = vpack.i.bf16 %v1481_v8, %v1480_v32  ;;  %v1656_v0 = vsel %vm5828_vm5, %v1654_v23, %v1655_v44  ;;  %v4996_v11 = vunpack.i.l.bf16 %v8317_v37  ;;  %v4991_v1 = vunpack.i.l.bf16 %v8318_v47  ;;  %v7097_v8 = vpop.permute.xlu1 %5084 }
 0x14c   : > { %v1735_v35 = vunpack.c.l.bf16 %v1656_v0  ;;  %v1600_v58 = vsel %vm5828_vm5, %v1598_v2, %v1599_v10  ;;  %v4465_v63 = vrot.slane %v4449_v33, 9  ;;  %v5007_v44 = vunpack.i.h.bf16 %v6810_v4 }
 0x14d   : > { %5279 = vrot.lane.b32.xlu0 %v5278_v16, %s5538_s24  ;;  %v1719_v32 = vunpack.c.l.bf16 %v1600_v58  ;;  %v1659_v25 = vrot.slane %v7006_v62, 5  ;;  %v1662_v0 = vrot.slane %v6999_v22, 5  ;;  %v5006_v10 = vunpack.i.l.bf16 %v6810_v4  ;;  %v7104_v16 = vpop.permute.xlu0 %5079  ;;  %v4492_v58 = vld [vmem:[%s5588_s20 + $0xa8] sm:$0xf] }
 0x14e   : > { %v5293_v23 = vpack.i.bf16 %v1735_v35, %v1734_v6  ;;  %v4457_v37 = vrot.slane %v4441_v27, 9  ;;  %v1603_v45 = vrot.slane %v7022_v18, 5  ;;  %v1606_v62 = vrot.slane %v7017_v24, 5  ;;  %v7117_v27 = vld [vmem:[%s5588_s20 + $0xac] sm:$0xf] }
 0x14f   : > { %v5288_v2 = vpack.i.bf16 %v1719_v32, %v1718_v17  ;;  %v1660_v33 = vsel %vm5828_vm5, %v4465_v63, %v1659_v25  ;;  %v1661_v6 = vrot.slane %v1659_v25, 4  ;;  %v5027_v22 = vunpack.i.h.bf16 %v6874_v60 }
 0x150   : > { %5294 = vrot.lane.b32.xlu1 %v5293_v23, %s5539_s25  ;;  %v1736_v4 = vunpack.c.l.bf16 %v1660_v33  ;;  %v1604_v17 = vsel %vm5828_vm5, %v4457_v37, %v1603_v45  ;;  %v1605_v35 = vrot.slane %v1603_v45, 4  ;;  %v5026_v18 = vunpack.i.l.bf16 %v6874_v60  ;;  %v7133_v37 = vpop.permute.xlu1 %5094 }
 0x151   : > { %5289 = vrot.lane.b32.xlu0 %v5288_v2, %s5539_s25  ;;  %v1663_v32 = vsel %vm5828_vm5, %v1661_v6, %v1662_v0  ;;  %v1720_v63 = vunpack.c.l.bf16 %v1604_v17  ;;  %v7123_v24 = vsel %vm3604_vm8, %v6895_v46, %v5027_v22  ;;  %v5022_v23 = vunpack.i.h.bf16 %v6891_v19  ;;  %v4476_v22 = vld [vmem:[%s5588_s20 + $0x48] sm:$0xf] }
 0x152   : > { %8319 = vst [vmem:[#allocation31_spill] sm:$0xff] %v7123_v24  ;;  %v1737_v25 = vunpack.c.l.bf16 %v1663_v32  ;;  %v1607_v45 = vsel %vm5828_vm5, %v1605_v35, %v1606_v62  ;;  %v7130_v60 = vsel %vm3604_vm8, %v6903_v9, %v5026_v18  ;;  %v5021_v2 = vunpack.i.l.bf16 %v6891_v19  ;;  %v7146_v18 = vld [vmem:[%s5588_s20 + $0x4c] sm:$0xf]  ;;  %v7148_v19 = vpop.permute.xlu0 %5089  ;;  %v8323_v32 = vld [vmem:[#allocation45_spill] sm:$0xff] }
 0x153   : > { %8320 = vst [vmem:[#allocation12_spill] sm:$0xff] %v7130_v60  ;;  %v1721_v0 = vunpack.c.l.bf16 %v1607_v45  ;;  %v7137_v46 = vsel %vm3604_vm8, %v6976_v12, %v5022_v23  ;;  %v1802_v33 = vunpack.c.l.bf16 %v4492_v58  ;;  %v1803_v6 = vunpack.c.l.bf16 %v7117_v27 }
 0x154   : > { %8321 = vst [vmem:[#allocation13_spill] sm:$0xff] %v7137_v46  ;;  %v5303_v17 = vpack.i.bf16 %v1737_v25, %v1736_v4  ;;  %v7143_v62 = vsel %vm3604_vm8, %v6981_v40, %v5021_v2  ;;  %v2115_v9 = vshrl.u32 %v4492_v58, 16  ;;  %v2118_v35 = vshll.u32 %v4492_v58, 16 }
 0x155   : > { %8322 = vst [vmem:[#allocation5_spill] sm:$0xff] %v7143_v62  ;;  %v7152_v45 = vsel %vm3604_vm8, %v8323_v32, %v4996_v11  ;;  %v7156_v12 = vsel %vm3604_vm8, %v6828_v51, %v4997_v54  ;;  %v5002_v4 = vunpack.i.h.bf16 %v6818_v48  ;;  %v5298_v23 = vpack.i.bf16 %v1721_v0, %v1720_v63 }
 0x156   : > { %v5001_v40 = vunpack.i.l.bf16 %v6818_v48  ;;  %5304 = vrot.lane.b32.xlu1 %v5303_v17, %s5539_s25  ;;  %v2117_v58 = vrot.slane %v2115_v9, 4  ;;  %v5313_v25 = vpack.i.bf16 %v1803_v6, %v1802_v33  ;;  %v1786_v2 = vunpack.c.l.bf16 %v4476_v22  ;;  %v4494_v6 = vld [vmem:[%s5588_s20 + $0xb4] sm:$0xf]  ;;  %v7186_v9 = vld [vmem:[%s5588_s20 + $0xb8] sm:$0xf] }
 0x157   : > { %5299 = vrot.lane.b32.xlu0 %v5298_v23, %s5539_s25  ;;  %v2120_v11 = vrot.slane %v2118_v35, 5  ;;  %v1787_v32 = vunpack.c.l.bf16 %v7146_v18  ;;  %v1923_v60 = vshrl.u32 %v4476_v22, 16  ;;  %v1926_v51 = vshll.u32 %v4476_v22, 16  ;;  %v7182_v22 = vpop.permute.xlu1 %5104 }
 0x158   : > { %v7165_v54 = vsel %vm3604_vm8, %v6834_v36, %v4991_v1  ;;  %v8324_v63 = vunpack.i.h.bf16 %v8318_v47  ;;  %v7175_v0 = vsel %vm3604_vm8, %v6849_v30, %v5006_v10  ;;  %v7179_v33 = vsel %vm3604_vm8, %v6845_v31, %v5007_v44  ;;  %v4478_v10 = vld [vmem:[%s5588_s20 + $0x54] sm:$0xf] }
 0x159   : > { %8325 = vst [vmem:[#allocation7_spill] sm:$0xff] %v7175_v0  ;;  %8326 = vst [vmem:[#allocation34_spill] sm:$0xff] %v7179_v33  ;;  %v2128_v36 = vshrl.u32 %v7117_v27, 16  ;;  %v1925_v1 = vrot.slane %v1923_v60, 4  ;;  %v1928_v47 = vrot.slane %v1926_v51, 5  ;;  %v5308_v17 = vpack.i.bf16 %v1787_v32, %v1786_v2  ;;  %v7200_v60 = vpop.permute.xlu0 %5099 }
 0x15a   : > { %v7171_v48 = vsel %vm3604_vm8, %v6838_v15, %v8324_v63  ;;  %v7190_v15 = vsel %vm3604_vm8, %v6886_v43, %v5001_v40  ;;  %v7194_v30 = vsel %vm3604_vm8, %v6882_v38, %v5002_v4  ;;  %v2124_v31 = vshll.u32 %v7117_v27, 16  ;;  %5314 = vrot.lane.b32.xlu1 %v5313_v25, %s5540_s26  ;;  %v7206_v2 = vld [vmem:[%s5588_s20 + $0x58] sm:$0xf] }
 0x15b   : > { %8327 = vst [vmem:[#allocation29_spill] sm:$0xff] %v7190_v15  ;;  %8328 = vst [vmem:[#allocation32_spill] sm:$0xff] %v7194_v30  ;;  %v2121_v35 = vor.u32 %v2120_v11, %v2117_v58  ;;  %v1936_v23 = vshrl.u32 %v7146_v18, 16  ;;  %5309 = vrot.lane.b32.xlu0 %v5308_v17, %s5540_s26  ;;  %v5037_v43 = vunpack.i.h.bf16 %v6910_v55  ;;  %v1804_v40 = vunpack.c.l.bf16 %v4494_v6 }
 0x15c   : > { %v1929_v38 = vor.u32 %v1928_v47, %v1925_v1  ;;  %v5036_v4 = vunpack.i.l.bf16 %v6910_v55  ;;  %v5032_v32 = vunpack.i.h.bf16 %v6921_v50  ;;  %v1805_v25 = vunpack.c.l.bf16 %v7186_v9  ;;  %v7214_v1 = vpop.permute.xlu1 %5114 }
 0x15d   : > { %v2130_v51 = vrot.slane %v2128_v36, 4  ;;  %v5031_v58 = vunpack.i.l.bf16 %v6921_v50  ;;  %v2139_v11 = vshrl.u32 %v4494_v6, 16  ;;  %v1788_v63 = vunpack.c.l.bf16 %v4478_v10  ;;  %v7222_v50 = vld [vmem:[%s5588_s20 + $0xb0] sm:$0x1] }
 0x15e   : > { %v1932_v17 = vshll.u32 %v7146_v18, 16  ;;  %v2142_v44 = vshll.u32 %v4494_v6, 16  ;;  %v5323_v24 = vpack.i.bf16 %v1805_v25, %v1804_v40  ;;  %v1789_v46 = vunpack.c.l.bf16 %v7206_v2  ;;  %v7236_v40 = vpop.permute.xlu0 %5109 }
 0x15f   : > { %v2122_v55 = vrot.slane %v2121_v35, 4  ;;  %v1938_v47 = vrot.slane %v1936_v23, 4  ;;  %v7219_v36 = vsel %vm3604_vm8, %v6991_v5, %v5037_v43  ;;  %v1930_v21 = vrot.slane %v1929_v38, 4  ;;  %v7234_v23 = vld [vmem:[%s5588_s20 + $0x50] sm:$0x1] }
 0x160   : > { %v7226_v0 = vsel %vm3604_vm8, %v7034_v39, %v5036_v4  ;;  %v7230_v6 = vsel %vm3604_vm8, %v7038_v41, %v5032_v32  ;;  %5324 = vrot.lane.b32.xlu1 %v5323_v24, %s5540_s26  ;;  %v5318_v35 = vpack.i.bf16 %v1789_v46, %v1788_v63  ;;  %v7240_v5 = vsel %vm3604_vm8, %v7046_v3, %v5031_v58 }
 0x161   : > { %v2141_v43 = vrot.slane %v2139_v11, 4  ;;  %v1947_v38 = vshrl.u32 %v4478_v10, 16  ;;  %v2126_v25 = vrot.slane %v2124_v31, 5  ;;  %v2144_v39 = vrot.slane %v2142_v44, 5 }
 0x162   : > { %v1950_v4 = vshll.u32 %v4478_v10, 16  ;;  %5319 = vrot.lane.b32.xlu0 %v5318_v35, %s5540_s26  ;;  %v2134_v41 = vshll.u32 %v7222_v50, 16  ;;  %v1934_v32 = vrot.slane %v1932_v17, 5  ;;  %v5047_v24 = vunpack.i.h.bf16 %v6963_v13  ;;  %v7251_v10 = vpop.permute.xlu1 %5124  ;;  %v7255_v15 = vpop.permute.xlu0 %5119 }
 0x163   : > { %v2127_v46 = vsel %vm5616_vm2, %v2122_v55, %v2126_v25  ;;  %v2131_v63 = vor.u32 %v2130_v51, %v2126_v25  ;;  %v1942_v62 = vshll.u32 %v7234_v23, 16  ;;  %v5046_v3 = vunpack.i.l.bf16 %v6963_v13 }
 0x164   : > { %v2136_v58 = vrot.slane %v2134_v41, 5  ;;  %v1935_v31 = vsel %vm5616_vm2, %v1930_v21, %v1934_v32  ;;  %v1939_v44 = vor.u32 %v1938_v47, %v1934_v32  ;;  %v1949_v11 = vrot.slane %v1947_v38, 4  ;;  %v7260_v47 = vld [vmem:[%s5588_s20 + $0xbc] sm:$0x1] }
 0x165   : > { %v2132_v35 = vrot.slane %v2131_v63, 4  ;;  %v1944_v33 = vrot.slane %v1942_v62, 5  ;;  %v1952_v30 = vrot.slane %v1950_v4, 5  ;;  %v5041_v51 = vunpack.i.l.bf16 %v6972_v52 }
 0x166   : > { %v2266_v55 = vunpack.c.l.bf16 %v2127_v46  ;;  %v1940_v25 = vrot.slane %v1939_v44, 4  ;;  %v2250_v21 = vunpack.c.l.bf16 %v1935_v31  ;;  %v2145_v41 = vor.u32 %v2144_v39, %v2141_v43  ;;  %v7279_v17 = vpop.permute.xlu1 %5134 }
 0x167   : > { %v2137_v13 = vsel %vm5616_vm2, %v2132_v35, %v2136_v58  ;;  %v2148_v38 = vshll.u32 %v7186_v9, 16  ;;  %v7265_v62 = vsel %vm3604_vm8, %v7061_v34, %v5046_v3  ;;  %v7269_v4 = vsel %vm3604_vm8, %v7053_v42, %v5047_v24  ;;  %v7276_v35 = vld [vmem:[%s5588_s20 + $0x5c] sm:$0x1] }
 0x168   : > { %v2267_v32 = vunpack.c.l.bf16 %v2137_v13  ;;  %v1945_v46 = vsel %vm5616_vm2, %v1940_v25, %v1944_v33  ;;  %v2146_v58 = vrot.slane %v2145_v41, 4  ;;  %v2152_v44 = vshrl.u32 %v7186_v9, 16 }
 0x169   : > { %v2251_v63 = vunpack.c.l.bf16 %v1945_v46  ;;  %v2150_v31 = vrot.slane %v2148_v38, 5  ;;  %v2158_v39 = vshll.u32 %v7260_v47, 16  ;;  %v1953_v34 = vor.u32 %v1952_v30, %v1949_v11  ;;  %v7285_v30 = vpop.permute.xlu0 %5129 }
 0x16a   : > { %v5333_v43 = vpack.i.bf16 %v2267_v32, %v2266_v55  ;;  %v1956_v3 = vshll.u32 %v7206_v2, 16  ;;  %v2154_v33 = vrot.slane %v2152_v44, 4  ;;  %v1960_v25 = vshrl.u32 %v7206_v2, 16 }
 0x16b   : > { %v5328_v42 = vpack.i.bf16 %v2251_v63, %v2250_v21  ;;  %v2151_v24 = vsel %vm5616_vm2, %v2146_v58, %v2150_v31  ;;  %v2160_v55 = vrot.slane %v2158_v39, 5  ;;  %v1954_v41 = vrot.slane %v1953_v34, 4  ;;  %v4528_v39 = vld [vmem:[%s5588_s20 + $0xa8] sm:$0xe] }
 0x16c   : > { %5334 = vrot.lane.b32.xlu1 %v5333_v43, %s5541_s27  ;;  %v2268_v13 = vunpack.c.l.bf16 %v2151_v24  ;;  %v1958_v38 = vrot.slane %v1956_v3, 5  ;;  %v2155_v11 = vor.u32 %v2154_v33, %v2150_v31  ;;  %v1962_v21 = vrot.slane %v1960_v25, 4  ;;  %v4520_v31 = vld [vmem:[%s5588_s20 + $0x48] sm:$0xe] }
 0x16d   : > { %5329 = vrot.lane.b32.xlu0 %v5328_v42, %s5541_s27  ;;  %v1966_v32 = vshll.u32 %v7276_v35, 16  ;;  %v5067_v46 = vunpack.i.h.bf16 %v7028_v7  ;;  %v5066_v58 = vunpack.i.l.bf16 %v7028_v7  ;;  %v5062_v44 = vunpack.i.h.bf16 %v7042_v28 }
 0x16e   : > { %v1959_v63 = vsel %vm5616_vm2, %v1954_v41, %v1958_v38  ;;  %v5061_v43 = vunpack.i.l.bf16 %v7042_v28  ;;  %v2156_v34 = vrot.slane %v2155_v11, 4  ;;  %v1963_v3 = vor.u32 %v1962_v21, %v1958_v38  ;;  %v7313_v41 = vpop.permute.xlu1 %5144 }
 0x16f   : > { %v1968_v24 = vrot.slane %v1966_v32, 5  ;;  %v2252_v42 = vunpack.c.l.bf16 %v1959_v63  ;;  %v7299_v33 = vsel %vm3604_vm8, %v6935_v59, %v5066_v58  ;;  %v7303_v25 = vsel %vm3604_vm8, %v6928_v20, %v5067_v46 }
 0x170   : > { %8329 = vst [vmem:[#allocation33_spill] sm:$0xff] %v7299_v33  ;;  %8330 = vst [vmem:[#allocation35_spill] sm:$0xff] %v7303_v25  ;;  %v7307_v7 = vsel %vm3604_vm8, %v6939_v53, %v5061_v43  ;;  %v7311_v28 = vsel %vm3604_vm8, %v6943_v49, %v5062_v44  ;;  %v2161_v38 = vsel %vm5616_vm2, %v2156_v34, %v2160_v55  ;;  %v1964_v11 = vrot.slane %v1963_v3, 4  ;;  %v7322_v49 = vpop.permute.xlu0 %5139  ;;  %v4442_v25 = vld [vmem:[%s5588_s20 + $0x54] sm:$0xe] }
 0x171   : > { %8331 = vst [vmem:[#allocation36_spill] sm:$0xff] %v7307_v7  ;;  %8332 = vst [vmem:[#allocation38_spill] sm:$0xff] %v7311_v28  ;;  %v4544_v59 = vrot.slane %v4528_v39, 9  ;;  %v8333_v21 = vrot.slane %v7117_v27, 5  ;;  %v2269_v20 = vunpack.c.l.bf16 %v2161_v38  ;;  %v2427_v46 = vrot.slane %v7222_v50, 5 }
 0x172   : > { %v4536_v53 = vrot.slane %v4520_v31, 9  ;;  %v8334_v63 = vrot.slane %v7146_v18, 5  ;;  %v1969_v44 = vsel %vm5616_vm2, %v1964_v11, %v1968_v24  ;;  %v2371_v39 = vrot.slane %v7234_v23, 5  ;;  %v4529_v23 = vld [vmem:[%s5588_s20 + $0xb4] sm:$0xe] }
 0x173   : > { %v2426_v32 = vrot.slane %v8333_v21, 4  ;;  %v8335_v55 = vmov %v8333_v21  ;;  %v5343_v50 = vpack.i.bf16 %v2269_v20, %v2268_v13  ;;  %v2253_v34 = vunpack.c.l.bf16 %v1969_v44 }
 0x174   : > { %v2370_v58 = vrot.slane %v8334_v63, 4  ;;  %v2425_v43 = vsel %vm5828_vm5, %v4544_v59, %v8335_v55  ;;  %v8336_v21 = vmov %v8334_v63  ;;  %v5077_v11 = vunpack.i.h.bf16 %v7069_v57  ;;  %v7344_v63 = vpop.permute.xlu1 %5154 }
 0x175   : > { %v2428_v3 = vsel %vm5828_vm5, %v2426_v32, %v2427_v46  ;;  %v2506_v31 = vunpack.c.l.bf16 %v2425_v43  ;;  %v2369_v24 = vsel %vm5828_vm5, %v4536_v53, %v8336_v21  ;;  %5344 = vrot.lane.b32.xlu1 %v5343_v50, %s5541_s27  ;;  %v5338_v13 = vpack.i.bf16 %v2253_v34, %v2252_v42  ;;  %v4521_v46 = vld [vmem:[%s5588_s20 + $0x54] sm:$0xe] }
 0x176   : > { %v2507_v38 = vunpack.c.l.bf16 %v2428_v3  ;;  %v2372_v27 = vsel %vm5828_vm5, %v2370_v58, %v2371_v39  ;;  %v2490_v59 = vunpack.c.l.bf16 %v2369_v24  ;;  %v5076_v32 = vunpack.i.l.bf16 %v7069_v57  ;;  %v7360_v39 = vpop.permute.xlu0 %5149 }
 0x177   : > { %v2491_v20 = vunpack.c.l.bf16 %v2372_v27  ;;  %v7350_v18 = vsel %vm3604_vm8, %v7065_v56, %v5041_v51  ;;  %v7354_v58 = vsel %vm3637_vm9, %v7156_v12, %v5077_v11  ;;  %v5071_v42 = vunpack.i.l.bf16 %v7077_v61  ;;  %5339 = vrot.lane.b32.xlu0 %v5338_v13, %s5541_s27 }
 0x178   : > { %v5353_v53 = vpack.i.bf16 %v2507_v38, %v2506_v31  ;;  %v5072_v57 = vunpack.i.h.bf16 %v7077_v61  ;;  %v4545_v55 = vrot.slane %v4529_v23, 9  ;;  %v2431_v43 = vrot.slane %v7186_v9, 5  ;;  %v7388_v27 = vpop.permute.xlu1 %5164 }
 0x179   : > { %v5348_v44 = vpack.i.bf16 %v2491_v20, %v2490_v59  ;;  %v7364_v56 = vsel %vm3637_vm9, %v7152_v45, %v5076_v32  ;;  %v7368_v12 = vsel %vm3637_vm9, %v7165_v54, %v5071_v42  ;;  %v2434_v51 = vrot.slane %v7260_v47, 5  ;;  %v7397_v59 = vld [vmem:[%s5588_s20 + $0x5c] sm:$0x1] }
 0x17a   : > { %v4537_v50 = vrot.slane %v4521_v46, 9  ;;  %5354 = vrot.lane.b32.xlu1 %v5353_v53, %s5542_s28  ;;  %v2432_v61 = vsel %vm5828_vm5, %v4545_v55, %v2431_v43  ;;  %v2433_v9 = vrot.slane %v2431_v43, 4  ;;  %v2375_v34 = vrot.slane %v7206_v2, 5  ;;  %v8337_v46 = vld [vmem:[#allocation6_spill] sm:$0xff]  ;;  %v7409_v42 = vpop.permute.xlu0 %5159  ;;  %v8339_v55 = vld [vmem:[#allocation3_spill] sm:$0xff] }
 0x17b   : > { %v2378_v3 = vrot.slane %v7276_v35, 5  ;;  %v2508_v45 = vunpack.c.l.bf16 %v2432_v61  ;;  %v5087_v31 = vunpack.i.h.bf16 %v7097_v8  ;;  %v5086_v54 = vunpack.i.l.bf16 %v7097_v8  ;;  %5349 = vrot.lane.b32.xlu0 %v5348_v44, %s5542_s28  ;;  %v7386_v35 = vld [vmem:[%s5588_s20 + $0xbc] sm:$0x1]  ;;  %v8342_v61 = vld [vmem:[#allocation18_spill] sm:$0xff] }
 0x17c   : > { %v5082_v47 = vunpack.i.h.bf16 %v7104_v16  ;;  %v2435_v38 = vsel %vm5828_vm5, %v2433_v9, %v2434_v51  ;;  %v2376_v21 = vsel %vm5828_vm5, %v4537_v50, %v2375_v34  ;;  %v2377_v24 = vrot.slane %v2375_v34, 4  ;;  %v8341_v50 = vld [vmem:[#allocation21_spill] sm:$0xff] }
 0x17d   : > { %v5081_v2 = vunpack.i.l.bf16 %v7104_v16  ;;  %v3639_v8 = vsel %vm3637_vm9, %v7171_v48, %v5072_v57  ;;  %v2509_v11 = vunpack.c.l.bf16 %v2435_v38  ;;  %v2492_v23 = vunpack.c.l.bf16 %v2376_v21  ;;  %v7426_v38 = vld [vmem:[%s5588_s20 + $0xc8] sm:$0x1]  ;;  %v8344_v21 = vld [vmem:[#allocation10_spill] sm:$0xff] }
 0x17e   : > { %v7394_v13 = vsel %vm3637_vm9, %v7226_v0, %v5086_v54  ;;  %v2379_v20 = vsel %vm5828_vm5, %v2377_v24, %v2378_v3  ;;  %v7403_v16 = vsel %vm3637_vm9, %v7219_v36, %v5087_v31  ;;  %v8338_v48 = vshll.u32 %v8337_v46, 16  ;;  %v8343_v31 = vld [vmem:[#allocation11_spill] sm:$0xff] }
 0x17f   : > { %v3654_v32 = vsel %vm3637_vm9, %v7240_v5, %v5081_v2  ;;  %v5363_v0 = vpack.i.bf16 %v2509_v11, %v2508_v45  ;;  %v2493_v44 = vunpack.c.l.bf16 %v2379_v20  ;;  %v1410_v57 = vshll.u32 %v7386_v35, 16  ;;  %v7429_v11 = vpop.permute.xlu1 %5174 }
 0x180   : > { %v1402_v53 = vrot.slane %v8338_v48, 5  ;;  %v8340_v43 = vshll.u32 %v8339_v55, 16  ;;  %v3655_v36 = vsel %vm3637_vm9, %v7230_v6, %v5082_v47  ;;  %v1218_v34 = vshll.u32 %v7397_v59, 16 }
 0x181   : > { %5364 = vrot.lane.b32.xlu1 %v5363_v0, %s5542_s28  ;;  %v5358_v3 = vpack.i.bf16 %v2493_v44, %v2492_v23  ;;  %v1412_v45 = vrot.slane %v1410_v57, 5  ;;  %v5097_v23 = vunpack.i.h.bf16 %v7133_v37  ;;  %v5096_v20 = vunpack.i.l.bf16 %v7133_v37  ;;  %v8345_v57 = vld [vmem:[#allocation4_spill] sm:$0xff] }
 0x182   : > { %v1210_v51 = vrot.slane %v8340_v43, 5  ;;  %v1403_v5 = vsel %vm5616_vm2, %v8341_v50, %v1402_v53  ;;  %v1407_v9 = vor.u32 %v8342_v61, %v1402_v53  ;;  %v1220_v2 = vrot.slane %v1218_v34, 5 }
 0x183   : > { %v1498_v47 = vunpack.c.l.bf16 %v1403_v5  ;;  %5359 = vrot.lane.b32.xlu0 %v5358_v3, %s5542_s28  ;;  %v5092_v48 = vunpack.i.h.bf16 %v7148_v19  ;;  %v5091_v53 = vunpack.i.l.bf16 %v7148_v19  ;;  %v8346_v43 = vshll.u32 %v8345_v57, 16  ;;  %v7441_v5 = vpop.permute.xlu0 %5169  ;;  %v7450_v19 = vld [vmem:[%s5588_s20 + $0x68] sm:$0x1] }
 0x184   : > { %v1211_v54 = vsel %vm5616_vm2, %v8343_v31, %v1210_v51  ;;  %v1408_v6 = vrot.slane %v1407_v9, 4  ;;  %v1215_v24 = vor.u32 %v8344_v21, %v1210_v51  ;;  %v1434_v50 = vshll.u32 %v7426_v38, 16  ;;  %v8347_v31 = vld [vmem:[#allocation17_spill] sm:$0xff] }
 0x185   : > { %v1426_v51 = vrot.slane %v8346_v43, 5  ;;  %v1482_v9 = vunpack.c.l.bf16 %v1211_v54  ;;  %v7444_v34 = vsel %vm3670_vm10, %v3654_v32, %v5096_v20  ;;  %v7447_v37 = vsel %vm3670_vm10, %v3655_v36, %v5097_v23  ;;  %v8348_v54 = vld [vmem:[#allocation16_spill] sm:$0xff]  ;;  %v7469_v43 = vpop.permute.xlu1 %5184 }
 0x186   : > { %v1413_v0 = vsel %vm5616_vm2, %v1408_v6, %v1412_v45  ;;  %v1216_v44 = vrot.slane %v1215_v24, 4  ;;  %v7456_v45 = vsel %vm3670_vm10, %v7368_v12, %v5091_v53  ;;  %v7463_v36 = vsel %vm3670_vm10, %v3639_v8, %v5092_v48  ;;  %v4450_v48 = vld [vmem:[%s5588_s20 + $0xb4] sm:$0xe] }
 0x187   : > { %v1499_v61 = vunpack.c.l.bf16 %v1413_v0  ;;  %v1427_v6 = vsel %vm5616_vm2, %v8347_v31, %v1426_v51  ;;  %v1431_v32 = vor.u32 %v8348_v54, %v1426_v51  ;;  %v1436_v23 = vrot.slane %v1434_v50, 5  ;;  %v8352_v54 = vld [vmem:[#allocation8_spill] sm:$0xff]  ;;  %v7482_v33 = vpop.permute.xlu0 %5179 }
 0x188   : > { %v1221_v3 = vsel %vm5616_vm2, %v1216_v44, %v1220_v2  ;;  %v8349_v2 = vld [vmem:[#allocation2_spill] sm:$0xff]  ;;  %v1242_v12 = vshll.u32 %v7450_v19, 16  ;;  %v5107_v53 = vunpack.i.h.bf16 %v7182_v22  ;;  %v5101_v8 = vunpack.i.l.bf16 %v7200_v60 }
 0x189   : > { %v5373_v21 = vpack.i.bf16 %v1499_v61, %v1498_v47  ;;  %v1483_v24 = vunpack.c.l.bf16 %v1221_v3  ;;  %v1432_v20 = vrot.slane %v1431_v32, 4  ;;  %v8350_v0 = vshll.u32 %v8349_v2, 16  ;;  %v8351_v3 = vld [vmem:[#allocation9_spill] sm:$0xff] }
 0x18a   : > { %v1500_v47 = vunpack.c.l.bf16 %v1427_v6  ;;  %v5106_v61 = vunpack.i.l.bf16 %v7182_v22 }
 0x18b   : > { %v1234_v44 = vrot.slane %v8350_v0, 5  ;;  %5374 = vrot.lane.b32.xlu1 %v5373_v21, %s5538_s24  ;;  %v5368_v51 = vpack.i.bf16 %v1483_v24, %v1482_v9  ;;  %v1437_v50 = vsel %vm5616_vm2, %v1432_v20, %v1436_v23  ;;  %v1244_v0 = vrot.slane %v1242_v12, 5 }
 0x18c   : > { %v1501_v9 = vunpack.c.l.bf16 %v1437_v50  ;;  %v7487_v6 = vsel %vm3670_vm10, %v7394_v13, %v5106_v61  ;;  %v5102_v21 = vunpack.i.h.bf16 %v7200_v60  ;;  %v7492_v23 = vsel %vm3670_vm10, %v7403_v16, %v5107_v53 }
 0x18d   : > { %v1235_v31 = vsel %vm5616_vm2, %v8351_v3, %v1234_v44  ;;  %v1239_v32 = vor.u32 %v8352_v54, %v1234_v44  ;;  %5369 = vrot.lane.b32.xlu0 %v5368_v51, %s5538_s24  ;;  %v7496_v20 = vsel %vm3670_vm10, %v7364_v56, %v5101_v8  ;;  %v4466_v44 = vrot.slane %v4450_v48, 9  ;;  %v4451_v54 = vld [vmem:[%s5588_s20 + $0xc0] sm:$0xe] }
 0x18e   : > { %v1484_v22 = vunpack.c.l.bf16 %v1235_v31  ;;  %v5383_v12 = vpack.i.bf16 %v1501_v9, %v1500_v47  ;;  %v8353_v51 = vrot.slane %v8337_v46, 5  ;;  %v1669_v13 = vrot.slane %v7386_v35, 5  ;;  %v7510_v47 = vpop.permute.xlu1 %5194  ;;  %v7522_v9 = vpop.permute.xlu0 %5189 }
 0x18f   : > { %v1240_v24 = vrot.slane %v1239_v32, 4  ;;  %v4458_v61 = vrot.slane %v4442_v25, 9  ;;  %v8355_v56 = vrot.slane %v8339_v55, 5  ;;  %v1613_v8 = vrot.slane %v7397_v59, 5 }
 0x190   : > { %v1668_v50 = vrot.slane %v8353_v51, 4  ;;  %v8354_v3 = vmov %v8353_v51  ;;  %5384 = vrot.lane.b32.xlu1 %v5383_v12, %s5538_s24  ;;  %v5117_v12 = vunpack.i.h.bf16 %v7214_v1  ;;  %v5116_v51 = vunpack.i.l.bf16 %v7214_v1 }
 0x191   : > { %v1245_v60 = vsel %vm5616_vm2, %v1240_v24, %v1244_v0  ;;  %v1667_v16 = vsel %vm5828_vm5, %v4466_v44, %v8354_v3  ;;  %v1612_v53 = vrot.slane %v8355_v56, 4  ;;  %v8356_v31 = vmov %v8355_v56 }
 0x192   : > { %v1485_v48 = vunpack.c.l.bf16 %v1245_v60  ;;  %v1670_v25 = vsel %vm5828_vm5, %v1668_v50, %v1669_v13  ;;  %v1738_v35 = vunpack.c.l.bf16 %v1667_v16  ;;  %v1611_v46 = vsel %vm5828_vm5, %v4458_v61, %v8356_v31  ;;  %v4443_v60 = vld [vmem:[%s5588_s20 + $0x60] sm:$0xe] }
 0x193   : > { %v1739_v32 = vunpack.c.l.bf16 %v1670_v25  ;;  %v1614_v59 = vsel %vm5828_vm5, %v1612_v53, %v1613_v8  ;;  %v1722_v0 = vunpack.c.l.bf16 %v1611_v46  ;;  %v5112_v50 = vunpack.i.h.bf16 %v7236_v40  ;;  %v7552_v8 = vpop.permute.xlu1 %5204 }
 0x194   : > { %v5378_v24 = vpack.i.bf16 %v1485_v48, %v1484_v22  ;;  %v1723_v44 = vunpack.c.l.bf16 %v1614_v59  ;;  %v5111_v13 = vunpack.i.l.bf16 %v7236_v40  ;;  %v4467_v61 = vrot.slane %v4451_v54, 9  ;;  %v4496_v54 = vld [vmem:[%s5588_s20 + $0xc0] sm:$0xf] }
 0x195   : > { %v5393_v55 = vpack.i.bf16 %v1739_v32, %v1738_v35  ;;  %v3674_v3 = vsel %vm3670_vm10, %v7354_v58, %v5102_v21  ;;  %v7534_v22 = vsel %vm3703_vm11, %v7444_v34, %v5116_v51  ;;  %v8357_v56 = vrot.slane %v8345_v57, 5  ;;  %v7566_v32 = vpop.permute.xlu0 %5199 }
 0x196   : > { %5379 = vrot.lane.b32.xlu0 %v5378_v24, %s5538_s24  ;;  %v5388_v16 = vpack.i.bf16 %v1723_v44, %v1722_v0  ;;  %v7541_v40 = vsel %vm3703_vm11, %v7447_v37, %v5117_v12  ;;  %v7545_v53 = vsel %vm3703_vm11, %v7456_v45, %v5111_v13  ;;  %v1676_v21 = vrot.slane %v7426_v38, 5  ;;  %v7577_v44 = vld [vmem:[%s5588_s20 + $0xc4] sm:$0xf] }
 0x197   : > { %v1675_v1 = vrot.slane %v8357_v56, 4  ;;  %5394 = vrot.lane.b32.xlu1 %v5393_v55, %s5539_s25  ;;  %v8358_v58 = vmov %v8357_v56  ;;  %v4459_v25 = vrot.slane %v4443_v60, 9  ;;  %v8359_v35 = vrot.slane %v8349_v2, 5  ;;  %v7586_v2 = vld [vmem:[%s5588_s20 + $0x64] sm:$0xf] }
 0x198   : > { %v1674_v34 = vsel %vm5828_vm5, %v4467_v61, %v8358_v58  ;;  %v1620_v31 = vrot.slane %v7450_v19, 5  ;;  %v7559_v45 = vsel %vm3703_vm11, %v7463_v36, %v5112_v50  ;;  %v5127_v38 = vunpack.i.h.bf16 %v7251_v10  ;;  %v4480_v50 = vld [vmem:[%s5588_s20 + $0x60] sm:$0xf]  ;;  %v7595_v58 = vpop.permute.xlu1 %5214 }
 0x199   : > { %v1740_v48 = vunpack.c.l.bf16 %v1674_v34  ;;  %v1619_v37 = vrot.slane %v8359_v35, 4  ;;  %v1677_v57 = vsel %vm5828_vm5, %v1675_v1, %v1676_v21  ;;  %v5126_v46 = vunpack.i.l.bf16 %v7251_v10 }
 0x19a   : > { %5389 = vrot.lane.b32.xlu0 %v5388_v16, %s5539_s25  ;;  %v1741_v59 = vunpack.c.l.bf16 %v1677_v57  ;;  %v8360_v19 = vmov %v8359_v35  ;;  %v5121_v24 = vunpack.i.l.bf16 %v7255_v15  ;;  %v5122_v55 = vunpack.i.h.bf16 %v7255_v15 }
 0x19b   : > { %v1618_v36 = vsel %vm5828_vm5, %v4459_v25, %v8360_v19  ;;  %v1621_v0 = vsel %vm5828_vm5, %v1619_v37, %v1620_v31  ;;  %v7581_v51 = vsel %vm3703_vm11, %v7487_v6, %v5126_v46  ;;  %v3723_v61 = vsel %vm3703_vm11, %v7492_v23, %v5127_v38  ;;  %v4498_v25 = vld [vmem:[%s5588_s20 + $0xcc] sm:$0xf]  ;;  %v7607_v46 = vld [vmem:[%s5588_s20 + $0x70] sm:$0xf] }
 0x19c   : > { %v1724_v12 = vunpack.c.l.bf16 %v1618_v36  ;;  %v1725_v10 = vunpack.c.l.bf16 %v1621_v0  ;;  %v5403_v13 = vpack.i.bf16 %v1741_v59, %v1740_v48  ;;  %v7592_v60 = vsel %vm3703_vm11, %v7496_v20, %v5121_v24  ;;  %v7601_v20 = vld [vmem:[%s5588_s20 + $0xd0] sm:$0xf]  ;;  %v4482_v38 = vld [vmem:[%s5588_s20 + $0x6c] sm:$0xf] }
 0x19d   : > { %v1806_v16 = vunpack.c.l.bf16 %v4496_v54  ;;  %v1807_v6 = vunpack.c.l.bf16 %v7577_v44  ;;  %v2163_v1 = vshrl.u32 %v4496_v54, 16  ;;  %v2166_v15 = vshll.u32 %v4496_v54, 16  ;;  %v7609_v54 = vpop.permute.xlu0 %5209 }
 0x19e   : > { %v5398_v56 = vpack.i.bf16 %v1725_v10, %v1724_v12  ;;  %5404 = vrot.lane.b32.xlu1 %v5403_v13, %s5539_s25  ;;  %v1790_v34 = vunpack.c.l.bf16 %v4480_v50  ;;  %v1791_v21 = vunpack.c.l.bf16 %v7586_v2  ;;  %v1971_v23 = vshrl.u32 %v4480_v50, 16 }
 0x19f   : > { %v1974_v48 = vshll.u32 %v4480_v50, 16  ;;  %v3707_v35 = vsel %vm3703_vm11, %v3674_v3, %v5122_v55  ;;  %v2165_v37 = vrot.slane %v2163_v1, 4  ;;  %v2168_v31 = vrot.slane %v2166_v15, 5 }
 0x1a0   : > { %5399 = vrot.lane.b32.xlu0 %v5398_v56, %s5539_s25  ;;  %v5413_v57 = vpack.i.bf16 %v1807_v6, %v1806_v16  ;;  %v1973_v59 = vrot.slane %v1971_v23, 4  ;;  %v5408_v36 = vpack.i.bf16 %v1791_v21, %v1790_v34  ;;  %v1808_v10 = vunpack.c.l.bf16 %v4498_v25  ;;  %v7619_v34 = vpop.permute.xlu1 %5224 }
 0x1a1   : > { %v1976_v19 = vrot.slane %v1974_v48, 5  ;;  %v1809_v3 = vunpack.c.l.bf16 %v7601_v20  ;;  %v2187_v55 = vshrl.u32 %v4498_v25, 16  ;;  %v2190_v50 = vshll.u32 %v4498_v25, 16  ;;  %8361 = vst [vmem:[#allocation37_spill] sm:$0xff] %v7619_v34  ;;  %v7627_v12 = vpop.permute.xlu0 %5219 }
 0x1a2   : > { %5414 = vrot.lane.b32.xlu1 %v5413_v57, %s5540_s26  ;;  %v1792_v13 = vunpack.c.l.bf16 %v4482_v38  ;;  %v1793_v16 = vunpack.c.l.bf16 %v7607_v46  ;;  %v1995_v1 = vshrl.u32 %v4482_v38, 16  ;;  %v1998_v15 = vshll.u32 %v4482_v38, 16  ;;  %v7623_v57 = vld [vmem:[%s5588_s20 + $0xc8] sm:$0x1]  ;;  %8362 = vst [vmem:[#allocation43_spill] sm:$0xff] %v7627_v12 }
 0x1a3   : > { %v5423_v6 = vpack.i.bf16 %v1809_v3, %v1808_v10  ;;  %v2189_v21 = vrot.slane %v2187_v55, 4  ;;  %v5147_v48 = vunpack.i.h.bf16 %v7313_v41  ;;  %v2192_v25 = vrot.slane %v2190_v50, 5 }
 0x1a4   : > { %5409 = vrot.lane.b32.xlu0 %v5408_v36, %s5540_s26  ;;  %v5418_v23 = vpack.i.bf16 %v1793_v16, %v1792_v13  ;;  %v1997_v0 = vrot.slane %v1995_v1, 4  ;;  %v5146_v24 = vunpack.i.l.bf16 %v7313_v41  ;;  %v5142_v36 = vunpack.i.h.bf16 %v7322_v49 }
 0x1a5   : > { %v2000_v38 = vrot.slane %v1998_v15, 5  ;;  %v5141_v10 = vunpack.i.l.bf16 %v7322_v49  ;;  %v2169_v3 = vor.u32 %v2168_v31, %v2165_v37  ;;  %v2172_v55 = vshll.u32 %v7577_v44, 16 }
 0x1a6   : > { %5424 = vrot.lane.b32.xlu1 %v5423_v6, %s5540_s26  ;;  %v7635_v50 = vsel %vm3736_vm12, %v7581_v51, %v5146_v24  ;;  %v7638_v41 = vsel %vm3736_vm12, %v3723_v61, %v5147_v48  ;;  %v2176_v13 = vshrl.u32 %v7577_v44, 16  ;;  %v2182_v16 = vshll.u32 %v7623_v57, 16  ;;  %v7643_v6 = vld [vmem:[%s5588_s20 + $0x68] sm:$0x1] }
 0x1a7   : > { %v7646_v49 = vsel %vm3736_vm12, %v3707_v35, %v5142_v36  ;;  %v2170_v37 = vrot.slane %v2169_v3, 4  ;;  %v2174_v31 = vrot.slane %v2172_v55, 5  ;;  %v1977_v1 = vor.u32 %v1976_v19, %v1973_v59 }
 0x1a8   : > { %5419 = vrot.lane.b32.xlu0 %v5418_v23, %s5540_s26  ;;  %v7650_v51 = vsel %vm3736_vm12, %v7592_v60, %v5141_v10  ;;  %v2178_v24 = vrot.slane %v2176_v13, 4  ;;  %v1980_v61 = vshll.u32 %v7586_v2, 16  ;;  %v1984_v15 = vshrl.u32 %v7586_v2, 16  ;;  %v7654_v23 = vpop.permute.xlu1 %5234  ;;  %v7661_v10 = vld [vmem:[%s5588_s20 + $0xd4] sm:$0x1]  ;;  %v7663_v13 = vpop.permute.xlu0 %5229 }
 0x1a9   : > { %8363 = vst [vmem:[#allocation44_spill] sm:$0xff] %v7654_v23  ;;  %v2175_v48 = vsel %vm5616_vm2, %v2170_v37, %v2174_v31  ;;  %v2184_v35 = vrot.slane %v2182_v16, 5  ;;  %v1978_v36 = vrot.slane %v1977_v1, 4  ;;  %v1990_v3 = vshll.u32 %v7643_v6, 16  ;;  %8364 = vst [vmem:[#allocation45_spill] sm:$0xff] %v7663_v13 }
 0x1aa   : > { %v2179_v55 = vor.u32 %v2178_v24, %v2174_v31  ;;  %v1982_v59 = vrot.slane %v1980_v61, 5  ;;  %v1986_v19 = vrot.slane %v1984_v15, 4  ;;  %v2270_v56 = vunpack.c.l.bf16 %v2175_v48 }
 0x1ab   : > { %v1992_v28 = vrot.slane %v1990_v3, 5  ;;  %v2193_v1 = vor.u32 %v2192_v25, %v2189_v21  ;;  %v2196_v61 = vshll.u32 %v7601_v20, 16  ;;  %v2200_v15 = vshrl.u32 %v7601_v20, 16  ;;  %v7677_v21 = vld [vmem:[%s5588_s20 + $0x74] sm:$0x1] }
 0x1ac   : > { %v2180_v37 = vrot.slane %v2179_v55, 4  ;;  %v1983_v16 = vsel %vm5616_vm2, %v1978_v36, %v1982_v59  ;;  %v1987_v31 = vor.u32 %v1986_v19, %v1982_v59  ;;  %v2206_v60 = vshll.u32 %v7661_v10, 16  ;;  %v7674_v55 = vpop.permute.xlu1 %5244 }
 0x1ad   : > { %v2254_v24 = vunpack.c.l.bf16 %v1983_v16  ;;  %v2194_v7 = vrot.slane %v2193_v1, 4  ;;  %v2001_v23 = vor.u32 %v2000_v38, %v1997_v0  ;;  %v2198_v36 = vrot.slane %v2196_v61, 5 }
 0x1ae   : > { %v2185_v48 = vsel %vm5616_vm2, %v2180_v37, %v2184_v35  ;;  %v1988_v3 = vrot.slane %v1987_v31, 4  ;;  %v2202_v12 = vrot.slane %v2200_v15, 4  ;;  %v2208_v59 = vrot.slane %v2206_v60, 5  ;;  %v7683_v35 = vpop.permute.xlu0 %5239 }
 0x1af   : > { %v2271_v13 = vunpack.c.l.bf16 %v2185_v48  ;;  %v2002_v19 = vrot.slane %v2001_v23, 4  ;;  %v2004_v16 = vshll.u32 %v7607_v46, 16  ;;  %v2008_v34 = vshrl.u32 %v7607_v46, 16 }
 0x1b0   : > { %v1993_v25 = vsel %vm5616_vm2, %v1988_v3, %v1992_v28  ;;  %v2199_v38 = vsel %vm5616_vm2, %v2194_v7, %v2198_v36  ;;  %v2203_v31 = vor.u32 %v2202_v12, %v2198_v36  ;;  %v5151_v60 = vunpack.i.l.bf16 %v7360_v39  ;;  %v4530_v36 = vld [vmem:[%s5588_s20 + $0xc0] sm:$0xe] }
 0x1b1   : > { %v5433_v37 = vpack.i.bf16 %v2271_v13, %v2270_v56  ;;  %v2255_v0 = vunpack.c.l.bf16 %v1993_v25  ;;  %v2006_v1 = vrot.slane %v2004_v16, 5  ;;  %v2010_v61 = vrot.slane %v2008_v34, 4  ;;  %v5470_v34 = vld [vmem:[%s8206_s1 + $0x10] ss:$0 sps:$4 sm:$0x33]   ;;  %v7698_v25 = vpop.permute.xlu1 %5254 }
 0x1b2   : > { %v2014_v28 = vshll.u32 %v7677_v21, 16  ;;  %v2204_v15 = vrot.slane %v2203_v31, 4  ;;  %v2272_v48 = vunpack.c.l.bf16 %v2199_v38  ;;  %v5167_v3 = vunpack.i.h.bf16 %v7388_v27  ;;  %v4522_v31 = vld [vmem:[%s5588_s20 + $0x60] sm:$0xe]  ;;  %4793 = vmatprep.subr.msk.bf16.mxu0 %vm3894_vm14, %v5470_v34  ;;  %4794 = vmatprep.subr.msk.bf16.mxu1 %vm3894_vm14, %v5470_v34 }
 0x1b3   : > { %5434 = vrot.lane.b32.xlu1 %v5433_v37, %s5541_s27  ;;  %v5428_v23 = vpack.i.bf16 %v2255_v0, %v2254_v24  ;;  %v2007_v56 = vsel %vm5616_vm2, %v2002_v19, %v2006_v1  ;;  %v2011_v7 = vor.u32 %v2010_v61, %v2006_v1  ;;  %v5166_v12 = vunpack.i.l.bf16 %v7388_v27  ;;  %v7710_v1 = vpop.permute.xlu0 %5249 }
 0x1b4   : > { %v2016_v13 = vrot.slane %v2014_v28, 5  ;;  %v2209_v24 = vsel %vm5616_vm2, %v2204_v15, %v2208_v59  ;;  %v2256_v16 = vunpack.c.l.bf16 %v2007_v56  ;;  %v5162_v19 = vunpack.i.h.bf16 %v7409_v42 }
 0x1b5   : > { %5429 = vrot.lane.b32.xlu0 %v5428_v23, %s5541_s27  ;;  %v2273_v37 = vunpack.c.l.bf16 %v2209_v24  ;;  %v2012_v0 = vrot.slane %v2011_v7, 4  ;;  %v7706_v27 = vsel %vm3769_vm13, %v7638_v41, %v5167_v3  ;;  %v5161_v38 = vunpack.i.l.bf16 %v7409_v42 }
 0x1b6   : > { %v7714_v61 = vsel %vm3769_vm13, %v7635_v50, %v5166_v12  ;;  %v7718_v59 = vsel %vm3769_vm13, %v7646_v49, %v5162_v19  ;;  %v4546_v28 = vrot.slane %v4530_v36, 9  ;;  %v2438_v50 = vrot.slane %v7577_v44, 5 }
 0x1b7   : > { %v5443_v23 = vpack.i.bf16 %v2273_v37, %v2272_v48  ;;  %v2017_v41 = vsel %vm5616_vm2, %v2012_v0, %v2016_v13  ;;  %v7724_v42 = vsel %vm3769_vm13, %v7650_v51, %v5161_v38  ;;  %v2441_v3 = vrot.slane %v7623_v57, 5  ;;  %v7737_v13 = vpop.permute.xlu1 %5264  ;;  %v7752_v0 = vpop.permute.xlu0 %5259 }
 0x1b8   : > { %v2257_v15 = vunpack.c.l.bf16 %v2017_v41  ;;  %v3803_v49 = vpack.c.bf16 %v7718_v59, %v7724_v42  ;;  %v4538_v48 = vrot.slane %v4522_v31, 9  ;;  %v2439_v26 = vsel %vm5828_vm5, %v4546_v28, %v2438_v50  ;;  %v4531_v42 = vld [vmem:[%s5588_s20 + $0xcc] sm:$0xe] }
 0x1b9   : > { %5444 = vrot.lane.b32.xlu1 %v5443_v23, %s5541_s27  ;;  %v2440_v51 = vrot.slane %v2438_v50, 4  ;;  %v2382_v56 = vrot.slane %v7586_v2, 5  ;;  %v2385_v7 = vrot.slane %v7643_v6, 5  ;;  %v2510_v12 = vunpack.c.l.bf16 %v2439_v26 }
 0x1ba   : > { %v5438_v44 = vpack.i.bf16 %v2257_v15, %v2256_v16  ;;  %v8365_v36 = vunpack.i.l.bf16 %v7285_v30  ;;  %v8366_v24 = vunpack.i.h.bf16 %v7285_v30  ;;  %v8367_v30 = vunpack.i.h.bf16 %v7360_v39 }
 0x1bb   : > { %v2442_v2 = vsel %vm5828_vm5, %v2440_v51, %v2441_v3  ;;  %v2383_v6 = vsel %vm5828_vm5, %v4538_v48, %v2382_v56  ;;  %v2384_v37 = vrot.slane %v2382_v56, 4  ;;  %v8368_v28 = vunpack.i.l.bf16 %v7279_v17  ;;  %v4523_v56 = vld [vmem:[%s5588_s20 + $0x6c] sm:$0xe] }
 0x1bc   : > { %v3737_v57 = vsel %vm3736_vm12, %v7545_v53, %v8365_v36  ;;  %v3738_v19 = vsel %vm3736_vm12, %v7559_v45, %v8366_v24  ;;  %5439 = vrot.lane.b32.xlu0 %v5438_v44, %s5541_s27  ;;  %v2511_v53 = vunpack.c.l.bf16 %v2442_v2  ;;  %v2494_v38 = vunpack.c.l.bf16 %v2383_v6 }
 0x1bd   : > { %v3770_v16 = vsel %vm3769_vm13, %v3737_v57, %v5151_v60  ;;  %v3771_v31 = vsel %vm3769_vm13, %v3738_v19, %v8367_v30  ;;  %v2386_v45 = vsel %vm5828_vm5, %v2384_v37, %v2385_v7  ;;  %v3753_v60 = vsel %vm3736_vm12, %v7534_v22, %v8368_v28  ;;  %v7780_v7 = vpop.permute.xlu1 %5274 }
 0x1be   : > { %v3802_v59 = vpack.c.bf16 %v3771_v31, %v3770_v16  ;;  %v8369_v23 = vunpack.i.h.bf16 %v7279_v17  ;;  %v5453_v39 = vpack.i.bf16 %v2511_v53, %v2510_v12  ;;  %v2495_v50 = vunpack.c.l.bf16 %v2386_v45  ;;  %v8374_v45 = vld [vmem:[#allocation32_spill] sm:$0xff] }
 0x1bf   : > { %v8370_v15 = vunpack.i.l.bf16 %v7344_v63  ;;  %v8371_v48 = vunpack.i.h.bf16 %v7344_v63  ;;  %v3896_v22 = vsel %vm3894_vm14, %v5470_v34, 0  ;;  %v5177_v17 = vunpack.i.h.bf16 %v7429_v11 }
 0x1c0   : > { %v3754_v41 = vsel %vm3736_vm12, %v7541_v40, %v8369_v23  ;;  %4755 = vmatprep.mubr.msk.bf16.mxu0 %vm3845_vm15, %v3802_v59  ;;  %v5176_v40 = vunpack.i.l.bf16 %v7429_v11  ;;  %v8372_v44 = vunpack.i.h.bf16 %v6972_v52  ;;  %v3811_v63 = vpack.c.bf16 %v7706_v27, %v7714_v61  ;;  %5454 = vrot.lane.b32.xlu1 %v5453_v39, %s5542_s28 }
 0x1c1   : > { %v3786_v3 = vsel %vm3769_vm13, %v3753_v60, %v8370_v15  ;;  %v3787_v26 = vsel %vm3769_vm13, %v3754_v41, %v8371_v48  ;;  %v5448_v36 = vpack.i.bf16 %v2495_v50, %v2494_v38  ;;  %4754 = vmatpush3.bf16.msra.mxu0 %v3896_v22  ;;  %v4547_v34 = vrot.slane %v4531_v42, 9  ;;  %4792 = vmatpush3.bf16.msra.mxu1 %v3896_v22  ;;  %v7815_v31 = vpop.permute.xlu1 %5284  ;;  %v8376_v22 = vld [vmem:[#allocation7_spill] sm:$0xff] }
 0x1c2   : > { %v3810_v51 = vpack.c.bf16 %v3787_v26, %v3786_v3  ;;  %v3626_v12 = vsel %vm3604_vm8, %v7081_v29, %v8372_v44  ;;  %v5172_v11 = vunpack.i.h.bf16 %v7441_v5  ;;  %v5171_v57 = vunpack.i.l.bf16 %v7441_v5  ;;  %v7794_v29 = vpop.permute.xlu0 %5269 }
 0x1c3   : > { %v2445_v52 = vrot.slane %v7601_v20, 5  ;;  %v2448_v24 = vrot.slane %v7661_v10, 5  ;;  %5449 = vrot.lane.b32.xlu0 %v5448_v36, %s5542_s28  ;;  %v3658_v27 = vsel %vm3637_vm9, %v7350_v18, %v5176_v40  ;;  %v3659_v61 = vsel %vm3637_vm9, %v3626_v12, %v5177_v17 }
 0x1c4   : > { %4771 = vmatprep.mubr.msk.bf16.mxu1 %vm3845_vm15, %v3810_v51  ;;  %v4539_v19 = vrot.slane %v4523_v56, 9  ;;  %v2389_v2 = vrot.slane %v7607_v46, 5  ;;  %v2392_v20 = vrot.slane %v7677_v21, 5  ;;  %4756 = vmatmul.mubr.msk.bf16.vlgmr.msra.gmra.mrb[0].mxu0 %vm3845_vm15, %v3803_v49  ;;  %v5187_v10 = vunpack.i.h.bf16 %v7469_v43  ;;  %v8373_v46 = vld [vmem:[#allocation29_spill] sm:$0xff] }
 0x1c5   : > { %v2446_v6 = vsel %vm5828_vm5, %v4547_v34, %v2445_v52  ;;  %v2447_v5 = vrot.slane %v2445_v52, 4  ;;  %4772 = vmatmul.mubr.msk.bf16.vlgmr.msra.gmra.mrb[0].mxu1 %vm3845_vm15, %v3811_v63  ;;  %v5186_v53 = vunpack.i.l.bf16 %v7469_v43  ;;  %v3642_v38 = vsel %vm3637_vm9, %v8373_v46, %v5171_v57  ;;  %v7847_v36 = vpop.permute.xlu1 %5294 }
 0x1c6   : > { %v2512_v37 = vunpack.c.l.bf16 %v2446_v6  ;;  %v2390_v16 = vsel %vm5828_vm5, %v4539_v19, %v2389_v2  ;;  %v2391_v18 = vrot.slane %v2389_v2, 4  ;;  %v5182_v49 = vunpack.i.h.bf16 %v7482_v33  ;;  %v7826_v50 = vpop.permute.xlu0 %5279 }
 0x1c7   : > { %v2449_v30 = vsel %vm5828_vm5, %v2447_v5, %v2448_v24  ;;  %v2496_v21 = vunpack.c.l.bf16 %v2390_v16  ;;  %v3643_v59 = vsel %vm3637_vm9, %v8374_v45, %v5172_v11  ;;  %v5181_v43 = vunpack.i.l.bf16 %v7482_v33  ;;  %v8375_v33 = vld [vmem:[#allocation34_spill] sm:$0xff]  ;;  %v8378_v5 = vld [vmem:[#allocation43_spill] sm:$0xff] }
 0x1c8   : > { %v2513_v28 = vunpack.c.l.bf16 %v2449_v30  ;;  %v2393_v60 = vsel %vm5828_vm5, %v2391_v18, %v2392_v20  ;;  %v3661_v41 = vsel %vm3637_vm9, %v7269_v4, %v5187_v10  ;;  %v5197_v42 = vunpack.i.h.bf16 %v7510_v47 }
 0x1c9   : > { %v2497_v23 = vunpack.c.l.bf16 %v2393_v60  ;;  %v5196_v39 = vunpack.i.l.bf16 %v7510_v47  ;;  %v3660_v3 = vsel %vm3637_vm9, %v7265_v62, %v5186_v53  ;;  %v5192_v48 = vunpack.i.h.bf16 %v7522_v9  ;;  %v7875_v60 = vpop.permute.xlu1 %5304 }
 0x1ca   : > { %v5463_v15 = vpack.i.bf16 %v2513_v28, %v2512_v37  ;;  %v5191_v14 = vunpack.i.l.bf16 %v7522_v9  ;;  %v3645_v51 = vsel %vm3637_vm9, %v8375_v33, %v5182_v49  ;;  %v3644_v4 = vsel %vm3637_vm9, %v8376_v22, %v5181_v43  ;;  %v7857_v19 = vpop.permute.xlu0 %5289  ;;  %v8379_v37 = vld [vmem:[#allocation44_spill] sm:$0xff] }
 0x1cb   : > { %v5458_v26 = vpack.i.bf16 %v2497_v23, %v2496_v21  ;;  %v5207_v17 = vunpack.i.h.bf16 %v7552_v8  ;;  %v3691_v47 = vsel %vm3670_vm10, %v3658_v27, %v5196_v39  ;;  %v3692_v40 = vsel %vm3670_vm10, %v3659_v61, %v5197_v42  ;;  %v8377_v27 = vld [vmem:[#allocation37_spill] sm:$0xff] }
 0x1cc   : > { %5464 = vrot.lane.b32.xlu1 %v5463_v15, %s5542_s28  ;;  %v5206_v62 = vunpack.i.l.bf16 %v7552_v8  ;;  %v5202_v56 = vunpack.i.h.bf16 %v7566_v32  ;;  %v3675_v9 = vsel %vm3670_vm10, %v3642_v38, %v5191_v14  ;;  %v5201_v44 = vunpack.i.l.bf16 %v7566_v32  ;;  %v8380_v38 = vld [vmem:[#allocation45_spill] sm:$0xff] }
 0x1cd   : > { %5459 = vrot.lane.b32.xlu0 %v5458_v26, %s5542_s28  ;;  %v5217_v12 = vunpack.i.h.bf16 %v7595_v58  ;;  %v5216_v63 = vunpack.i.l.bf16 %v7595_v58  ;;  %v3676_v34 = vsel %vm3670_vm10, %v3643_v59, %v5192_v48  ;;  %v3694_v11 = vsel %vm3670_vm10, %v3661_v41, %v5207_v17 }
 0x1ce   : > { %v5212_v8 = vunpack.i.h.bf16 %v7609_v54  ;;  %v5211_v57 = vunpack.i.l.bf16 %v7609_v54  ;;  %v3693_v52 = vsel %vm3670_vm10, %v3660_v3, %v5206_v62  ;;  %v3677_v24 = vsel %vm3670_vm10, %v3644_v4, %v5201_v44  ;;  %v7885_v14 = vpop.permute.xlu0 %5299 }
 0x1cf   : > { %v3678_v32 = vsel %vm3670_vm10, %v3645_v51, %v5202_v56  ;;  %v5227_v61 = vunpack.i.h.bf16 %v8377_v27  ;;  %v3724_v58 = vsel %vm3703_vm11, %v3691_v47, %v5216_v63  ;;  %v3725_v2 = vsel %vm3703_vm11, %v3692_v40, %v5217_v12  ;;  %v7901_v12 = vpop.permute.xlu1 %5314  ;;  %v5509_v63 = vld [vmem:[%s5588_s20 + $0x94] sm:$0xf] }
 0x1d0   : > { %v5226_v6 = vunpack.i.l.bf16 %v8377_v27  ;;  %v5222_v20 = vunpack.i.h.bf16 %v8378_v5  ;;  %v3708_v54 = vsel %vm3703_vm11, %v3675_v9, %v5211_v57  ;;  %v5221_v10 = vunpack.i.l.bf16 %v8378_v5 }
 0x1d1   : > { %v5237_v16 = vunpack.i.h.bf16 %v8379_v37  ;;  %v5236_v18 = vunpack.i.l.bf16 %v8379_v37  ;;  %v3709_v53 = vsel %vm3703_vm11, %v3676_v34, %v5212_v8  ;;  %v3727_v46 = vsel %vm3703_vm11, %v3694_v11, %v5227_v61  ;;  %v8382_v61 = vld [vmem:[#allocation14_spill] sm:$0xff] }
 0x1d2   : > { %v5232_v30 = vunpack.i.h.bf16 %v8380_v38  ;;  %v5231_v21 = vunpack.i.l.bf16 %v8380_v38  ;;  %v3726_v49 = vsel %vm3703_vm11, %v3693_v52, %v5226_v6  ;;  %v3710_v45 = vsel %vm3703_vm11, %v3677_v24, %v5221_v10 }
 0x1d3   : > { %v3711_v59 = vsel %vm3703_vm11, %v3678_v32, %v5222_v20  ;;  %v5247_v28 = vunpack.i.h.bf16 %v7674_v55  ;;  %v3757_v43 = vsel %vm3736_vm12, %v3724_v58, %v5236_v18  ;;  %v3758_v23 = vsel %vm3736_vm12, %v3725_v2, %v5237_v16  ;;  %v8384_v2 = vld [vmem:[#allocation22_spill] sm:$0xff]  ;;  %v5510_v20 = vld [vmem:[%s5588_s20 + $0x90] sm:$0xf]  ;;  %v8386_v16 = vld [vmem:[#allocation15_spill] sm:$0xff] }
 0x1d4   : > { %v3741_v41 = vsel %vm3736_vm12, %v3708_v54, %v5231_v21  ;;  %v5246_v42 = vunpack.i.l.bf16 %v7674_v55  ;;  %v3742_v39 = vsel %vm3736_vm12, %v3709_v53, %v5232_v30  ;;  %v5242_v15 = vunpack.i.h.bf16 %v7683_v35  ;;  %v8388_v53 = vld [vmem:[#allocation24_spill] sm:$0xff]  ;;  %v8390_v30 = vld [vmem:[#allocation26_spill] sm:$0xff] }
 0x1d5   : > { %v5257_v3 = vunpack.i.h.bf16 %v7698_v25  ;;  %v5256_v48 = vunpack.i.l.bf16 %v7698_v25  ;;  %v3760_v26 = vsel %vm3736_vm12, %v3727_v46, %v5247_v28  ;;  %v5241_v33 = vunpack.i.l.bf16 %v7683_v35 }
 0x1d6   : > { %v5252_v51 = vunpack.i.h.bf16 %v7710_v1  ;;  %v5251_v22 = vunpack.i.l.bf16 %v7710_v1  ;;  %v3759_v55 = vsel %vm3736_vm12, %v3726_v49, %v5246_v42  ;;  %v5267_v47 = vunpack.i.h.bf16 %v7737_v13  ;;  %v8395_v42 = vld [vmem:[#allocation19_spill] sm:$0xff] }
 0x1d7   : > { %v3790_v4 = vsel %vm3769_vm13, %v3757_v43, %v5256_v48  ;;  %v3791_v17 = vsel %vm3769_vm13, %v3758_v23, %v5257_v3  ;;  %v5266_v35 = vunpack.i.l.bf16 %v7737_v13  ;;  %v5262_v1 = vunpack.i.h.bf16 %v7752_v0  ;;  %v8381_v13 = vld [vmem:[#allocation20_spill] sm:$0xff]  ;;  %v8393_v43 = vld [vmem:[#allocation23_spill] sm:$0xff] }
 0x1d8   : > { %v3812_v25 = vpack.c.bf16 %v3791_v17, %v3790_v4  ;;  %v3774_v40 = vsel %vm3769_vm13, %v3741_v41, %v5251_v22  ;;  %v3775_v62 = vsel %vm3769_vm13, %v3742_v39, %v5252_v51  ;;  %v3793_v9 = vsel %vm3769_vm13, %v3760_v26, %v5267_v47 }
 0x1d9   : > { %v3804_v56 = vpack.c.bf16 %v3775_v62, %v3774_v40  ;;  %v5261_v44 = vunpack.i.l.bf16 %v7752_v0  ;;  %v253_v34 = vunpack.c.l.bf16 %v5509_v63  ;;  %v3743_v11 = vsel %vm3736_vm12, %v3710_v45, %v5241_v33  ;;  %v7912_v0 = vpop.permute.xlu0 %5309  ;;  %v8391_v45 = vld [vmem:[#allocation27_spill] sm:$0xff]  ;;  %v8399_v33 = vld [vmem:[#allocation41_spill] sm:$0xff]  ;;  %v8403_v40 = vld [vmem:[#allocation42_spill] sm:$0xff] }
 0x1da   : > { %v3744_v8 = vsel %vm3736_vm12, %v3711_v59, %v5242_v15  ;;  %v3792_v57 = vsel %vm3769_vm13, %v3759_v55, %v5266_v35  ;;  %4775 = vmatprep.mubr.msk.bf16.mxu1 %vm3845_vm15, %v3812_v25  ;;  %v4892_v52 = vunpack.i.h.bf16 %v8381_v13  ;;  %v8383_v58 = vunpack.i.l.bf16 %v8382_v61  ;;  %v8397_v15 = vld [vmem:[#allocation40_spill] sm:$0xff]  ;;  %v8401_v55 = vld [vmem:[#allocation39_spill] sm:$0xff]  ;;  %v7951_v35 = vpop.permute.xlu1 %5324 }
 0x1db   : > { %v3813_v24 = vpack.c.bf16 %v3793_v9, %v3792_v57  ;;  %v3776_v32 = vsel %vm3769_vm13, %v3743_v11, %v5261_v44  ;;  %v3777_v27 = vsel %vm3769_vm13, %v3744_v8, %v5262_v1  ;;  %4759 = vmatprep.mubr.msk.bf16.mxu0 %vm3845_vm15, %v3804_v56  ;;  %v8385_v6 = vunpack.c.l.bf16 %v8384_v2  ;;  %v8404_v1 = vld [vmem:[#allocation46_spill] sm:$0xff]  ;;  %v8405_v11 = vld [vmem:[#allocation25_spill] sm:$0xff] }
 0x1dc   : > { %v252_v54 = vunpack.c.l.bf16 %v5510_v20  ;;  %v4891_v10 = vunpack.i.l.bf16 %v8381_v13  ;;  %v3805_v37 = vpack.c.bf16 %v3777_v27, %v3776_v32  ;;  %v8387_v18 = vunpack.i.h.bf16 %v8386_v16  ;;  %v8406_v13 = vld [vmem:[#allocation47_spill] sm:$0xff] }
 0x1dd   : > { %v3549_v5 = vsel %vm3538_vm6, %v8385_v6, %v8383_v58  ;;  %v8389_v46 = vunpack.c.l.bf16 %v8388_v53  ;;  %v4937_v21 = vunpack.i.h.bf16 %v8390_v30  ;;  %v4936_v49 = vunpack.i.l.bf16 %v8390_v30  ;;  %4776 = vmatmul.mubr.msk.bf16.gmra.mrb[4].mxu1 %vm3845_vm15, %v3813_v24  ;;  %v7962_v24 = vpop.permute.xlu0 %5319  ;;  %v8407_v58 = vld [vmem:[#allocation28_spill] sm:$0xff] }
 0x1de   : > { %v4931_v59 = vunpack.i.l.bf16 %v8391_v45  ;;  %v8392_v28 = vunpack.i.l.bf16 %v8386_v16  ;;  %v8394_v23 = vunpack.c.l.bf16 %v8393_v43  ;;  %v8396_v39 = vunpack.i.h.bf16 %v8395_v42  ;;  %4760 = vmatmul.mubr.msk.bf16.gmra.mrb[4].mxu0 %vm3845_vm15, %v3805_v37 }
 0x1df   : > { %v3548_v38 = vsel %vm3538_vm6, %v8389_v46, %v8387_v18  ;;  %v8398_v3 = vunpack.c.l.bf16 %v8397_v15  ;;  %v4932_v26 = vunpack.i.h.bf16 %v8391_v45  ;;  %v4977_v51 = vunpack.i.h.bf16 %v8399_v33 }
 0x1e0   : > { %v3547_v41 = vsel %vm3538_vm6, %v8394_v23, %v8392_v28  ;;  %v8400_v22 = vunpack.i.l.bf16 %v8395_v42  ;;  %v8402_v4 = vunpack.c.l.bf16 %v8401_v55  ;;  %v3564_v47 = vsel %vm3538_vm6, %v253_v34, %v4892_v52 }
 0x1e1   : > { %v3566_v48 = vsel %vm3538_vm6, %v8398_v3, %v8396_v39  ;;  %v4976_v25 = vunpack.i.l.bf16 %v8399_v33  ;;  %v4972_v62 = vunpack.i.h.bf16 %v8403_v40  ;;  %v3563_v56 = vsel %vm3538_vm6, %v252_v54, %v4891_v10  ;;  %v8408_v54 = vld [vmem:[#allocation30_spill] sm:$0xff] }
 0x1e2   : > { %v3565_v17 = vsel %vm3538_vm6, %v8402_v4, %v8400_v22  ;;  %v4971_v9 = vunpack.i.l.bf16 %v8403_v40  ;;  %v5017_v44 = vunpack.i.h.bf16 %v8404_v1  ;;  %v5016_v63 = vunpack.i.l.bf16 %v8404_v1 }
 0x1e3   : > { %v3583_v8 = vsel %vm3571_vm7, %v8405_v11, %v4937_v21  ;;  %v3582_v57 = vsel %vm3571_vm7, %v3549_v5, %v4936_v49  ;;  %v3580_v34 = vsel %vm3571_vm7, %v3547_v41, %v4931_v59  ;;  %v5012_v52 = vunpack.i.h.bf16 %v8406_v13  ;;  %v5335_v49 = vpop.permute.xlu1 %5334 }
 0x1e4   : > { %v3581_v32 = vsel %vm3571_vm7, %v3548_v38, %v4932_v26  ;;  %v3599_v27 = vsel %vm3571_vm7, %v3566_v48, %v4977_v51  ;;  %v5011_v61 = vunpack.i.l.bf16 %v8406_v13  ;;  %v5057_v2 = vunpack.i.h.bf16 %v8407_v58 }
 0x1e5   : > { %v3598_v6 = vsel %vm3571_vm7, %v3565_v17, %v4976_v25  ;;  %v3597_v20 = vsel %vm3571_vm7, %v3564_v47, %v4972_v62  ;;  %v5056_v5 = vunpack.i.l.bf16 %v8407_v58  ;;  %v5051_v10 = vunpack.i.l.bf16 %v8408_v54 }
 0x1e6   : > { %v3596_v37 = vsel %vm3571_vm7, %v3563_v56, %v4971_v9  ;;  %v7974_v16 = vsel %vm3604_vm8, %v3582_v57, %v5016_v63  ;;  %v3616_v18 = vsel %vm3604_vm8, %v3583_v8, %v5017_v44  ;;  %v5052_v53 = vunpack.i.h.bf16 %v8408_v54 }
 0x1e7   : > { %v3614_v46 = vsel %vm3604_vm8, %v3581_v32, %v5012_v52  ;;  %v5277_v38 = vunpack.i.h.bf16 %v7780_v7  ;;  %v5276_v30 = vunpack.i.l.bf16 %v7780_v7  ;;  %v5272_v21 = vunpack.i.h.bf16 %v7794_v29  ;;  %v5330_v7 = vpop.permute.xlu0 %5329  ;;  %v5345_v62 = vpop.permute.xlu1 %5344 }
 0x1e8   : > { %v3613_v45 = vsel %vm3604_vm8, %v3580_v34, %v5011_v61  ;;  %v3632_v59 = vsel %vm3604_vm8, %v3599_v27, %v5057_v2  ;;  %v5271_v28 = vunpack.i.l.bf16 %v7794_v29  ;;  %v5286_v43 = vunpack.i.l.bf16 %v7815_v31 }
 0x1e9   : > { %v3631_v23 = vsel %vm3604_vm8, %v3598_v6, %v5056_v5  ;;  %v3629_v41 = vsel %vm3604_vm8, %v3596_v37, %v5051_v10  ;;  %v5287_v42 = vunpack.i.h.bf16 %v7815_v31  ;;  %v5282_v39 = vunpack.i.h.bf16 %v7826_v50 }
 0x1ea   : > { %v3630_v15 = vsel %vm3604_vm8, %v3597_v20, %v5052_v53  ;;  %v5297_v3 = vunpack.i.h.bf16 %v7847_v36  ;;  %v5296_v48 = vunpack.i.l.bf16 %v7847_v36  ;;  %v5292_v26 = vunpack.i.h.bf16 %v7857_v19 }
 0x1eb   : > { %v3662_v29 = vsel %vm3637_vm9, %v3629_v41, %v5276_v30  ;;  %v3663_v33 = vsel %vm3637_vm9, %v3630_v15, %v5277_v38  ;;  %v3647_v51 = vsel %vm3637_vm9, %v3614_v46, %v5272_v21  ;;  %v5291_v22 = vunpack.i.l.bf16 %v7857_v19  ;;  %v5340_v8 = vpop.permute.xlu0 %5339 }
 0x1ec   : > { %v3646_v31 = vsel %vm3637_vm9, %v3613_v45, %v5271_v28  ;;  %v3664_v55 = vsel %vm3637_vm9, %v3631_v23, %v5286_v43  ;;  %v5281_v4 = vunpack.i.l.bf16 %v7826_v50  ;;  %v5316_v17 = vunpack.i.l.bf16 %v7901_v12  ;;  %v5355_v61 = vpop.permute.xlu1 %5354 }
 0x1ed   : > { %v3665_v36 = vsel %vm3637_vm9, %v3632_v59, %v5287_v42  ;;  %v3649_v47 = vsel %vm3637_vm9, %v3616_v18, %v5282_v39  ;;  %v5317_v25 = vunpack.i.h.bf16 %v7901_v12  ;;  %v5312_v40 = vunpack.i.h.bf16 %v7912_v0 }
 0x1ee   : > { %v3695_v56 = vsel %vm3670_vm10, %v3662_v29, %v5296_v48  ;;  %v3696_v19 = vsel %vm3670_vm10, %v3663_v33, %v5297_v3  ;;  %v3680_v9 = vsel %vm3670_vm10, %v3647_v51, %v5292_v26  ;;  %v5311_v1 = vunpack.i.l.bf16 %v7912_v0 }
 0x1ef   : > { %v3679_v50 = vsel %vm3670_vm10, %v3646_v31, %v5291_v22  ;;  %v5307_v44 = vunpack.i.h.bf16 %v7875_v60  ;;  %v5337_v63 = vunpack.i.h.bf16 %v5335_v49  ;;  %v5336_v11 = vunpack.i.l.bf16 %v5335_v49  ;;  %v5350_v10 = vpop.permute.xlu0 %5349 }
 0x1f0   : > { %v5306_v12 = vunpack.i.l.bf16 %v7875_v60  ;;  %v5302_v57 = vunpack.i.h.bf16 %v7885_v14  ;;  %v5301_v34 = vunpack.i.l.bf16 %v7885_v14  ;;  %v3728_v13 = vsel %vm3703_vm11, %v3695_v56, %v5316_v17 }
 0x1f1   : > { %v3729_v52 = vsel %vm3703_vm11, %v3696_v19, %v5317_v25  ;;  %v3713_v32 = vsel %vm3703_vm11, %v3680_v9, %v5312_v40  ;;  %v5332_v0 = vunpack.i.h.bf16 %v5330_v7  ;;  %v5331_v27 = vunpack.i.l.bf16 %v5330_v7 }
 0x1f2   : > { %v3712_v58 = vsel %vm3703_vm11, %v3679_v50, %v5311_v1  ;;  %v5327_v2 = vunpack.i.h.bf16 %v7951_v35  ;;  %v5357_v6 = vunpack.i.h.bf16 %v5355_v61  ;;  %v5356_v20 = vunpack.i.l.bf16 %v5355_v61 }
 0x1f3   : > { %v5326_v60 = vunpack.i.l.bf16 %v7951_v35  ;;  %v5322_v5 = vunpack.i.h.bf16 %v7962_v24  ;;  %v3761_v14 = vsel %vm3736_vm12, %v3728_v13, %v5336_v11  ;;  %v3762_v54 = vsel %vm3736_vm12, %v3729_v52, %v5337_v63  ;;  %v5365_v3 = vpop.permute.xlu1 %5364 }
 0x1f4   : > { %v3794_v37 = vsel %vm3769_vm13, %v3761_v14, %v5356_v20  ;;  %v3795_v18 = vsel %vm3769_vm13, %v3762_v54, %v5357_v6  ;;  %v5352_v53 = vunpack.i.h.bf16 %v5350_v10  ;;  %v5351_v46 = vunpack.i.l.bf16 %v5350_v10  ;;  %v8410_v14 = vld [vmem:[#allocation38_spill] sm:$0xff] }
 0x1f5   : > { %v5321_v38 = vunpack.i.l.bf16 %v7962_v24  ;;  %v3745_v30 = vsel %vm3736_vm12, %v3712_v58, %v5331_v27  ;;  %v3746_v21 = vsel %vm3736_vm12, %v3713_v32, %v5332_v0  ;;  %v3814_v35 = vpack.c.bf16 %v3795_v18, %v3794_v37  ;;  %v8411_v18 = vld [vmem:[#allocation5_spill] sm:$0xff] }
 0x1f6   : > { %v5347_v49 = vunpack.i.h.bf16 %v5345_v62  ;;  %v5346_v45 = vunpack.i.l.bf16 %v5345_v62  ;;  %v3778_v59 = vsel %vm3769_vm13, %v3745_v30, %v5351_v46  ;;  %v3779_v28 = vsel %vm3769_vm13, %v3746_v21, %v5352_v53  ;;  %v8412_v46 = vld [vmem:[#allocation13_spill] sm:$0xff] }
 0x1f7   : > { %v3648_v43 = vsel %vm3637_vm9, %v7974_v16, %v5281_v4  ;;  %v3697_v23 = vsel %vm3670_vm10, %v3664_v55, %v5306_v12  ;;  %v3698_v41 = vsel %vm3670_vm10, %v3665_v36, %v5307_v44  ;;  %v3806_v42 = vpack.c.bf16 %v3779_v28, %v3778_v59  ;;  %4779 = vmatprep.mubr.msk.bf16.mxu1 %vm3845_vm15, %v3814_v35  ;;  %v5360_v55 = vpop.permute.xlu0 %5359 }
 0x1f8   : > { %v3681_v24 = vsel %vm3670_vm10, %v3648_v43, %v5301_v34  ;;  %v3682_v39 = vsel %vm3670_vm10, %v3649_v47, %v5302_v57  ;;  %v5342_v7 = vunpack.i.h.bf16 %v5340_v8  ;;  %v5341_v15 = vunpack.i.l.bf16 %v5340_v8 }
 0x1f9   : > { %v3730_v48 = vsel %vm3703_vm11, %v3697_v23, %v5326_v60  ;;  %v3731_v26 = vsel %vm3703_vm11, %v3698_v41, %v5327_v2  ;;  %v5367_v29 = vunpack.i.h.bf16 %v5365_v3  ;;  %v5366_v16 = vunpack.i.l.bf16 %v5365_v3  ;;  %4763 = vmatprep.mubr.msk.bf16.mxu0 %vm3845_vm15, %v3806_v42  ;;  %v8409_v60 = vld [vmem:[#allocation36_spill] sm:$0xff] }
 0x1fa   : > { %v3714_v33 = vsel %vm3703_vm11, %v3681_v24, %v5321_v38  ;;  %v3715_v51 = vsel %vm3703_vm11, %v3682_v39, %v5322_v5  ;;  %v3763_v22 = vsel %vm3736_vm12, %v3730_v48, %v5346_v45  ;;  %v3764_v31 = vsel %vm3736_vm12, %v3731_v26, %v5347_v49 }
 0x1fb   : > { %v3796_v4 = vsel %vm3769_vm13, %v3763_v22, %v5366_v16  ;;  %v3797_v17 = vsel %vm3769_vm13, %v3764_v31, %v5367_v29  ;;  %v5362_v36 = vunpack.i.h.bf16 %v5360_v55  ;;  %v5361_v47 = vunpack.i.l.bf16 %v5360_v55 }
 0x1fc   : > { %v3747_v25 = vsel %vm3736_vm12, %v3714_v33, %v5341_v15  ;;  %v3748_v40 = vsel %vm3736_vm12, %v3715_v51, %v5342_v7  ;;  %v3815_v62 = vpack.c.bf16 %v3797_v17, %v3796_v4 }
 0x1fd   : > { %v3780_v56 = vsel %vm3769_vm13, %v3747_v25, %v5361_v47  ;;  %v3781_v19 = vsel %vm3769_vm13, %v3748_v40, %v5362_v36  ;;  %v5375_v1 = vpop.permute.xlu1 %5374 }
 0x1fe   : > { %v3807_v9 = vpack.c.bf16 %v3781_v19, %v3780_v56  ;;  %4780 = vmatmul.mubr.msk.bf16.gmra.mrb[8].mxu1 %vm3845_vm15, %v3815_v62  ;;  %v5377_v61 = vunpack.i.h.bf16 %v5375_v1  ;;  %v5376_v58 = vunpack.i.l.bf16 %v5375_v1 }
 0x1ff   : > { %v5370_v50 = vpop.permute.xlu0 %5369 }
 0x200   : > { %4764 = vmatmul.mubr.msk.bf16.gmra.mrb[8].mxu0 %vm3845_vm15, %v3807_v9  ;;  %v5372_v2 = vunpack.i.h.bf16 %v5370_v50  ;;  %v5371_v6 = vunpack.i.l.bf16 %v5370_v50  ;;  %v3666_v5 = vsel %vm3637_vm9, %v8409_v60, %v5376_v58  ;;  %v3667_v54 = vsel %vm3637_vm9, %v8410_v14, %v5377_v61  ;;  %v8413_v61 = vld [vmem:[#allocation33_spill] sm:$0xff]  ;;  %v8416_v14 = vld [vmem:[#allocation12_spill] sm:$0xff] }
 0x202   : > { %v8053_v44 = vpop.permute.xlu1 %5384  ;;  %v3650_v53 = vsel %vm3637_vm9, %v8411_v18, %v5371_v6  ;;  %v3651_v38 = vsel %vm3637_vm9, %v8412_v46, %v5372_v2  ;;  %v8414_v2 = vld [vmem:[#allocation35_spill] sm:$0xff] }
 0x203   : > { %v5387_v49 = vunpack.i.h.bf16 %v8053_v44  ;;  %v5386_v45 = vunpack.i.l.bf16 %v8053_v44 }
 0x205   : > { %v3668_v58 = vsel %vm3637_vm9, %v8413_v61, %v5386_v45 }
 0x208   : > { %v8055_v63 = vpop.permute.xlu0 %5379 }
 0x209   : > { %v5395_v11 = vpop.permute.xlu1 %5394  ;;  %v5382_v24 = vunpack.i.h.bf16 %v8055_v63  ;;  %v5381_v39 = vunpack.i.l.bf16 %v8055_v63 }
 0x20a   : > { %v5397_v10 = vunpack.i.h.bf16 %v5395_v11  ;;  %v5396_v37 = vunpack.i.l.bf16 %v5395_v11 }
 0x20c   : > { %v5390_v8 = vpop.permute.xlu0 %5389  ;;  %v3699_v7 = vsel %vm3670_vm10, %v3666_v5, %v5396_v37  ;;  %v3700_v15 = vsel %vm3670_vm10, %v3667_v54, %v5397_v10  ;;  %v8415_v5 = vld [vmem:[#allocation31_spill] sm:$0xff]  ;;  %v3652_v54 = vsel %vm3637_vm9, %v8416_v14, %v5381_v39 }
 0x20d   : > { %v5392_v30 = vunpack.i.h.bf16 %v5390_v8  ;;  %v5391_v21 = vunpack.i.l.bf16 %v5390_v8 }
 0x20f   : > { %v3683_v3 = vsel %vm3670_vm10, %v3650_v53, %v5391_v21  ;;  %v3684_v48 = vsel %vm3670_vm10, %v3651_v38, %v5392_v30 }
 0x210   : > { %v8057_v12 = vpop.permute.xlu1 %5404 }
 0x211   : > { %v5407_v19 = vunpack.i.h.bf16 %v8057_v12  ;;  %v5406_v44 = vunpack.i.l.bf16 %v8057_v12  ;;  %v3669_v12 = vsel %vm3637_vm9, %v8414_v2, %v5387_v49 }
 0x212   : > { %v8059_v57 = vpop.permute.xlu0 %5399 }
 0x213   : > { %v5402_v63 = vunpack.i.h.bf16 %v8059_v57  ;;  %v3701_v37 = vsel %vm3670_vm10, %v3668_v58, %v5406_v44  ;;  %v3702_v18 = vsel %vm3670_vm10, %v3669_v12, %v5407_v19 }
 0x214   : > { %v5415_v34 = vpop.permute.xlu1 %5414 }
 0x215   : > { %v5417_v59 = vunpack.i.h.bf16 %v5415_v34  ;;  %v5416_v28 = vunpack.i.l.bf16 %v5415_v34  ;;  %v5401_v34 = vunpack.i.l.bf16 %v8059_v57  ;;  %v3653_v57 = vsel %vm3637_vm9, %v8415_v5, %v5382_v24 }
 0x216   : > { %v5410_v13 = vpop.permute.xlu0 %5409  ;;  %v3686_v38 = vsel %vm3670_vm10, %v3653_v57, %v5402_v63 }
 0x217   : > { %v5412_v43 = vunpack.i.h.bf16 %v5410_v13  ;;  %v5411_v23 = vunpack.i.l.bf16 %v5410_v13  ;;  %v3732_v33 = vsel %vm3703_vm11, %v3699_v7, %v5416_v28  ;;  %v3733_v51 = vsel %vm3703_vm11, %v3700_v15, %v5417_v59 }
 0x218   : > { %v8061_v52 = vpop.permute.xlu1 %5424  ;;  %v3685_v46 = vsel %vm3670_vm10, %v3652_v54, %v5401_v34 }
 0x219   : > { %v3716_v55 = vsel %vm3703_vm11, %v3683_v3, %v5411_v23  ;;  %v3717_v4 = vsel %vm3703_vm11, %v3684_v48, %v5412_v43  ;;  %v5427_v13 = vunpack.i.h.bf16 %v8061_v52 }
 0x21a   : > { %v8063_v32 = vpop.permute.xlu0 %5419 }
 0x21b   : > { %v5422_v6 = vunpack.i.h.bf16 %v8063_v32  ;;  %v5421_v60 = vunpack.i.l.bf16 %v8063_v32  ;;  %v3735_v21 = vsel %vm3703_vm11, %v3702_v18, %v5427_v13 }
 0x21d   : > { %v3719_v45 = vsel %vm3703_vm11, %v3686_v38, %v5422_v6 }
 0x225   : > { %v5435_v0 = vpop.permute.xlu1 %5434 }
 0x226   : > { %v5437_v41 = vunpack.i.h.bf16 %v5435_v0  ;;  %v5436_v42 = vunpack.i.l.bf16 %v5435_v0  ;;  %v5426_v0 = vunpack.i.l.bf16 %v8061_v52 }
 0x227   : > { %v5430_v27 = vpop.permute.xlu0 %5429 }
 0x228   : > { %v5432_v26 = vunpack.i.h.bf16 %v5430_v27  ;;  %v5431_v29 = vunpack.i.l.bf16 %v5430_v27  ;;  %v3765_v17 = vsel %vm3736_vm12, %v3732_v33, %v5436_v42  ;;  %v3766_v36 = vsel %vm3736_vm12, %v3733_v51, %v5437_v41 }
 0x229   : > { %v3734_v30 = vsel %vm3703_vm11, %v3701_v37, %v5426_v0 }
 0x22a   : > { %v3749_v9 = vsel %vm3736_vm12, %v3716_v55, %v5431_v29  ;;  %v3750_v1 = vsel %vm3736_vm12, %v3717_v4, %v5432_v26 }
 0x22b   : > { %v8065_v20 = vpop.permute.xlu1 %5444 }
 0x22c   : > { %v5447_v52 = vunpack.i.h.bf16 %v8065_v20  ;;  %v5446_v10 = vunpack.i.l.bf16 %v8065_v20  ;;  %v3718_v20 = vsel %vm3703_vm11, %v3685_v46, %v5421_v60 }
 0x22e   : > { %v8075_v35 = vpop.permute.xlu0 %5439  ;;  %v3767_v23 = vsel %vm3736_vm12, %v3734_v30, %v5446_v10 }
 0x22f   : > { %v5442_v53 = vunpack.i.h.bf16 %v8075_v35  ;;  %v5441_v32 = vunpack.i.l.bf16 %v8075_v35  ;;  %v3768_v35 = vsel %vm3736_vm12, %v3735_v21, %v5447_v52 }
 0x231   : > { %v3751_v24 = vsel %vm3736_vm12, %v3718_v20, %v5441_v32  ;;  %v3752_v39 = vsel %vm3736_vm12, %v3719_v45, %v5442_v53 }
 0x232   : > { %v5455_v16 = vpop.permute.xlu1 %5454 }
 0x233   : > { %v5457_v22 = vunpack.i.h.bf16 %v5455_v16  ;;  %v5456_v31 = vunpack.i.l.bf16 %v5455_v16  ;;  %v8141_v16 = vld [vmem:[%s8207_s2] ss:$0 sm:$0xff] }
 0x235   : > { %v5450_v47 = vpop.permute.xlu0 %5449  ;;  %v3798_v25 = vsel %vm3769_vm13, %v3765_v17, %v5456_v31  ;;  %v3799_v40 = vsel %vm3769_vm13, %v3766_v36, %v5457_v22 }
 0x236   : > { %v5452_v62 = vunpack.i.h.bf16 %v5450_v47  ;;  %v5451_v56 = vunpack.i.l.bf16 %v5450_v47  ;;  %v3816_v50 = vpack.c.bf16 %v3799_v40, %v3798_v25 }
 0x238   : > { %v3782_v11 = vsel %vm3769_vm13, %v3749_v9, %v5451_v56  ;;  %v3783_v8 = vsel %vm3769_vm13, %v3750_v1, %v5452_v62  ;;  %4783 = vmatprep.mubr.msk.bf16.mxu1 %vm3845_vm15, %v3816_v50 }
 0x239   : > { %v3808_v27 = vpack.c.bf16 %v3783_v8, %v3782_v11 }
 0x23b   : > { %4767 = vmatprep.mubr.msk.bf16.mxu0 %vm3845_vm15, %v3808_v27 }
 0x23e   : > { %v5465_v49 = vpop.permute.xlu1 %5464 }
 0x23f   : > { %v5467_v59 = vunpack.i.h.bf16 %v5465_v49  ;;  %v5466_v28 = vunpack.i.l.bf16 %v5465_v49  ;;  %v5460_v43 = vpop.permute.xlu0 %5459 }
 0x240   : > { %v5462_v41 = vunpack.i.h.bf16 %v5460_v43  ;;  %v5461_v42 = vunpack.i.l.bf16 %v5460_v43 }
 0x241   : > { %v3800_v7 = vsel %vm3769_vm13, %v3767_v23, %v5466_v28  ;;  %v3801_v15 = vsel %vm3769_vm13, %v3768_v35, %v5467_v59 }
 0x242   : > { %v3817_v3 = vpack.c.bf16 %v3801_v15, %v3800_v7  ;;  %v3784_v48 = vsel %vm3769_vm13, %v3751_v24, %v5461_v42  ;;  %v3785_v26 = vsel %vm3769_vm13, %v3752_v39, %v5462_v41 }
 0x243   : > { %v3809_v29 = vpack.c.bf16 %v3785_v26, %v3784_v48 }
 0x244   : > { %4784 = vmatmul.mubr.msk.bf16.gmra.mrb[12].mxu1 %vm3845_vm15, %v3817_v3 }
 0x245   : > { %4768 = vmatmul.mubr.msk.bf16.gmra.mrb[12].mxu0 %vm3845_vm15, %v3809_v29 }
 0x297   : > { %v4757_v33 = vpop.f32.mrb[0].mxu0 }
 0x298   : > { %v3941_v51 = vadd.f32 %v4757_v33, %v8141_v16  ;;  %v4773_v22 = vpop.f32.mrb[0].mxu1  ;;  %v3932_v31 = vpop.f32.mrb[1].mxu0 }
 0x299   : > { %v4005_v55 = vadd.f32 %v4773_v22, %v8141_v16  ;;  %v3933_v4 = vadd.f32 %v8141_v16, %v3932_v31  ;;  %v3996_v17 = vpop.f32.mrb[1].mxu1  ;;  %v4758_v36 = vpop.f32.mrb[2].mxu0 }
 0x29a   : > { %v4061_v47 = vmul.f32 0.1, %v3941_v51  ;;  %v3997_v25 = vadd.f32 %v8141_v16, %v3996_v17  ;;  %v3944_v40 = vadd.f32 %v4758_v36, %v8141_v16  ;;  %v4774_v62 = vpop.f32.mrb[2].mxu1  ;;  %v3935_v56 = vpop.f32.mrb[3].mxu0 }
 0x29b   : > { %v4077_v19 = vmul.f32 0.1, %v4005_v55  ;;  %v4059_v9 = vmul.f32 0.1, %v3933_v4  ;;  %v4008_v1 = vadd.f32 %v4774_v62, %v8141_v16  ;;  %v3936_v50 = vadd.f32 %v8141_v16, %v3935_v56  ;;  %v3999_v44 = vpop.f32.mrb[3].mxu1 }
 0x29c   : > { %v4075_v63 = vmul.f32 0.1, %v3997_v25  ;;  %v4062_v11 = vmul.f32 0.1, %v3944_v40  ;;  %v4000_v8 = vadd.f32 %v8141_v16, %v3999_v44  ;;  %v4093_v0 = vmax.f32 %v3941_v51, %v4061_v47 }
 0x29d   : > { %v4078_v34 = vmul.f32 0.1, %v4008_v1  ;;  %v4060_v13 = vmul.f32 0.1, %v3936_v50  ;;  %v4109_v58 = vmax.f32 %v4005_v55, %v4077_v19  ;;  %v4091_v2 = vmax.f32 %v3933_v4, %v4059_v9 }
 0x29e   : > { %v4094_v27 = vmax.f32 %v3944_v40, %v4062_v11  ;;  %v4076_v61 = vmul.f32 0.1, %v4000_v8  ;;  %v4107_v60 = vmax.f32 %v3997_v25, %v4075_v63 }
 0x29f   : > { %v4110_v12 = vmax.f32 %v4008_v1, %v4078_v34  ;;  %v4092_v6 = vmax.f32 %v3936_v50, %v4060_v13 }
 0x2a0   : > { %v4643_v5 = vpack.c.bf16 %v4094_v27, %v4093_v0  ;;  %v4108_v57 = vmax.f32 %v4000_v8, %v4076_v61 }
 0x2a1   : > { %v4683_v14 = vpack.c.bf16 %v4110_v12, %v4109_v58  ;;  %v4638_v54 = vpack.c.bf16 %v4092_v6, %v4091_v2 }
 0x2a2   : > { %4715 = vst [vmem:[%s8154_s17 + $0x8] sm:$0xff] %v4643_v5   ;;  %v4678_v52 = vpack.c.bf16 %v4108_v57, %v4107_v60 }
 0x2a3   : > { %4723 = vst [vmem:[%s8154_s17 + $0x48] sm:$0xff] %v4683_v14   ;;  %4639 = vst [vmem:[%s8154_s17] sm:$0xff] %v4638_v54  }
 0x2a4   : > { %4722 = vst [vmem:[%s8154_s17 + $0x40] sm:$0xff] %v4678_v52  }
 0x2b0   : > { %v4777_v10 = vpop.f32.mrb[4].mxu1 }
 0x2b1   : > { %v4761_v37 = vpop.f32.mrb[4].mxu0  ;;  %v4021_v18 = vadd.f32 %v4777_v10, %v8141_v16  ;;  %v4012_v53 = vpop.f32.mrb[5].mxu1 }
 0x2b2   : > { %v3957_v32 = vadd.f32 %v4761_v37, %v8141_v16  ;;  %v3948_v46 = vpop.f32.mrb[5].mxu0  ;;  %v4013_v38 = vadd.f32 %v8141_v16, %v4012_v53  ;;  %v4778_v30 = vpop.f32.mrb[6].mxu1 }
 0x2b3   : > { %v4081_v21 = vmul.f32 0.1, %v4021_v18  ;;  %v3949_v49 = vadd.f32 %v8141_v16, %v3948_v46  ;;  %v4762_v20 = vpop.f32.mrb[6].mxu0  ;;  %v4024_v45 = vadd.f32 %v4778_v30, %v8141_v16  ;;  %v4015_v59 = vpop.f32.mrb[7].mxu1 }
 0x2b4   : > { %v4065_v28 = vmul.f32 0.1, %v3957_v32  ;;  %v4079_v43 = vmul.f32 0.1, %v4013_v38  ;;  %v3960_v23 = vadd.f32 %v4762_v20, %v8141_v16  ;;  %v3951_v35 = vpop.f32.mrb[7].mxu0  ;;  %v4016_v41 = vadd.f32 %v8141_v16, %v4015_v59 }
 0x2b5   : > { %v4063_v42 = vmul.f32 0.1, %v3949_v49  ;;  %v4082_v24 = vmul.f32 0.1, %v4024_v45  ;;  %v3952_v39 = vadd.f32 %v8141_v16, %v3951_v35  ;;  %v4113_v3 = vmax.f32 %v4021_v18, %v4081_v21 }
 0x2b6   : > { %v4066_v7 = vmul.f32 0.1, %v3960_v23  ;;  %v4080_v15 = vmul.f32 0.1, %v4016_v41  ;;  %v4097_v29 = vmax.f32 %v3957_v32, %v4065_v28  ;;  %v4111_v33 = vmax.f32 %v4013_v38, %v4079_v43 }
 0x2b7   : > { %v4114_v48 = vmax.f32 %v4024_v45, %v4082_v24  ;;  %v4064_v26 = vmul.f32 0.1, %v3952_v39  ;;  %v4095_v31 = vmax.f32 %v3949_v49, %v4063_v42 }
 0x2b8   : > { %v4098_v51 = vmax.f32 %v3960_v23, %v4066_v7  ;;  %v4112_v22 = vmax.f32 %v4016_v41, %v4080_v15 }
 0x2b9   : > { %v4693_v55 = vpack.c.bf16 %v4114_v48, %v4113_v3  ;;  %v4096_v4 = vmax.f32 %v3952_v39, %v4064_v26 }
 0x2ba   : > { %v4653_v17 = vpack.c.bf16 %v4098_v51, %v4097_v29  ;;  %v4688_v36 = vpack.c.bf16 %v4112_v22, %v4111_v33 }
 0x2bb   : > { %4725 = vst [vmem:[%s8154_s17 + $0x58] sm:$0xff] %v4693_v55   ;;  %v4648_v47 = vpack.c.bf16 %v4096_v4, %v4095_v31 }
 0x2bc   : > { %4717 = vst [vmem:[%s8154_s17 + $0x18] sm:$0xff] %v4653_v17   ;;  %4724 = vst [vmem:[%s8154_s17 + $0x50] sm:$0xff] %v4688_v36  }
 0x2bd   : > { %4716 = vst [vmem:[%s8154_s17 + $0x10] sm:$0xff] %v4648_v47  }
 0x2d1   : > { %v4781_v25 = vpop.f32.mrb[8].mxu1 }
 0x2d2   : > { %v4037_v40 = vadd.f32 %v4781_v25, %v8141_v16  ;;  %v4028_v62 = vpop.f32.mrb[9].mxu1 }
 0x2d3   : > { %v4765_v56 = vpop.f32.mrb[8].mxu0  ;;  %v4029_v19 = vadd.f32 %v8141_v16, %v4028_v62  ;;  %v4782_v9 = vpop.f32.mrb[10].mxu1 }
 0x2d4   : > { %v3973_v1 = vadd.f32 %v4765_v56, %v8141_v16  ;;  %v4085_v50 = vmul.f32 0.1, %v4037_v40  ;;  %v3964_v44 = vpop.f32.mrb[9].mxu0  ;;  %v4040_v63 = vadd.f32 %v4782_v9, %v8141_v16  ;;  %v4031_v11 = vpop.f32.mrb[11].mxu1 }
 0x2d5   : > { %v3965_v8 = vadd.f32 %v8141_v16, %v3964_v44  ;;  %v4083_v34 = vmul.f32 0.1, %v4029_v19  ;;  %v4766_v13 = vpop.f32.mrb[10].mxu0  ;;  %v4032_v0 = vadd.f32 %v8141_v16, %v4031_v11 }
 0x2d6   : > { %v4069_v27 = vmul.f32 0.1, %v3973_v1  ;;  %v3976_v61 = vadd.f32 %v4766_v13, %v8141_v16  ;;  %v4086_v58 = vmul.f32 0.1, %v4040_v63  ;;  %v3967_v2 = vpop.f32.mrb[11].mxu0  ;;  %v4117_v5 = vmax.f32 %v4037_v40, %v4085_v50 }
 0x2d7   : > { %v4067_v12 = vmul.f32 0.1, %v3965_v8  ;;  %v3968_v6 = vadd.f32 %v8141_v16, %v3967_v2  ;;  %v4084_v60 = vmul.f32 0.1, %v4032_v0  ;;  %v4115_v54 = vmax.f32 %v4029_v19, %v4083_v34 }
 0x2d8   : > { %v4070_v57 = vmul.f32 0.1, %v3976_v61  ;;  %v4118_v14 = vmax.f32 %v4040_v63, %v4086_v58  ;;  %v4101_v37 = vmax.f32 %v3973_v1, %v4069_v27 }
 0x2d9   : > { %v4068_v52 = vmul.f32 0.1, %v3968_v6  ;;  %v4116_v10 = vmax.f32 %v4032_v0, %v4084_v60  ;;  %v4099_v32 = vmax.f32 %v3965_v8, %v4067_v12 }
 0x2da   : > { %v4102_v18 = vmax.f32 %v3976_v61, %v4070_v57  ;;  %v4703_v53 = vpack.c.bf16 %v4118_v14, %v4117_v5 }
 0x2db   : > { %v4100_v46 = vmax.f32 %v3968_v6, %v4068_v52  ;;  %v4698_v38 = vpack.c.bf16 %v4116_v10, %v4115_v54 }
 0x2dc   : > { %v4663_v30 = vpack.c.bf16 %v4102_v18, %v4101_v37  ;;  %4727 = vst [vmem:[%s8154_s17 + $0x68] sm:$0xff] %v4703_v53  }
 0x2dd   : > { %v4658_v21 = vpack.c.bf16 %v4100_v46, %v4099_v32  ;;  %4726 = vst [vmem:[%s8154_s17 + $0x60] sm:$0xff] %v4698_v38  }
 0x2de   : > { %4719 = vst [vmem:[%s8154_s17 + $0x28] sm:$0xff] %v4663_v30  }
 0x2df   : > { %4718 = vst [vmem:[%s8154_s17 + $0x20] sm:$0xff] %v4658_v21  }
 0x317   : > { %v4785_v49 = vpop.f32.mrb[12].mxu1 }
 0x318   : > { %v4769_v20 = vpop.f32.mrb[12].mxu0  ;;  %v4053_v45 = vadd.f32 %v4785_v49, %v8141_v16  ;;  %v4044_v59 = vpop.f32.mrb[13].mxu1 }
 0x319   : > { %v3989_v28 = vadd.f32 %v4769_v20, %v8141_v16  ;;  %v3980_v43 = vpop.f32.mrb[13].mxu0  ;;  %v4045_v23 = vadd.f32 %v8141_v16, %v4044_v59  ;;  %v4786_v35 = vpop.f32.mrb[14].mxu1 }
 0x31a   : > { %v4089_v41 = vmul.f32 0.1, %v4053_v45  ;;  %v3981_v42 = vadd.f32 %v8141_v16, %v3980_v43  ;;  %v4770_v24 = vpop.f32.mrb[14].mxu0  ;;  %v4056_v39 = vadd.f32 %v4786_v35, %v8141_v16  ;;  %v4047_v7 = vpop.f32.mrb[15].mxu1 }
 0x31b   : > { %v4073_v15 = vmul.f32 0.1, %v3989_v28  ;;  %v4087_v3 = vmul.f32 0.1, %v4045_v23  ;;  %v3992_v48 = vadd.f32 %v4770_v24, %v8141_v16  ;;  %v3983_v26 = vpop.f32.mrb[15].mxu0  ;;  %v4048_v29 = vadd.f32 %v8141_v16, %v4047_v7 }
 0x31c   : > { %v4071_v33 = vmul.f32 0.1, %v3981_v42  ;;  %v4090_v51 = vmul.f32 0.1, %v4056_v39  ;;  %v3984_v22 = vadd.f32 %v8141_v16, %v3983_v26  ;;  %v4121_v4 = vmax.f32 %v4053_v45, %v4089_v41 }
 0x31d   : > { %v4074_v31 = vmul.f32 0.1, %v3992_v48  ;;  %v4088_v55 = vmul.f32 0.1, %v4048_v29  ;;  %v4105_v47 = vmax.f32 %v3989_v28, %v4073_v15  ;;  %v4119_v25 = vmax.f32 %v4045_v23, %v4087_v3 }
 0x31e   : > { %v4122_v17 = vmax.f32 %v4056_v39, %v4090_v51  ;;  %v4072_v36 = vmul.f32 0.1, %v3984_v22  ;;  %v4103_v56 = vmax.f32 %v3981_v42, %v4071_v33 }
 0x31f   : > { %v4106_v40 = vmax.f32 %v3992_v48, %v4074_v31  ;;  %v4120_v62 = vmax.f32 %v4048_v29, %v4088_v55 }
 0x320   : > { %v4713_v19 = vpack.c.bf16 %v4122_v17, %v4121_v4  ;;  %v4104_v9 = vmax.f32 %v3984_v22, %v4072_v36 }
 0x321   : > { %v4673_v1 = vpack.c.bf16 %v4106_v40, %v4105_v47  ;;  %v4708_v50 = vpack.c.bf16 %v4120_v62, %v4119_v25 }
 0x322   : > { %4729 = vst [vmem:[%s8154_s17 + $0x78] sm:$0xff] %v4713_v19   ;;  %v4668_v44 = vpack.c.bf16 %v4104_v9, %v4103_v56 }
 0x323   : > { %4721 = vst [vmem:[%s8154_s17 + $0x38] sm:$0xff] %v4673_v1   ;;  %4728 = vst [vmem:[%s8154_s17 + $0x70] sm:$0xff] %v4708_v50  }
 0x324   : > { %4720 = vst [vmem:[%s8154_s17 + $0x30] sm:$0xff] %v4668_v44  }
 0x325 PF: > { %s13_s14 = sadd.s32 1, %s5533_s14   ;;  %s8417_s12 = smov %s5529_s13 }
 0x326   : > { %p10_p6 = scmp.ge.s32.totalorder %s13_s14, 4   ;;  %s8418_s13 = smov %s8420_s15 }
 0x328   :  { %12 = sbr.rel (!%p10_p6) target bundleno = 2 (0x2), region = 65 }

</bundles_post_ra>
